<compile_context>
chip_gen: v7x
topology: tpu7x:2x2x1
jax: 0.10.0
libtpu: 0.0.40
codegen_flags: <defaults>
</compile_context>

<pallas_src>
import math
import functools

import jax
import jax.numpy as jnp
from jax import lax
from jax.experimental import pallas as pl
from jax.experimental.pallas import tpu as pltpu


def clip_layer_kernel(x_ref,
                      ln1_w_ref, ln1_b_ref,
                      ln2_w_ref, ln2_b_ref,
                      wqkv_ref, bqkv_ref,     # wqkv: (E, 3E) bf16, Q cols pre-scaled by 1/sqrt(dh)
                      wo_ref, bo_ref,         # wo:   (E, E)  bf16
                      w1_ref, b1_ref,         # w1:   (E, 4E) bf16
                      w2_ref, b2_ref,         # w2:   (4E, E) bf16
                      o_ref,
                      *, n_heads: int, bt: int):
    _, S, E = x_ref.shape
    R = bt * S
    dh = E // n_heads
    f32, bf16 = jnp.float32, jnp.bfloat16

    x = x_ref[...].reshape(R, E)                                     # (R, E) f32

    def layernorm(v, w, b, eps=1e-5):
        mu = jnp.mean(v, axis=-1, keepdims=True)
        var = jnp.mean((v - mu) ** 2, axis=-1, keepdims=True)
        return (v - mu) * lax.rsqrt(var + eps) * w + b

    # ----------------- attention block -----------------
    h = layernorm(x, ln1_w_ref[...], ln1_b_ref[...])
    qkv = jnp.dot(h.astype(bf16), wqkv_ref[...],
                  preferred_element_type=f32) + bqkv_ref[...]        # (R, 3E) f32
    qkv_b = qkv.astype(bf16)

    # Additive causal bias, built once per grid step (0 on/below diag, -1e30 above).
    rows = lax.broadcasted_iota(jnp.int32, (S, S), 0)
    cols = lax.broadcasted_iota(jnp.int32, (S, S), 1)
    mask_bias = jnp.where(cols > rows, -1e30, 0.0).astype(f32)       # (S, S)

    wo = wo_ref[...]                                                 # (E, E) bf16
    bo = bo_ref[...]                                                 # (1, E) f32

    item_outs = []
    for b in range(bt):                          # static unroll, bt is small
        r0 = b * S
        # residual + output-projection bias; heads accumulate on top.
        acc = x[r0:r0 + S, :] + bo                                   # (S, E) f32
        for hd in range(n_heads):                # static unroll over heads
            c0 = hd * dh
            qh = qkv_b[r0:r0 + S, c0:c0 + dh]                        # (S, dh)
            kh = qkv_b[r0:r0 + S, E + c0:E + c0 + dh]                # (S, dh)
            vh = qkv_b[r0:r0 + S, 2 * E + c0:2 * E + c0 + dh]        # (S, dh)
            # scores = (q / sqrt(dh)) @ k^T ; the scale is folded into Wq.
            # Contract last dims of both so k stays in stored layout (no .T).
            s = lax.dot_general(qh, kh, (((1,), (1,)), ((), ())),
                                preferred_element_type=f32)          # (S, S)
            s = s + mask_bias
            s = s - jnp.max(s, axis=-1, keepdims=True)
            p = jnp.exp(s)
            denom = jnp.sum(p, axis=-1, keepdims=True)
            ctx = jnp.dot(p.astype(bf16), vh, preferred_element_type=f32)  # (S, dh)
            ctx = ctx * pl.reciprocal(denom, approx=True)            # EUP, ~free
            # Fused output projection: accumulate ctx @ Wo[head rows] (no concat).
            acc = acc + jnp.dot(ctx.astype(bf16), wo[c0:c0 + dh, :],
                                preferred_element_type=f32)
        item_outs.append(acc)
    x1 = item_outs[0] if bt == 1 else jnp.concatenate(item_outs, axis=0)   # (R, E)

    # ----------------- MLP block -----------------
    h2 = layernorm(x1, ln2_w_ref[...], ln2_b_ref[...])
    ff = jnp.dot(h2.astype(bf16), w1_ref[...],
                 preferred_element_type=f32) + b1_ref[...]           # (R, 4E)
    ff = ff * jax.nn.sigmoid(1.702 * ff)                             # QuickGELU, f32
    ff = jnp.dot(ff.astype(bf16), w2_ref[...],
                 preferred_element_type=f32) + b2_ref[...]           # (R, E)

    o_ref[...] = (x1 + ff).reshape(bt, S, E).astype(o_ref.dtype)     # second residual


def _pick_block_batch(B, S, max_rows=256):
    """Largest divisor of B keeping the flattened row count moderate."""
    bt = 1
    for d in range(1, B + 1):
        if B % d == 0 and d * S <= max_rows:
            bt = d
    return bt


def _pick_vmem_limit():
    cap = 64 * 1024 * 1024                      # conservative default (v7x per-TC)
    try:
        cap = int(pltpu.get_tpu_info().vmem_capacity_bytes)
    except Exception:
        pass
    # ~56 MiB on v7x (64 MiB/TC); capped at ~100 MiB on v5e/v6e (128 MiB).
    return min((cap * 7) // 8, 100 * 1024 * 1024)


def clip_layer(x, params, n_heads):
    """x: (B, S, E) f32; params: PyTorch-convention weights (see init_params)."""
    B, S, E = x.shape
    dh = E // n_heads
    bt = _pick_block_batch(B, S)
    grid = (B // bt,)
    f32, bf16 = jnp.float32, jnp.bfloat16

    row = lambda v: v.reshape(1, -1).astype(f32)

    # Fold 1/sqrt(d_head) into the Q projection; pre-transpose Linear weights
    # (out,in)->(in,out); pre-cast matmul weights to bf16 so the DMA moves bf16.
    qscale = jnp.concatenate([jnp.full((E,), 1.0 / math.sqrt(dh), f32),
                              jnp.ones((2 * E,), f32)])
    wqkv = (params["in_proj_w"].astype(f32).T * qscale[None, :]).astype(bf16)
    bqkv = (params["in_proj_b"].astype(f32) * qscale).reshape(1, -1)

    kernel_args = (
        x,
        row(params["ln1_w"]), row(params["ln1_b"]),
        row(params["ln2_w"]), row(params["ln2_b"]),
        wqkv, bqkv,
        params["out_proj_w"].astype(f32).T.astype(bf16), row(params["out_proj_b"]),
        params["fc1_w"].astype(f32).T.astype(bf16), row(params["fc1_b"]),
        params["fc2_w"].astype(f32).T.astype(bf16), row(params["fc2_b"]),
    )

    kernel = functools.partial(clip_layer_kernel, n_heads=n_heads, bt=bt)
    vmem_limit = _pick_vmem_limit()

    def build(single_buffer_weights):
        def const_spec(a):
            shp = a.shape
            idx = lambda b, _n=len(shp): (0,) * _n
            if single_buffer_weights:
                # Weights/biases never change across the batch grid: single-buffer
                # them to halve their VMEM residency (matters on v7x's 64 MiB).
                return pl.BlockSpec(shp, idx, pipeline_mode=pl.Buffered(1))
            return pl.BlockSpec(shp, idx)

        in_specs = [pl.BlockSpec((bt, S, E), lambda b: (b, 0, 0))] + \
                   [const_spec(a) for a in kernel_args[1:]]

        return pl.pallas_call(
            kernel,
            out_shape=jax.ShapeDtypeStruct((B, S, E), x.dtype),
            grid_spec=pltpu.PrefetchScalarGridSpec(
                num_scalar_prefetch=0,
                grid=grid,
                in_specs=in_specs,
                out_specs=pl.BlockSpec((bt, S, E), lambda b: (b, 0, 0)),
            ),
            compiler_params=pltpu.CompilerParams(
                dimension_semantics=("parallel",),   # batch blocks are independent
                vmem_limit_bytes=vmem_limit,
            ),
        )

    last_err = None
    for sbw in (True, False):                    # fall back if Buffered(1) rejected
        try:
            out = build(sbw)(*kernel_args)
            return jax.block_until_ready(out)
        except Exception as e:                   # pragma: no cover - fallback path
            last_err = e
    raise last_err


# ---------------- pure-JAX reference (PyTorch semantics) ----------------
def clip_layer_ref(x, p, n_heads):
    B, S, E = x.shape
    d_head = E // n_heads

    def ln(v, w, b, eps=1e-5):
        mu = v.mean(-1, keepdims=True)
        var = ((v - mu) ** 2).mean(-1, keepdims=True)
        return (v - mu) / jnp.sqrt(var + eps) * w + b

    res = x
    h = ln(x, p["ln1_w"], p["ln1_b"])
    qkv = h @ p["in_proj_w"].T + p["in_proj_b"]
    q, k, v = jnp.split(qkv, 3, axis=-1)
    reshape_heads = lambda t: t.reshape(B, S, n_heads, d_head).transpose(0, 2, 1, 3)
    q, k, v = reshape_heads(q), reshape_heads(k), reshape_heads(v)
    w = jnp.einsum("bhqd,bhkd->bhqk", q, k)
    mask = jnp.triu(jnp.ones((S, S), bool), 1)
    w = jnp.where(mask, -jnp.inf, w) / math.sqrt(d_head)
    w = jax.nn.softmax(w, axis=-1)
    o = jnp.einsum("bhqk,bhkd->bhqd", w, v).transpose(0, 2, 1, 3).reshape(B, S, E)
    o = o @ p["out_proj_w"].T + p["out_proj_b"]
    x1 = o + res
    res = x1
    h2 = ln(x1, p["ln2_w"], p["ln2_b"])
    ff = h2 @ p["fc1_w"].T + p["fc1_b"]
    ff = ff * jax.nn.sigmoid(1.702 * ff)
    ff = ff @ p["fc2_w"].T + p["fc2_b"]
    return ff + res


def init_params(key, n_embed):
    E = n_embed
    ks = jax.random.split(key, 12)
    n = lambda k, shp, s=0.02: (s * jax.random.normal(k, shp)).astype(jnp.float32)
    return {
        "ln1_w": jnp.ones((E,), jnp.float32), "ln1_b": n(ks[0], (E,)),
        "ln2_w": jnp.ones((E,), jnp.float32), "ln2_b": n(ks[1], (E,)),
        "in_proj_w": n(ks[2], (3 * E, E)),    "in_proj_b": n(ks[3], (3 * E,)),
        "out_proj_w": n(ks[4], (E, E)),       "out_proj_b": n(ks[5], (E,)),
        "fc1_w": n(ks[6], (4 * E, E)),        "fc1_b": n(ks[7], (4 * E,)),
        "fc2_w": n(ks[8], (E, 4 * E)),        "fc2_b": n(ks[9], (E,)),
    }


if __name__ == "__main__":
    B, S, E, H = 2, 8, 32, 4
    key = jax.random.PRNGKey(0)
    kx, kp = jax.random.split(key)
    x = jax.random.normal(kx, (B, S, E), dtype=jnp.float32)
    params = init_params(kp, E)

    out = clip_layer(x, params, n_heads=H)
    out = jax.block_until_ready(out)

    ref = clip_layer_ref(x, params, n_heads=H)
    assert out.shape == (B, S, E)
    err = jnp.max(jnp.abs(out - ref))
    # bf16 matmul operands + approx reciprocal -> looser tolerance than pure f32
    assert jnp.allclose(out, ref, rtol=2e-2, atol=2e-2), f"max abs err {err}"
    print("KERNEL_OK")
</pallas_src>

<mosaic_0001>
module attributes {stable_mosaic.version = 11 : i64} {
  func.func @clip_layer_kernel(%arg0: i32, %arg1: memref<2x8x32xf32, #tpu.memory_space<vmem>>, %arg2: memref<1x32xf32, #tpu.memory_space<vmem>>, %arg3: memref<1x32xf32, #tpu.memory_space<vmem>>, %arg4: memref<1x32xf32, #tpu.memory_space<vmem>>, %arg5: memref<1x32xf32, #tpu.memory_space<vmem>>, %arg6: memref<32x96xbf16, #tpu.memory_space<vmem>>, %arg7: memref<1x96xf32, #tpu.memory_space<vmem>>, %arg8: memref<32x32xbf16, #tpu.memory_space<vmem>>, %arg9: memref<1x32xf32, #tpu.memory_space<vmem>>, %arg10: memref<32x128xbf16, #tpu.memory_space<vmem>>, %arg11: memref<1x128xf32, #tpu.memory_space<vmem>>, %arg12: memref<128x32xbf16, #tpu.memory_space<vmem>>, %arg13: memref<1x32xf32, #tpu.memory_space<vmem>>, %arg14: memref<2x8x32xf32, #tpu.memory_space<vmem>>) attributes {dimension_semantics = [#tpu.dimension_semantics<parallel>], iteration_bounds = array<i64: 1>, scalar_prefetch = 0 : i64, scratch_operands = 0 : i64, tpu.core_type = #tpu.core_type<tc>, window_params = [{transform_indices = @transform_0, window_bounds = array<i64: 2, 8, 32>}, {pipeline_mode = #tpu.pipeline_mode<synchronous>, transform_indices = @transform_1, window_bounds = array<i64: 1, 32>}, {pipeline_mode = #tpu.pipeline_mode<synchronous>, transform_indices = @transform_2, window_bounds = array<i64: 1, 32>}, {pipeline_mode = #tpu.pipeline_mode<synchronous>, transform_indices = @transform_3, window_bounds = array<i64: 1, 32>}, {pipeline_mode = #tpu.pipeline_mode<synchronous>, transform_indices = @transform_4, window_bounds = array<i64: 1, 32>}, {pipeline_mode = #tpu.pipeline_mode<synchronous>, transform_indices = @transform_5, window_bounds = array<i64: 32, 96>}, {pipeline_mode = #tpu.pipeline_mode<synchronous>, transform_indices = @transform_6, window_bounds = array<i64: 1, 96>}, {pipeline_mode = #tpu.pipeline_mode<synchronous>, transform_indices = @transform_7, window_bounds = array<i64: 32, 32>}, {pipeline_mode = #tpu.pipeline_mode<synchronous>, transform_indices = @transform_8, window_bounds = array<i64: 1, 32>}, {pipeline_mode = #tpu.pipeline_mode<synchronous>, transform_indices = @transform_9, window_bounds = array<i64: 32, 128>}, {pipeline_mode = #tpu.pipeline_mode<synchronous>, transform_indices = @transform_10, window_bounds = array<i64: 1, 128>}, {pipeline_mode = #tpu.pipeline_mode<synchronous>, transform_indices = @transform_11, window_bounds = array<i64: 128, 32>}, {pipeline_mode = #tpu.pipeline_mode<synchronous>, transform_indices = @transform_12, window_bounds = array<i64: 1, 32>}, {transform_indices = @transform_13, window_bounds = array<i64: 2, 8, 32>}]} {
    %c0 = arith.constant 0 : index
    %c0_0 = arith.constant 0 : index
    %c0_1 = arith.constant 0 : index
    %0 = vector.load %arg1[%c0, %c0_0, %c0_1] : memref<2x8x32xf32, #tpu.memory_space<vmem>>, vector<2x8x32xf32>
    %1 = vector.shape_cast %0 : vector<2x8x32xf32> to vector<16x32xf32>
    %c0_2 = arith.constant 0 : index
    %c0_3 = arith.constant 0 : index
    %2 = vector.load %arg2[%c0_2, %c0_3] : memref<1x32xf32, #tpu.memory_space<vmem>>, vector<1x32xf32>
    %c0_4 = arith.constant 0 : index
    %c0_5 = arith.constant 0 : index
    %3 = vector.load %arg3[%c0_4, %c0_5] : memref<1x32xf32, #tpu.memory_space<vmem>>, vector<1x32xf32>
    %cst = arith.constant dense<0.000000e+00> : vector<16xf32>
    %4 = vector.multi_reduction <add>, %1, %cst [1] : vector<16x32xf32> to vector<16xf32>
    %5 = vector.shape_cast %4 : vector<16xf32> to vector<16x1xf32>
    %cst_6 = arith.constant 3.200000e+01 : f32
    %6 = vector.broadcast %cst_6 : f32 to vector<16x1xf32>
    %7 = arith.divf %5, %6 : vector<16x1xf32>
    %8 = vector.broadcast %7 : vector<16x1xf32> to vector<16x32xf32>
    %9 = arith.subf %1, %8 : vector<16x32xf32>
    %10 = arith.mulf %9, %9 : vector<16x32xf32>
    %cst_7 = arith.constant dense<0.000000e+00> : vector<16xf32>
    %11 = vector.multi_reduction <add>, %10, %cst_7 [1] : vector<16x32xf32> to vector<16xf32>
    %12 = vector.shape_cast %11 : vector<16xf32> to vector<16x1xf32>
    %cst_8 = arith.constant 3.200000e+01 : f32
    %13 = vector.broadcast %cst_8 : f32 to vector<16x1xf32>
    %14 = arith.divf %12, %13 : vector<16x1xf32>
    %15 = vector.broadcast %7 : vector<16x1xf32> to vector<16x32xf32>
    %16 = arith.subf %1, %15 : vector<16x32xf32>
    %cst_9 = arith.constant 9.99999974E-6 : f32
    %17 = vector.broadcast %cst_9 : f32 to vector<16x1xf32>
    %18 = arith.addf %14, %17 : vector<16x1xf32>
    %19 = math.rsqrt %18 : vector<16x1xf32>
    %20 = vector.broadcast %19 : vector<16x1xf32> to vector<16x32xf32>
    %21 = arith.mulf %16, %20 : vector<16x32xf32>
    %22 = vector.broadcast %2 : vector<1x32xf32> to vector<16x32xf32>
    %23 = arith.mulf %21, %22 : vector<16x32xf32>
    %24 = vector.broadcast %3 : vector<1x32xf32> to vector<16x32xf32>
    %25 = arith.addf %23, %24 : vector<16x32xf32>
    %26 = arith.truncf %25 : vector<16x32xf32> to vector<16x32xbf16>
    %c0_10 = arith.constant 0 : index
    %c0_11 = arith.constant 0 : index
    %27 = vector.load %arg6[%c0_10, %c0_11] : memref<32x96xbf16, #tpu.memory_space<vmem>>, vector<32x96xbf16>
    %cst_12 = arith.constant dense<0.000000e+00> : vector<16x96xf32>
    %28 = tpu.matmul %26, %27, %cst_12 {dimension_numbers = #tpu.dot_dimension_numbers<[1], [0], [0], [1], [0, 0, 1, 1], [], []>} : vector<16x32xbf16>, vector<32x96xbf16>, vector<16x96xf32> -> vector<16x96xf32>
    %c0_13 = arith.constant 0 : index
    %c0_14 = arith.constant 0 : index
    %29 = vector.load %arg7[%c0_13, %c0_14] : memref<1x96xf32, #tpu.memory_space<vmem>>, vector<1x96xf32>
    %30 = vector.broadcast %29 : vector<1x96xf32> to vector<16x96xf32>
    %31 = arith.addf %28, %30 : vector<16x96xf32>
    %32 = arith.truncf %31 : vector<16x96xf32> to vector<16x96xbf16>
    %33 = tpu.iota {dimensions = array<i32: 0>} : vector<8x8xi32>
    %34 = tpu.iota {dimensions = array<i32: 1>} : vector<8x8xi32>
    %35 = arith.cmpi sgt, %34, %33 : vector<8x8xi32>
    %cst_15 = arith.constant -1.000000e+30 : f32
    %cst_16 = arith.constant 0.000000e+00 : f32
    %36 = vector.broadcast %cst_15 : f32 to vector<8x8xf32>
    %37 = vector.broadcast %cst_16 : f32 to vector<8x8xf32>
    %38 = arith.select %35, %36, %37 : vector<8x8xi1>, vector<8x8xf32>
    %c0_17 = arith.constant 0 : index
    %c0_18 = arith.constant 0 : index
    %39 = vector.load %arg8[%c0_17, %c0_18] : memref<32x32xbf16, #tpu.memory_space<vmem>>, vector<32x32xbf16>
    %c0_19 = arith.constant 0 : index
    %c0_20 = arith.constant 0 : index
    %40 = vector.load %arg9[%c0_19, %c0_20] : memref<1x32xf32, #tpu.memory_space<vmem>>, vector<1x32xf32>
    %41 = vector.extract_strided_slice %1 {offsets = [0, 0], sizes = [8, 32], strides = [1, 1]} : vector<16x32xf32> to vector<8x32xf32>
    %42 = vector.broadcast %40 : vector<1x32xf32> to vector<8x32xf32>
    %43 = arith.addf %41, %42 : vector<8x32xf32>
    %44 = vector.extract_strided_slice %32 {offsets = [0, 0], sizes = [8, 8], strides = [1, 1]} : vector<16x96xbf16> to vector<8x8xbf16>
    %45 = vector.extract_strided_slice %32 {offsets = [0, 32], sizes = [8, 8], strides = [1, 1]} : vector<16x96xbf16> to vector<8x8xbf16>
    %46 = vector.extract_strided_slice %32 {offsets = [0, 64], sizes = [8, 8], strides = [1, 1]} : vector<16x96xbf16> to vector<8x8xbf16>
    %cst_21 = arith.constant dense<0.000000e+00> : vector<8x8xf32>
    %47 = tpu.matmul %44, %45, %cst_21 {dimension_numbers = #tpu.dot_dimension_numbers<[1], [1], [0], [0], [0, 0, 1, 0], [], []>} : vector<8x8xbf16>, vector<8x8xbf16>, vector<8x8xf32> -> vector<8x8xf32>
    %48 = arith.addf %47, %38 : vector<8x8xf32>
    %cst_22 = arith.constant dense<0xFF800000> : vector<8xf32>
    %49 = vector.multi_reduction <maximumf>, %48, %cst_22 [1] : vector<8x8xf32> to vector<8xf32>
    %50 = vector.shape_cast %49 : vector<8xf32> to vector<8x1xf32>
    %51 = vector.broadcast %50 : vector<8x1xf32> to vector<8x8xf32>
    %52 = arith.subf %48, %51 : vector<8x8xf32>
    %53 = math.exp %52 : vector<8x8xf32>
    %cst_23 = arith.constant dense<0.000000e+00> : vector<8xf32>
    %54 = vector.multi_reduction <add>, %53, %cst_23 [1] : vector<8x8xf32> to vector<8xf32>
    %55 = vector.shape_cast %54 : vector<8xf32> to vector<8x1xf32>
    %56 = arith.truncf %53 : vector<8x8xf32> to vector<8x8xbf16>
    %cst_24 = arith.constant dense<0.000000e+00> : vector<8x8xf32>
    %57 = tpu.matmul %56, %46, %cst_24 {dimension_numbers = #tpu.dot_dimension_numbers<[1], [0], [0], [1], [0, 0, 1, 1], [], []>} : vector<8x8xbf16>, vector<8x8xbf16>, vector<8x8xf32> -> vector<8x8xf32>
    %58 = tpu.reciprocal %55 {approx = true} : vector<8x1xf32> -> vector<8x1xf32>
    %59 = vector.broadcast %58 : vector<8x1xf32> to vector<8x8xf32>
    %60 = arith.mulf %57, %59 : vector<8x8xf32>
    %61 = arith.truncf %60 : vector<8x8xf32> to vector<8x8xbf16>
    %62 = vector.extract_strided_slice %39 {offsets = [0, 0], sizes = [8, 32], strides = [1, 1]} : vector<32x32xbf16> to vector<8x32xbf16>
    %cst_25 = arith.constant dense<0.000000e+00> : vector<8x32xf32>
    %63 = tpu.matmul %61, %62, %cst_25 {dimension_numbers = #tpu.dot_dimension_numbers<[1], [0], [0], [1], [0, 0, 1, 1], [], []>} : vector<8x8xbf16>, vector<8x32xbf16>, vector<8x32xf32> -> vector<8x32xf32>
    %64 = arith.addf %43, %63 : vector<8x32xf32>
    %65 = vector.extract_strided_slice %32 {offsets = [0, 8], sizes = [8, 8], strides = [1, 1]} : vector<16x96xbf16> to vector<8x8xbf16>
    %66 = vector.extract_strided_slice %32 {offsets = [0, 40], sizes = [8, 8], strides = [1, 1]} : vector<16x96xbf16> to vector<8x8xbf16>
    %67 = vector.extract_strided_slice %32 {offsets = [0, 72], sizes = [8, 8], strides = [1, 1]} : vector<16x96xbf16> to vector<8x8xbf16>
    %cst_26 = arith.constant dense<0.000000e+00> : vector<8x8xf32>
    %68 = tpu.matmul %65, %66, %cst_26 {dimension_numbers = #tpu.dot_dimension_numbers<[1], [1], [0], [0], [0, 0, 1, 0], [], []>} : vector<8x8xbf16>, vector<8x8xbf16>, vector<8x8xf32> -> vector<8x8xf32>
    %69 = arith.addf %68, %38 : vector<8x8xf32>
    %cst_27 = arith.constant dense<0xFF800000> : vector<8xf32>
    %70 = vector.multi_reduction <maximumf>, %69, %cst_27 [1] : vector<8x8xf32> to vector<8xf32>
    %71 = vector.shape_cast %70 : vector<8xf32> to vector<8x1xf32>
    %72 = vector.broadcast %71 : vector<8x1xf32> to vector<8x8xf32>
    %73 = arith.subf %69, %72 : vector<8x8xf32>
    %74 = math.exp %73 : vector<8x8xf32>
    %cst_28 = arith.constant dense<0.000000e+00> : vector<8xf32>
    %75 = vector.multi_reduction <add>, %74, %cst_28 [1] : vector<8x8xf32> to vector<8xf32>
    %76 = vector.shape_cast %75 : vector<8xf32> to vector<8x1xf32>
    %77 = arith.truncf %74 : vector<8x8xf32> to vector<8x8xbf16>
    %cst_29 = arith.constant dense<0.000000e+00> : vector<8x8xf32>
    %78 = tpu.matmul %77, %67, %cst_29 {dimension_numbers = #tpu.dot_dimension_numbers<[1], [0], [0], [1], [0, 0, 1, 1], [], []>} : vector<8x8xbf16>, vector<8x8xbf16>, vector<8x8xf32> -> vector<8x8xf32>
    %79 = tpu.reciprocal %76 {approx = true} : vector<8x1xf32> -> vector<8x1xf32>
    %80 = vector.broadcast %79 : vector<8x1xf32> to vector<8x8xf32>
    %81 = arith.mulf %78, %80 : vector<8x8xf32>
    %82 = arith.truncf %81 : vector<8x8xf32> to vector<8x8xbf16>
    %83 = vector.extract_strided_slice %39 {offsets = [8, 0], sizes = [8, 32], strides = [1, 1]} : vector<32x32xbf16> to vector<8x32xbf16>
    %cst_30 = arith.constant dense<0.000000e+00> : vector<8x32xf32>
    %84 = tpu.matmul %82, %83, %cst_30 {dimension_numbers = #tpu.dot_dimension_numbers<[1], [0], [0], [1], [0, 0, 1, 1], [], []>} : vector<8x8xbf16>, vector<8x32xbf16>, vector<8x32xf32> -> vector<8x32xf32>
    %85 = arith.addf %64, %84 : vector<8x32xf32>
    %86 = vector.extract_strided_slice %32 {offsets = [0, 16], sizes = [8, 8], strides = [1, 1]} : vector<16x96xbf16> to vector<8x8xbf16>
    %87 = vector.extract_strided_slice %32 {offsets = [0, 48], sizes = [8, 8], strides = [1, 1]} : vector<16x96xbf16> to vector<8x8xbf16>
    %88 = vector.extract_strided_slice %32 {offsets = [0, 80], sizes = [8, 8], strides = [1, 1]} : vector<16x96xbf16> to vector<8x8xbf16>
    %cst_31 = arith.constant dense<0.000000e+00> : vector<8x8xf32>
    %89 = tpu.matmul %86, %87, %cst_31 {dimension_numbers = #tpu.dot_dimension_numbers<[1], [1], [0], [0], [0, 0, 1, 0], [], []>} : vector<8x8xbf16>, vector<8x8xbf16>, vector<8x8xf32> -> vector<8x8xf32>
    %90 = arith.addf %89, %38 : vector<8x8xf32>
    %cst_32 = arith.constant dense<0xFF800000> : vector<8xf32>
    %91 = vector.multi_reduction <maximumf>, %90, %cst_32 [1] : vector<8x8xf32> to vector<8xf32>
    %92 = vector.shape_cast %91 : vector<8xf32> to vector<8x1xf32>
    %93 = vector.broadcast %92 : vector<8x1xf32> to vector<8x8xf32>
    %94 = arith.subf %90, %93 : vector<8x8xf32>
    %95 = math.exp %94 : vector<8x8xf32>
    %cst_33 = arith.constant dense<0.000000e+00> : vector<8xf32>
    %96 = vector.multi_reduction <add>, %95, %cst_33 [1] : vector<8x8xf32> to vector<8xf32>
    %97 = vector.shape_cast %96 : vector<8xf32> to vector<8x1xf32>
    %98 = arith.truncf %95 : vector<8x8xf32> to vector<8x8xbf16>
    %cst_34 = arith.constant dense<0.000000e+00> : vector<8x8xf32>
    %99 = tpu.matmul %98, %88, %cst_34 {dimension_numbers = #tpu.dot_dimension_numbers<[1], [0], [0], [1], [0, 0, 1, 1], [], []>} : vector<8x8xbf16>, vector<8x8xbf16>, vector<8x8xf32> -> vector<8x8xf32>
    %100 = tpu.reciprocal %97 {approx = true} : vector<8x1xf32> -> vector<8x1xf32>
    %101 = vector.broadcast %100 : vector<8x1xf32> to vector<8x8xf32>
    %102 = arith.mulf %99, %101 : vector<8x8xf32>
    %103 = arith.truncf %102 : vector<8x8xf32> to vector<8x8xbf16>
    %104 = vector.extract_strided_slice %39 {offsets = [16, 0], sizes = [8, 32], strides = [1, 1]} : vector<32x32xbf16> to vector<8x32xbf16>
    %cst_35 = arith.constant dense<0.000000e+00> : vector<8x32xf32>
    %105 = tpu.matmul %103, %104, %cst_35 {dimension_numbers = #tpu.dot_dimension_numbers<[1], [0], [0], [1], [0, 0, 1, 1], [], []>} : vector<8x8xbf16>, vector<8x32xbf16>, vector<8x32xf32> -> vector<8x32xf32>
    %106 = arith.addf %85, %105 : vector<8x32xf32>
    %107 = vector.extract_strided_slice %32 {offsets = [0, 24], sizes = [8, 8], strides = [1, 1]} : vector<16x96xbf16> to vector<8x8xbf16>
    %108 = vector.extract_strided_slice %32 {offsets = [0, 56], sizes = [8, 8], strides = [1, 1]} : vector<16x96xbf16> to vector<8x8xbf16>
    %109 = vector.extract_strided_slice %32 {offsets = [0, 88], sizes = [8, 8], strides = [1, 1]} : vector<16x96xbf16> to vector<8x8xbf16>
    %cst_36 = arith.constant dense<0.000000e+00> : vector<8x8xf32>
    %110 = tpu.matmul %107, %108, %cst_36 {dimension_numbers = #tpu.dot_dimension_numbers<[1], [1], [0], [0], [0, 0, 1, 0], [], []>} : vector<8x8xbf16>, vector<8x8xbf16>, vector<8x8xf32> -> vector<8x8xf32>
    %111 = arith.addf %110, %38 : vector<8x8xf32>
    %cst_37 = arith.constant dense<0xFF800000> : vector<8xf32>
    %112 = vector.multi_reduction <maximumf>, %111, %cst_37 [1] : vector<8x8xf32> to vector<8xf32>
    %113 = vector.shape_cast %112 : vector<8xf32> to vector<8x1xf32>
    %114 = vector.broadcast %113 : vector<8x1xf32> to vector<8x8xf32>
    %115 = arith.subf %111, %114 : vector<8x8xf32>
    %116 = math.exp %115 : vector<8x8xf32>
    %cst_38 = arith.constant dense<0.000000e+00> : vector<8xf32>
    %117 = vector.multi_reduction <add>, %116, %cst_38 [1] : vector<8x8xf32> to vector<8xf32>
    %118 = vector.shape_cast %117 : vector<8xf32> to vector<8x1xf32>
    %119 = arith.truncf %116 : vector<8x8xf32> to vector<8x8xbf16>
    %cst_39 = arith.constant dense<0.000000e+00> : vector<8x8xf32>
    %120 = tpu.matmul %119, %109, %cst_39 {dimension_numbers = #tpu.dot_dimension_numbers<[1], [0], [0], [1], [0, 0, 1, 1], [], []>} : vector<8x8xbf16>, vector<8x8xbf16>, vector<8x8xf32> -> vector<8x8xf32>
    %121 = tpu.reciprocal %118 {approx = true} : vector<8x1xf32> -> vector<8x1xf32>
    %122 = vector.broadcast %121 : vector<8x1xf32> to vector<8x8xf32>
    %123 = arith.mulf %120, %122 : vector<8x8xf32>
    %124 = arith.truncf %123 : vector<8x8xf32> to vector<8x8xbf16>
    %125 = vector.extract_strided_slice %39 {offsets = [24, 0], sizes = [8, 32], strides = [1, 1]} : vector<32x32xbf16> to vector<8x32xbf16>
    %cst_40 = arith.constant dense<0.000000e+00> : vector<8x32xf32>
    %126 = tpu.matmul %124, %125, %cst_40 {dimension_numbers = #tpu.dot_dimension_numbers<[1], [0], [0], [1], [0, 0, 1, 1], [], []>} : vector<8x8xbf16>, vector<8x32xbf16>, vector<8x32xf32> -> vector<8x32xf32>
    %127 = arith.addf %106, %126 : vector<8x32xf32>
    %128 = vector.extract_strided_slice %1 {offsets = [8, 0], sizes = [8, 32], strides = [1, 1]} : vector<16x32xf32> to vector<8x32xf32>
    %129 = vector.broadcast %40 : vector<1x32xf32> to vector<8x32xf32>
    %130 = arith.addf %128, %129 : vector<8x32xf32>
    %131 = vector.extract_strided_slice %32 {offsets = [8, 0], sizes = [8, 8], strides = [1, 1]} : vector<16x96xbf16> to vector<8x8xbf16>
    %132 = vector.extract_strided_slice %32 {offsets = [8, 32], sizes = [8, 8], strides = [1, 1]} : vector<16x96xbf16> to vector<8x8xbf16>
    %133 = vector.extract_strided_slice %32 {offsets = [8, 64], sizes = [8, 8], strides = [1, 1]} : vector<16x96xbf16> to vector<8x8xbf16>
    %cst_41 = arith.constant dense<0.000000e+00> : vector<8x8xf32>
    %134 = tpu.matmul %131, %132, %cst_41 {dimension_numbers = #tpu.dot_dimension_numbers<[1], [1], [0], [0], [0, 0, 1, 0], [], []>} : vector<8x8xbf16>, vector<8x8xbf16>, vector<8x8xf32> -> vector<8x8xf32>
    %135 = arith.addf %134, %38 : vector<8x8xf32>
    %cst_42 = arith.constant dense<0xFF800000> : vector<8xf32>
    %136 = vector.multi_reduction <maximumf>, %135, %cst_42 [1] : vector<8x8xf32> to vector<8xf32>
    %137 = vector.shape_cast %136 : vector<8xf32> to vector<8x1xf32>
    %138 = vector.broadcast %137 : vector<8x1xf32> to vector<8x8xf32>
    %139 = arith.subf %135, %138 : vector<8x8xf32>
    %140 = math.exp %139 : vector<8x8xf32>
    %cst_43 = arith.constant dense<0.000000e+00> : vector<8xf32>
    %141 = vector.multi_reduction <add>, %140, %cst_43 [1] : vector<8x8xf32> to vector<8xf32>
    %142 = vector.shape_cast %141 : vector<8xf32> to vector<8x1xf32>
    %143 = arith.truncf %140 : vector<8x8xf32> to vector<8x8xbf16>
    %cst_44 = arith.constant dense<0.000000e+00> : vector<8x8xf32>
    %144 = tpu.matmul %143, %133, %cst_44 {dimension_numbers = #tpu.dot_dimension_numbers<[1], [0], [0], [1], [0, 0, 1, 1], [], []>} : vector<8x8xbf16>, vector<8x8xbf16>, vector<8x8xf32> -> vector<8x8xf32>
    %145 = tpu.reciprocal %142 {approx = true} : vector<8x1xf32> -> vector<8x1xf32>
    %146 = vector.broadcast %145 : vector<8x1xf32> to vector<8x8xf32>
    %147 = arith.mulf %144, %146 : vector<8x8xf32>
    %148 = arith.truncf %147 : vector<8x8xf32> to vector<8x8xbf16>
    %149 = vector.extract_strided_slice %39 {offsets = [0, 0], sizes = [8, 32], strides = [1, 1]} : vector<32x32xbf16> to vector<8x32xbf16>
    %cst_45 = arith.constant dense<0.000000e+00> : vector<8x32xf32>
    %150 = tpu.matmul %148, %149, %cst_45 {dimension_numbers = #tpu.dot_dimension_numbers<[1], [0], [0], [1], [0, 0, 1, 1], [], []>} : vector<8x8xbf16>, vector<8x32xbf16>, vector<8x32xf32> -> vector<8x32xf32>
    %151 = arith.addf %130, %150 : vector<8x32xf32>
    %152 = vector.extract_strided_slice %32 {offsets = [8, 8], sizes = [8, 8], strides = [1, 1]} : vector<16x96xbf16> to vector<8x8xbf16>
    %153 = vector.extract_strided_slice %32 {offsets = [8, 40], sizes = [8, 8], strides = [1, 1]} : vector<16x96xbf16> to vector<8x8xbf16>
    %154 = vector.extract_strided_slice %32 {offsets = [8, 72], sizes = [8, 8], strides = [1, 1]} : vector<16x96xbf16> to vector<8x8xbf16>
    %cst_46 = arith.constant dense<0.000000e+00> : vector<8x8xf32>
    %155 = tpu.matmul %152, %153, %cst_46 {dimension_numbers = #tpu.dot_dimension_numbers<[1], [1], [0], [0], [0, 0, 1, 0], [], []>} : vector<8x8xbf16>, vector<8x8xbf16>, vector<8x8xf32> -> vector<8x8xf32>
    %156 = arith.addf %155, %38 : vector<8x8xf32>
    %cst_47 = arith.constant dense<0xFF800000> : vector<8xf32>
    %157 = vector.multi_reduction <maximumf>, %156, %cst_47 [1] : vector<8x8xf32> to vector<8xf32>
    %158 = vector.shape_cast %157 : vector<8xf32> to vector<8x1xf32>
    %159 = vector.broadcast %158 : vector<8x1xf32> to vector<8x8xf32>
    %160 = arith.subf %156, %159 : vector<8x8xf32>
    %161 = math.exp %160 : vector<8x8xf32>
    %cst_48 = arith.constant dense<0.000000e+00> : vector<8xf32>
    %162 = vector.multi_reduction <add>, %161, %cst_48 [1] : vector<8x8xf32> to vector<8xf32>
    %163 = vector.shape_cast %162 : vector<8xf32> to vector<8x1xf32>
    %164 = arith.truncf %161 : vector<8x8xf32> to vector<8x8xbf16>
    %cst_49 = arith.constant dense<0.000000e+00> : vector<8x8xf32>
    %165 = tpu.matmul %164, %154, %cst_49 {dimension_numbers = #tpu.dot_dimension_numbers<[1], [0], [0], [1], [0, 0, 1, 1], [], []>} : vector<8x8xbf16>, vector<8x8xbf16>, vector<8x8xf32> -> vector<8x8xf32>
    %166 = tpu.reciprocal %163 {approx = true} : vector<8x1xf32> -> vector<8x1xf32>
    %167 = vector.broadcast %166 : vector<8x1xf32> to vector<8x8xf32>
    %168 = arith.mulf %165, %167 : vector<8x8xf32>
    %169 = arith.truncf %168 : vector<8x8xf32> to vector<8x8xbf16>
    %170 = vector.extract_strided_slice %39 {offsets = [8, 0], sizes = [8, 32], strides = [1, 1]} : vector<32x32xbf16> to vector<8x32xbf16>
    %cst_50 = arith.constant dense<0.000000e+00> : vector<8x32xf32>
    %171 = tpu.matmul %169, %170, %cst_50 {dimension_numbers = #tpu.dot_dimension_numbers<[1], [0], [0], [1], [0, 0, 1, 1], [], []>} : vector<8x8xbf16>, vector<8x32xbf16>, vector<8x32xf32> -> vector<8x32xf32>
    %172 = arith.addf %151, %171 : vector<8x32xf32>
    %173 = vector.extract_strided_slice %32 {offsets = [8, 16], sizes = [8, 8], strides = [1, 1]} : vector<16x96xbf16> to vector<8x8xbf16>
    %174 = vector.extract_strided_slice %32 {offsets = [8, 48], sizes = [8, 8], strides = [1, 1]} : vector<16x96xbf16> to vector<8x8xbf16>
    %175 = vector.extract_strided_slice %32 {offsets = [8, 80], sizes = [8, 8], strides = [1, 1]} : vector<16x96xbf16> to vector<8x8xbf16>
    %cst_51 = arith.constant dense<0.000000e+00> : vector<8x8xf32>
    %176 = tpu.matmul %173, %174, %cst_51 {dimension_numbers = #tpu.dot_dimension_numbers<[1], [1], [0], [0], [0, 0, 1, 0], [], []>} : vector<8x8xbf16>, vector<8x8xbf16>, vector<8x8xf32> -> vector<8x8xf32>
    %177 = arith.addf %176, %38 : vector<8x8xf32>
    %cst_52 = arith.constant dense<0xFF800000> : vector<8xf32>
    %178 = vector.multi_reduction <maximumf>, %177, %cst_52 [1] : vector<8x8xf32> to vector<8xf32>
    %179 = vector.shape_cast %178 : vector<8xf32> to vector<8x1xf32>
    %180 = vector.broadcast %179 : vector<8x1xf32> to vector<8x8xf32>
    %181 = arith.subf %177, %180 : vector<8x8xf32>
    %182 = math.exp %181 : vector<8x8xf32>
    %cst_53 = arith.constant dense<0.000000e+00> : vector<8xf32>
    %183 = vector.multi_reduction <add>, %182, %cst_53 [1] : vector<8x8xf32> to vector<8xf32>
    %184 = vector.shape_cast %183 : vector<8xf32> to vector<8x1xf32>
    %185 = arith.truncf %182 : vector<8x8xf32> to vector<8x8xbf16>
    %cst_54 = arith.constant dense<0.000000e+00> : vector<8x8xf32>
    %186 = tpu.matmul %185, %175, %cst_54 {dimension_numbers = #tpu.dot_dimension_numbers<[1], [0], [0], [1], [0, 0, 1, 1], [], []>} : vector<8x8xbf16>, vector<8x8xbf16>, vector<8x8xf32> -> vector<8x8xf32>
    %187 = tpu.reciprocal %184 {approx = true} : vector<8x1xf32> -> vector<8x1xf32>
    %188 = vector.broadcast %187 : vector<8x1xf32> to vector<8x8xf32>
    %189 = arith.mulf %186, %188 : vector<8x8xf32>
    %190 = arith.truncf %189 : vector<8x8xf32> to vector<8x8xbf16>
    %191 = vector.extract_strided_slice %39 {offsets = [16, 0], sizes = [8, 32], strides = [1, 1]} : vector<32x32xbf16> to vector<8x32xbf16>
    %cst_55 = arith.constant dense<0.000000e+00> : vector<8x32xf32>
    %192 = tpu.matmul %190, %191, %cst_55 {dimension_numbers = #tpu.dot_dimension_numbers<[1], [0], [0], [1], [0, 0, 1, 1], [], []>} : vector<8x8xbf16>, vector<8x32xbf16>, vector<8x32xf32> -> vector<8x32xf32>
    %193 = arith.addf %172, %192 : vector<8x32xf32>
    %194 = vector.extract_strided_slice %32 {offsets = [8, 24], sizes = [8, 8], strides = [1, 1]} : vector<16x96xbf16> to vector<8x8xbf16>
    %195 = vector.extract_strided_slice %32 {offsets = [8, 56], sizes = [8, 8], strides = [1, 1]} : vector<16x96xbf16> to vector<8x8xbf16>
    %196 = vector.extract_strided_slice %32 {offsets = [8, 88], sizes = [8, 8], strides = [1, 1]} : vector<16x96xbf16> to vector<8x8xbf16>
    %cst_56 = arith.constant dense<0.000000e+00> : vector<8x8xf32>
    %197 = tpu.matmul %194, %195, %cst_56 {dimension_numbers = #tpu.dot_dimension_numbers<[1], [1], [0], [0], [0, 0, 1, 0], [], []>} : vector<8x8xbf16>, vector<8x8xbf16>, vector<8x8xf32> -> vector<8x8xf32>
    %198 = arith.addf %197, %38 : vector<8x8xf32>
    %cst_57 = arith.constant dense<0xFF800000> : vector<8xf32>
    %199 = vector.multi_reduction <maximumf>, %198, %cst_57 [1] : vector<8x8xf32> to vector<8xf32>
    %200 = vector.shape_cast %199 : vector<8xf32> to vector<8x1xf32>
    %201 = vector.broadcast %200 : vector<8x1xf32> to vector<8x8xf32>
    %202 = arith.subf %198, %201 : vector<8x8xf32>
    %203 = math.exp %202 : vector<8x8xf32>
    %cst_58 = arith.constant dense<0.000000e+00> : vector<8xf32>
    %204 = vector.multi_reduction <add>, %203, %cst_58 [1] : vector<8x8xf32> to vector<8xf32>
    %205 = vector.shape_cast %204 : vector<8xf32> to vector<8x1xf32>
    %206 = arith.truncf %203 : vector<8x8xf32> to vector<8x8xbf16>
    %cst_59 = arith.constant dense<0.000000e+00> : vector<8x8xf32>
    %207 = tpu.matmul %206, %196, %cst_59 {dimension_numbers = #tpu.dot_dimension_numbers<[1], [0], [0], [1], [0, 0, 1, 1], [], []>} : vector<8x8xbf16>, vector<8x8xbf16>, vector<8x8xf32> -> vector<8x8xf32>
    %208 = tpu.reciprocal %205 {approx = true} : vector<8x1xf32> -> vector<8x1xf32>
    %209 = vector.broadcast %208 : vector<8x1xf32> to vector<8x8xf32>
    %210 = arith.mulf %207, %209 : vector<8x8xf32>
    %211 = arith.truncf %210 : vector<8x8xf32> to vector<8x8xbf16>
    %212 = vector.extract_strided_slice %39 {offsets = [24, 0], sizes = [8, 32], strides = [1, 1]} : vector<32x32xbf16> to vector<8x32xbf16>
    %cst_60 = arith.constant dense<0.000000e+00> : vector<8x32xf32>
    %213 = tpu.matmul %211, %212, %cst_60 {dimension_numbers = #tpu.dot_dimension_numbers<[1], [0], [0], [1], [0, 0, 1, 1], [], []>} : vector<8x8xbf16>, vector<8x32xbf16>, vector<8x32xf32> -> vector<8x32xf32>
    %214 = arith.addf %193, %213 : vector<8x32xf32>
    %215 = tpu.concatenate %127, %214 in 0 : vector<8x32xf32>, vector<8x32xf32> -> vector<16x32xf32>
    %c0_61 = arith.constant 0 : index
    %c0_62 = arith.constant 0 : index
    %216 = vector.load %arg4[%c0_61, %c0_62] : memref<1x32xf32, #tpu.memory_space<vmem>>, vector<1x32xf32>
    %c0_63 = arith.constant 0 : index
    %c0_64 = arith.constant 0 : index
    %217 = vector.load %arg5[%c0_63, %c0_64] : memref<1x32xf32, #tpu.memory_space<vmem>>, vector<1x32xf32>
    %cst_65 = arith.constant dense<0.000000e+00> : vector<16xf32>
    %218 = vector.multi_reduction <add>, %215, %cst_65 [1] : vector<16x32xf32> to vector<16xf32>
    %219 = vector.shape_cast %218 : vector<16xf32> to vector<16x1xf32>
    %cst_66 = arith.constant 3.200000e+01 : f32
    %220 = vector.broadcast %cst_66 : f32 to vector<16x1xf32>
    %221 = arith.divf %219, %220 : vector<16x1xf32>
    %222 = vector.broadcast %221 : vector<16x1xf32> to vector<16x32xf32>
    %223 = arith.subf %215, %222 : vector<16x32xf32>
    %224 = arith.mulf %223, %223 : vector<16x32xf32>
    %cst_67 = arith.constant dense<0.000000e+00> : vector<16xf32>
    %225 = vector.multi_reduction <add>, %224, %cst_67 [1] : vector<16x32xf32> to vector<16xf32>
    %226 = vector.shape_cast %225 : vector<16xf32> to vector<16x1xf32>
    %cst_68 = arith.constant 3.200000e+01 : f32
    %227 = vector.broadcast %cst_68 : f32 to vector<16x1xf32>
    %228 = arith.divf %226, %227 : vector<16x1xf32>
    %229 = vector.broadcast %221 : vector<16x1xf32> to vector<16x32xf32>
    %230 = arith.subf %215, %229 : vector<16x32xf32>
    %cst_69 = arith.constant 9.99999974E-6 : f32
    %231 = vector.broadcast %cst_69 : f32 to vector<16x1xf32>
    %232 = arith.addf %228, %231 : vector<16x1xf32>
    %233 = math.rsqrt %232 : vector<16x1xf32>
    %234 = vector.broadcast %233 : vector<16x1xf32> to vector<16x32xf32>
    %235 = arith.mulf %230, %234 : vector<16x32xf32>
    %236 = vector.broadcast %216 : vector<1x32xf32> to vector<16x32xf32>
    %237 = arith.mulf %235, %236 : vector<16x32xf32>
    %238 = vector.broadcast %217 : vector<1x32xf32> to vector<16x32xf32>
    %239 = arith.addf %237, %238 : vector<16x32xf32>
    %240 = arith.truncf %239 : vector<16x32xf32> to vector<16x32xbf16>
    %c0_70 = arith.constant 0 : index
    %c0_71 = arith.constant 0 : index
    %241 = vector.load %arg10[%c0_70, %c0_71] : memref<32x128xbf16, #tpu.memory_space<vmem>>, vector<32x128xbf16>
    %cst_72 = arith.constant dense<0.000000e+00> : vector<16x128xf32>
    %242 = tpu.matmul %240, %241, %cst_72 {dimension_numbers = #tpu.dot_dimension_numbers<[1], [0], [0], [1], [0, 0, 1, 1], [], []>} : vector<16x32xbf16>, vector<32x128xbf16>, vector<16x128xf32> -> vector<16x128xf32>
    %c0_73 = arith.constant 0 : index
    %c0_74 = arith.constant 0 : index
    %243 = vector.load %arg11[%c0_73, %c0_74] : memref<1x128xf32, #tpu.memory_space<vmem>>, vector<1x128xf32>
    %244 = vector.broadcast %243 : vector<1x128xf32> to vector<16x128xf32>
    %245 = arith.addf %242, %244 : vector<16x128xf32>
    %cst_75 = arith.constant 1.702000e+00 : f32
    %246 = vector.broadcast %cst_75 : f32 to vector<16x128xf32>
    %247 = arith.mulf %246, %245 : vector<16x128xf32>
    %248 = arith.negf %247 : vector<16x128xf32>
    %249 = math.exp %248 : vector<16x128xf32>
    %cst_76 = arith.constant 1.000000e+00 : f32
    %250 = vector.broadcast %cst_76 : f32 to vector<16x128xf32>
    %251 = arith.addf %250, %249 : vector<16x128xf32>
    %252 = arith.divf %250, %251 : vector<16x128xf32>
    %253 = arith.mulf %245, %252 : vector<16x128xf32>
    %254 = arith.truncf %253 : vector<16x128xf32> to vector<16x128xbf16>
    %c0_77 = arith.constant 0 : index
    %c0_78 = arith.constant 0 : index
    %255 = vector.load %arg12[%c0_77, %c0_78] : memref<128x32xbf16, #tpu.memory_space<vmem>>, vector<128x32xbf16>
    %cst_79 = arith.constant dense<0.000000e+00> : vector<16x32xf32>
    %256 = tpu.matmul %254, %255, %cst_79 {dimension_numbers = #tpu.dot_dimension_numbers<[1], [0], [0], [1], [0, 0, 1, 1], [], []>} : vector<16x128xbf16>, vector<128x32xbf16>, vector<16x32xf32> -> vector<16x32xf32>
    %c0_80 = arith.constant 0 : index
    %c0_81 = arith.constant 0 : index
    %257 = vector.load %arg13[%c0_80, %c0_81] : memref<1x32xf32, #tpu.memory_space<vmem>>, vector<1x32xf32>
    %258 = vector.broadcast %257 : vector<1x32xf32> to vector<16x32xf32>
    %259 = arith.addf %256, %258 : vector<16x32xf32>
    %260 = arith.addf %215, %259 : vector<16x32xf32>
    %261 = vector.shape_cast %260 : vector<16x32xf32> to vector<2x8x32xf32>
    %c0_82 = arith.constant 0 : index
    %c0_83 = arith.constant 0 : index
    %c0_84 = arith.constant 0 : index
    %262 = vector.load %arg14[%c0_82, %c0_83, %c0_84] : memref<2x8x32xf32, #tpu.memory_space<vmem>>, vector<2x8x32xf32>
    tpu.vector_store %arg14[%c0_82, %c0_83, %c0_84], %261 {strides = array<i32>} : memref<2x8x32xf32, #tpu.memory_space<vmem>>, vector<2x8x32xf32>,
    return
  }
  func.func @transform_0(%arg0: i32) -> (i32, i32, i32) {
    %c0_i32 = arith.constant 0 : i32
    %c0_i32_0 = arith.constant 0 : i32
    %c0_i32_1 = arith.constant 0 : i32
    return %arg0, %c0_i32, %c0_i32_0 : i32, i32, i32
  }
  func.func @transform_1(%arg0: i32) -> (i32, i32) {
    %c0_i32 = arith.constant 0 : i32
    %c0_i32_0 = arith.constant 0 : i32
    %c0_i32_1 = arith.constant 0 : i32
    return %c0_i32, %c0_i32_0 : i32, i32
  }
  func.func @transform_2(%arg0: i32) -> (i32, i32) {
    %c0_i32 = arith.constant 0 : i32
    %c0_i32_0 = arith.constant 0 : i32
    %c0_i32_1 = arith.constant 0 : i32
    return %c0_i32, %c0_i32_0 : i32, i32
  }
  func.func @transform_3(%arg0: i32) -> (i32, i32) {
    %c0_i32 = arith.constant 0 : i32
    %c0_i32_0 = arith.constant 0 : i32
    %c0_i32_1 = arith.constant 0 : i32
    return %c0_i32, %c0_i32_0 : i32, i32
  }
  func.func @transform_4(%arg0: i32) -> (i32, i32) {
    %c0_i32 = arith.constant 0 : i32
    %c0_i32_0 = arith.constant 0 : i32
    %c0_i32_1 = arith.constant 0 : i32
    return %c0_i32, %c0_i32_0 : i32, i32
  }
  func.func @transform_5(%arg0: i32) -> (i32, i32) {
    %c0_i32 = arith.constant 0 : i32
    %c0_i32_0 = arith.constant 0 : i32
    %c0_i32_1 = arith.constant 0 : i32
    return %c0_i32, %c0_i32_0 : i32, i32
  }
  func.func @transform_6(%arg0: i32) -> (i32, i32) {
    %c0_i32 = arith.constant 0 : i32
    %c0_i32_0 = arith.constant 0 : i32
    %c0_i32_1 = arith.constant 0 : i32
    return %c0_i32, %c0_i32_0 : i32, i32
  }
  func.func @transform_7(%arg0: i32) -> (i32, i32) {
    %c0_i32 = arith.constant 0 : i32
    %c0_i32_0 = arith.constant 0 : i32
    %c0_i32_1 = arith.constant 0 : i32
    return %c0_i32, %c0_i32_0 : i32, i32
  }
  func.func @transform_8(%arg0: i32) -> (i32, i32) {
    %c0_i32 = arith.constant 0 : i32
    %c0_i32_0 = arith.constant 0 : i32
    %c0_i32_1 = arith.constant 0 : i32
    return %c0_i32, %c0_i32_0 : i32, i32
  }
  func.func @transform_9(%arg0: i32) -> (i32, i32) {
    %c0_i32 = arith.constant 0 : i32
    %c0_i32_0 = arith.constant 0 : i32
    %c0_i32_1 = arith.constant 0 : i32
    return %c0_i32, %c0_i32_0 : i32, i32
  }
  func.func @transform_10(%arg0: i32) -> (i32, i32) {
    %c0_i32 = arith.constant 0 : i32
    %c0_i32_0 = arith.constant 0 : i32
    %c0_i32_1 = arith.constant 0 : i32
    return %c0_i32, %c0_i32_0 : i32, i32
  }
  func.func @transform_11(%arg0: i32) -> (i32, i32) {
    %c0_i32 = arith.constant 0 : i32
    %c0_i32_0 = arith.constant 0 : i32
    %c0_i32_1 = arith.constant 0 : i32
    return %c0_i32, %c0_i32_0 : i32, i32
  }
  func.func @transform_12(%arg0: i32) -> (i32, i32) {
    %c0_i32 = arith.constant 0 : i32
    %c0_i32_0 = arith.constant 0 : i32
    %c0_i32_1 = arith.constant 0 : i32
    return %c0_i32, %c0_i32_0 : i32, i32
  }
  func.func @transform_13(%arg0: i32) -> (i32, i32, i32) {
    %c0_i32 = arith.constant 0 : i32
    %c0_i32_0 = arith.constant 0 : i32
    %c0_i32_1 = arith.constant 0 : i32
    return %arg0, %c0_i32, %c0_i32_0 : i32, i32, i32
  }
}

module attributes {stable_mosaic.version = 11 : i64} {
  func.func @clip_layer_kernel(%arg0: i32, %arg1: memref<2x8x32xf32, #tpu.memory_space<vmem>>, %arg2: memref<1x32xf32, #tpu.memory_space<vmem>>, %arg3: memref<1x32xf32, #tpu.memory_space<vmem>>, %arg4: memref<1x32xf32, #tpu.memory_space<vmem>>, %arg5: memref<1x32xf32, #tpu.memory_space<vmem>>, %arg6: memref<32x96xbf16, #tpu.memory_space<vmem>>, %arg7: memref<1x96xf32, #tpu.memory_space<vmem>>, %arg8: memref<32x32xbf16, #tpu.memory_space<vmem>>, %arg9: memref<1x32xf32, #tpu.memory_space<vmem>>, %arg10: memref<32x128xbf16, #tpu.memory_space<vmem>>, %arg11: memref<1x128xf32, #tpu.memory_space<vmem>>, %arg12: memref<128x32xbf16, #tpu.memory_space<vmem>>, %arg13: memref<1x32xf32, #tpu.memory_space<vmem>>, %arg14: memref<2x8x32xf32, #tpu.memory_space<vmem>>) attributes {dimension_semantics = [#tpu.dimension_semantics<parallel>], iteration_bounds = array<i64: 1>, scalar_prefetch = 0 : i64, scratch_operands = 0 : i64, tpu.core_type = #tpu.core_type<tc>, window_params = [{transform_indices = @transform_0, window_bounds = array<i64: 2, 8, 32>}, {pipeline_mode = #tpu.pipeline_mode<synchronous>, transform_indices = @transform_1, window_bounds = array<i64: 1, 32>}, {pipeline_mode = #tpu.pipeline_mode<synchronous>, transform_indices = @transform_2, window_bounds = array<i64: 1, 32>}, {pipeline_mode = #tpu.pipeline_mode<synchronous>, transform_indices = @transform_3, window_bounds = array<i64: 1, 32>}, {pipeline_mode = #tpu.pipeline_mode<synchronous>, transform_indices = @transform_4, window_bounds = array<i64: 1, 32>}, {pipeline_mode = #tpu.pipeline_mode<synchronous>, transform_indices = @transform_5, window_bounds = array<i64: 32, 96>}, {pipeline_mode = #tpu.pipeline_mode<synchronous>, transform_indices = @transform_6, window_bounds = array<i64: 1, 96>}, {pipeline_mode = #tpu.pipeline_mode<synchronous>, transform_indices = @transform_7, window_bounds = array<i64: 32, 32>}, {pipeline_mode = #tpu.pipeline_mode<synchronous>, transform_indices = @transform_8, window_bounds = array<i64: 1, 32>}, {pipeline_mode = #tpu.pipeline_mode<synchronous>, transform_indices = @transform_9, window_bounds = array<i64: 32, 128>}, {pipeline_mode = #tpu.pipeline_mode<synchronous>, transform_indices = @transform_10, window_bounds = array<i64: 1, 128>}, {pipeline_mode = #tpu.pipeline_mode<synchronous>, transform_indices = @transform_11, window_bounds = array<i64: 128, 32>}, {pipeline_mode = #tpu.pipeline_mode<synchronous>, transform_indices = @transform_12, window_bounds = array<i64: 1, 32>}, {transform_indices = @transform_13, window_bounds = array<i64: 2, 8, 32>}]} {
    %c0 = arith.constant 0 : index
    %c0_0 = arith.constant 0 : index
    %c0_1 = arith.constant 0 : index
    %0 = vector.load %arg1[%c0, %c0_0, %c0_1] : memref<2x8x32xf32, #tpu.memory_space<vmem>>, vector<2x8x32xf32>
    %1 = vector.shape_cast %0 : vector<2x8x32xf32> to vector<16x32xf32>
    %c0_2 = arith.constant 0 : index
    %c0_3 = arith.constant 0 : index
    %2 = vector.load %arg2[%c0_2, %c0_3] : memref<1x32xf32, #tpu.memory_space<vmem>>, vector<1x32xf32>
    %c0_4 = arith.constant 0 : index
    %c0_5 = arith.constant 0 : index
    %3 = vector.load %arg3[%c0_4, %c0_5] : memref<1x32xf32, #tpu.memory_space<vmem>>, vector<1x32xf32>
    %cst = arith.constant dense<0.000000e+00> : vector<16xf32>
    %4 = vector.multi_reduction <add>, %1, %cst [1] : vector<16x32xf32> to vector<16xf32>
    %5 = vector.shape_cast %4 : vector<16xf32> to vector<16x1xf32>
    %cst_6 = arith.constant 3.200000e+01 : f32
    %6 = vector.broadcast %cst_6 : f32 to vector<16x1xf32>
    %7 = arith.divf %5, %6 : vector<16x1xf32>
    %8 = vector.broadcast %7 : vector<16x1xf32> to vector<16x32xf32>
    %9 = arith.subf %1, %8 : vector<16x32xf32>
    %10 = arith.mulf %9, %9 : vector<16x32xf32>
    %cst_7 = arith.constant dense<0.000000e+00> : vector<16xf32>
    %11 = vector.multi_reduction <add>, %10, %cst_7 [1] : vector<16x32xf32> to vector<16xf32>
    %12 = vector.shape_cast %11 : vector<16xf32> to vector<16x1xf32>
    %cst_8 = arith.constant 3.200000e+01 : f32
    %13 = vector.broadcast %cst_8 : f32 to vector<16x1xf32>
    %14 = arith.divf %12, %13 : vector<16x1xf32>
    %15 = vector.broadcast %7 : vector<16x1xf32> to vector<16x32xf32>
    %16 = arith.subf %1, %15 : vector<16x32xf32>
    %cst_9 = arith.constant 9.99999974E-6 : f32
    %17 = vector.broadcast %cst_9 : f32 to vector<16x1xf32>
    %18 = arith.addf %14, %17 : vector<16x1xf32>
    %19 = math.rsqrt %18 : vector<16x1xf32>
    %20 = vector.broadcast %19 : vector<16x1xf32> to vector<16x32xf32>
    %21 = arith.mulf %16, %20 : vector<16x32xf32>
    %22 = vector.broadcast %2 : vector<1x32xf32> to vector<16x32xf32>
    %23 = arith.mulf %21, %22 : vector<16x32xf32>
    %24 = vector.broadcast %3 : vector<1x32xf32> to vector<16x32xf32>
    %25 = arith.addf %23, %24 : vector<16x32xf32>
    %26 = arith.truncf %25 : vector<16x32xf32> to vector<16x32xbf16>
    %c0_10 = arith.constant 0 : index
    %c0_11 = arith.constant 0 : index
    %27 = vector.load %arg6[%c0_10, %c0_11] : memref<32x96xbf16, #tpu.memory_space<vmem>>, vector<32x96xbf16>
    %cst_12 = arith.constant dense<0.000000e+00> : vector<16x96xf32>
    %28 = tpu.matmul %26, %27, %cst_12 {dimension_numbers = #tpu.dot_dimension_numbers<[1], [0], [0], [1], [0, 0, 1, 1], [], []>} : vector<16x32xbf16>, vector<32x96xbf16>, vector<16x96xf32> -> vector<16x96xf32>
    %c0_13 = arith.constant 0 : index
    %c0_14 = arith.constant 0 : index
    %29 = vector.load %arg7[%c0_13, %c0_14] : memref<1x96xf32, #tpu.memory_space<vmem>>, vector<1x96xf32>
    %30 = vector.broadcast %29 : vector<1x96xf32> to vector<16x96xf32>
    %31 = arith.addf %28, %30 : vector<16x96xf32>
    %32 = arith.truncf %31 : vector<16x96xf32> to vector<16x96xbf16>
    %33 = tpu.iota {dimensions = array<i32: 0>} : vector<8x8xi32>
    %34 = tpu.iota {dimensions = array<i32: 1>} : vector<8x8xi32>
    %35 = arith.cmpi sgt, %34, %33 : vector<8x8xi32>
    %cst_15 = arith.constant -1.000000e+30 : f32
    %cst_16 = arith.constant 0.000000e+00 : f32
    %36 = vector.broadcast %cst_15 : f32 to vector<8x8xf32>
    %37 = vector.broadcast %cst_16 : f32 to vector<8x8xf32>
    %38 = arith.select %35, %36, %37 : vector<8x8xi1>, vector<8x8xf32>
    %c0_17 = arith.constant 0 : index
    %c0_18 = arith.constant 0 : index
    %39 = vector.load %arg8[%c0_17, %c0_18] : memref<32x32xbf16, #tpu.memory_space<vmem>>, vector<32x32xbf16>
    %c0_19 = arith.constant 0 : index
    %c0_20 = arith.constant 0 : index
    %40 = vector.load %arg9[%c0_19, %c0_20] : memref<1x32xf32, #tpu.memory_space<vmem>>, vector<1x32xf32>
    %41 = vector.extract_strided_slice %1 {offsets = [0, 0], sizes = [8, 32], strides = [1, 1]} : vector<16x32xf32> to vector<8x32xf32>
    %42 = vector.broadcast %40 : vector<1x32xf32> to vector<8x32xf32>
    %43 = arith.addf %41, %42 : vector<8x32xf32>
    %44 = vector.extract_strided_slice %32 {offsets = [0, 0], sizes = [8, 8], strides = [1, 1]} : vector<16x96xbf16> to vector<8x8xbf16>
    %45 = vector.extract_strided_slice %32 {offsets = [0, 32], sizes = [8, 8], strides = [1, 1]} : vector<16x96xbf16> to vector<8x8xbf16>
    %46 = vector.extract_strided_slice %32 {offsets = [0, 64], sizes = [8, 8], strides = [1, 1]} : vector<16x96xbf16> to vector<8x8xbf16>
    %cst_21 = arith.constant dense<0.000000e+00> : vector<8x8xf32>
    %47 = tpu.matmul %44, %45, %cst_21 {dimension_numbers = #tpu.dot_dimension_numbers<[1], [1], [0], [0], [0, 0, 1, 0], [], []>} : vector<8x8xbf16>, vector<8x8xbf16>, vector<8x8xf32> -> vector<8x8xf32>
    %48 = arith.addf %47, %38 : vector<8x8xf32>
    %cst_22 = arith.constant dense<0xFF800000> : vector<8xf32>
    %49 = vector.multi_reduction <maximumf>, %48, %cst_22 [1] : vector<8x8xf32> to vector<8xf32>
    %50 = vector.shape_cast %49 : vector<8xf32> to vector<8x1xf32>
    %51 = vector.broadcast %50 : vector<8x1xf32> to vector<8x8xf32>
    %52 = arith.subf %48, %51 : vector<8x8xf32>
    %53 = math.exp %52 : vector<8x8xf32>
    %cst_23 = arith.constant dense<0.000000e+00> : vector<8xf32>
    %54 = vector.multi_reduction <add>, %53, %cst_23 [1] : vector<8x8xf32> to vector<8xf32>
    %55 = vector.shape_cast %54 : vector<8xf32> to vector<8x1xf32>
    %56 = arith.truncf %53 : vector<8x8xf32> to vector<8x8xbf16>
    %cst_24 = arith.constant dense<0.000000e+00> : vector<8x8xf32>
    %57 = tpu.matmul %56, %46, %cst_24 {dimension_numbers = #tpu.dot_dimension_numbers<[1], [0], [0], [1], [0, 0, 1, 1], [], []>} : vector<8x8xbf16>, vector<8x8xbf16>, vector<8x8xf32> -> vector<8x8xf32>
    %58 = tpu.reciprocal %55 {approx = true} : vector<8x1xf32> -> vector<8x1xf32>
    %59 = vector.broadcast %58 : vector<8x1xf32> to vector<8x8xf32>
    %60 = arith.mulf %57, %59 : vector<8x8xf32>
    %61 = arith.truncf %60 : vector<8x8xf32> to vector<8x8xbf16>
    %62 = vector.extract_strided_slice %39 {offsets = [0, 0], sizes = [8, 32], strides = [1, 1]} : vector<32x32xbf16> to vector<8x32xbf16>
    %cst_25 = arith.constant dense<0.000000e+00> : vector<8x32xf32>
    %63 = tpu.matmul %61, %62, %cst_25 {dimension_numbers = #tpu.dot_dimension_numbers<[1], [0], [0], [1], [0, 0, 1, 1], [], []>} : vector<8x8xbf16>, vector<8x32xbf16>, vector<8x32xf32> -> vector<8x32xf32>
    %64 = arith.addf %43, %63 : vector<8x32xf32>
    %65 = vector.extract_strided_slice %32 {offsets = [0, 8], sizes = [8, 8], strides = [1, 1]} : vector<16x96xbf16> to vector<8x8xbf16>
    %66 = vector.extract_strided_slice %32 {offsets = [0, 40], sizes = [8, 8], strides = [1, 1]} : vector<16x96xbf16> to vector<8x8xbf16>
    %67 = vector.extract_strided_slice %32 {offsets = [0, 72], sizes = [8, 8], strides = [1, 1]} : vector<16x96xbf16> to vector<8x8xbf16>
    %cst_26 = arith.constant dense<0.000000e+00> : vector<8x8xf32>
    %68 = tpu.matmul %65, %66, %cst_26 {dimension_numbers = #tpu.dot_dimension_numbers<[1], [1], [0], [0], [0, 0, 1, 0], [], []>} : vector<8x8xbf16>, vector<8x8xbf16>, vector<8x8xf32> -> vector<8x8xf32>
    %69 = arith.addf %68, %38 : vector<8x8xf32>
    %cst_27 = arith.constant dense<0xFF800000> : vector<8xf32>
    %70 = vector.multi_reduction <maximumf>, %69, %cst_27 [1] : vector<8x8xf32> to vector<8xf32>
    %71 = vector.shape_cast %70 : vector<8xf32> to vector<8x1xf32>
    %72 = vector.broadcast %71 : vector<8x1xf32> to vector<8x8xf32>
    %73 = arith.subf %69, %72 : vector<8x8xf32>
    %74 = math.exp %73 : vector<8x8xf32>
    %cst_28 = arith.constant dense<0.000000e+00> : vector<8xf32>
    %75 = vector.multi_reduction <add>, %74, %cst_28 [1] : vector<8x8xf32> to vector<8xf32>
    %76 = vector.shape_cast %75 : vector<8xf32> to vector<8x1xf32>
    %77 = arith.truncf %74 : vector<8x8xf32> to vector<8x8xbf16>
    %cst_29 = arith.constant dense<0.000000e+00> : vector<8x8xf32>
    %78 = tpu.matmul %77, %67, %cst_29 {dimension_numbers = #tpu.dot_dimension_numbers<[1], [0], [0], [1], [0, 0, 1, 1], [], []>} : vector<8x8xbf16>, vector<8x8xbf16>, vector<8x8xf32> -> vector<8x8xf32>
    %79 = tpu.reciprocal %76 {approx = true} : vector<8x1xf32> -> vector<8x1xf32>
    %80 = vector.broadcast %79 : vector<8x1xf32> to vector<8x8xf32>
    %81 = arith.mulf %78, %80 : vector<8x8xf32>
    %82 = arith.truncf %81 : vector<8x8xf32> to vector<8x8xbf16>
    %83 = vector.extract_strided_slice %39 {offsets = [8, 0], sizes = [8, 32], strides = [1, 1]} : vector<32x32xbf16> to vector<8x32xbf16>
    %cst_30 = arith.constant dense<0.000000e+00> : vector<8x32xf32>
    %84 = tpu.matmul %82, %83, %cst_30 {dimension_numbers = #tpu.dot_dimension_numbers<[1], [0], [0], [1], [0, 0, 1, 1], [], []>} : vector<8x8xbf16>, vector<8x32xbf16>, vector<8x32xf32> -> vector<8x32xf32>
    %85 = arith.addf %64, %84 : vector<8x32xf32>
    %86 = vector.extract_strided_slice %32 {offsets = [0, 16], sizes = [8, 8], strides = [1, 1]} : vector<16x96xbf16> to vector<8x8xbf16>
    %87 = vector.extract_strided_slice %32 {offsets = [0, 48], sizes = [8, 8], strides = [1, 1]} : vector<16x96xbf16> to vector<8x8xbf16>
    %88 = vector.extract_strided_slice %32 {offsets = [0, 80], sizes = [8, 8], strides = [1, 1]} : vector<16x96xbf16> to vector<8x8xbf16>
    %cst_31 = arith.constant dense<0.000000e+00> : vector<8x8xf32>
    %89 = tpu.matmul %86, %87, %cst_31 {dimension_numbers = #tpu.dot_dimension_numbers<[1], [1], [0], [0], [0, 0, 1, 0], [], []>} : vector<8x8xbf16>, vector<8x8xbf16>, vector<8x8xf32> -> vector<8x8xf32>
    %90 = arith.addf %89, %38 : vector<8x8xf32>
    %cst_32 = arith.constant dense<0xFF800000> : vector<8xf32>
    %91 = vector.multi_reduction <maximumf>, %90, %cst_32 [1] : vector<8x8xf32> to vector<8xf32>
    %92 = vector.shape_cast %91 : vector<8xf32> to vector<8x1xf32>
    %93 = vector.broadcast %92 : vector<8x1xf32> to vector<8x8xf32>
    %94 = arith.subf %90, %93 : vector<8x8xf32>
    %95 = math.exp %94 : vector<8x8xf32>
    %cst_33 = arith.constant dense<0.000000e+00> : vector<8xf32>
    %96 = vector.multi_reduction <add>, %95, %cst_33 [1] : vector<8x8xf32> to vector<8xf32>
    %97 = vector.shape_cast %96 : vector<8xf32> to vector<8x1xf32>
    %98 = arith.truncf %95 : vector<8x8xf32> to vector<8x8xbf16>
    %cst_34 = arith.constant dense<0.000000e+00> : vector<8x8xf32>
    %99 = tpu.matmul %98, %88, %cst_34 {dimension_numbers = #tpu.dot_dimension_numbers<[1], [0], [0], [1], [0, 0, 1, 1], [], []>} : vector<8x8xbf16>, vector<8x8xbf16>, vector<8x8xf32> -> vector<8x8xf32>
    %100 = tpu.reciprocal %97 {approx = true} : vector<8x1xf32> -> vector<8x1xf32>
    %101 = vector.broadcast %100 : vector<8x1xf32> to vector<8x8xf32>
    %102 = arith.mulf %99, %101 : vector<8x8xf32>
    %103 = arith.truncf %102 : vector<8x8xf32> to vector<8x8xbf16>
    %104 = vector.extract_strided_slice %39 {offsets = [16, 0], sizes = [8, 32], strides = [1, 1]} : vector<32x32xbf16> to vector<8x32xbf16>
    %cst_35 = arith.constant dense<0.000000e+00> : vector<8x32xf32>
    %105 = tpu.matmul %103, %104, %cst_35 {dimension_numbers = #tpu.dot_dimension_numbers<[1], [0], [0], [1], [0, 0, 1, 1], [], []>} : vector<8x8xbf16>, vector<8x32xbf16>, vector<8x32xf32> -> vector<8x32xf32>
    %106 = arith.addf %85, %105 : vector<8x32xf32>
    %107 = vector.extract_strided_slice %32 {offsets = [0, 24], sizes = [8, 8], strides = [1, 1]} : vector<16x96xbf16> to vector<8x8xbf16>
    %108 = vector.extract_strided_slice %32 {offsets = [0, 56], sizes = [8, 8], strides = [1, 1]} : vector<16x96xbf16> to vector<8x8xbf16>
    %109 = vector.extract_strided_slice %32 {offsets = [0, 88], sizes = [8, 8], strides = [1, 1]} : vector<16x96xbf16> to vector<8x8xbf16>
    %cst_36 = arith.constant dense<0.000000e+00> : vector<8x8xf32>
    %110 = tpu.matmul %107, %108, %cst_36 {dimension_numbers = #tpu.dot_dimension_numbers<[1], [1], [0], [0], [0, 0, 1, 0], [], []>} : vector<8x8xbf16>, vector<8x8xbf16>, vector<8x8xf32> -> vector<8x8xf32>
    %111 = arith.addf %110, %38 : vector<8x8xf32>
    %cst_37 = arith.constant dense<0xFF800000> : vector<8xf32>
    %112 = vector.multi_reduction <maximumf>, %111, %cst_37 [1] : vector<8x8xf32> to vector<8xf32>
    %113 = vector.shape_cast %112 : vector<8xf32> to vector<8x1xf32>
    %114 = vector.broadcast %113 : vector<8x1xf32> to vector<8x8xf32>
    %115 = arith.subf %111, %114 : vector<8x8xf32>
    %116 = math.exp %115 : vector<8x8xf32>
    %cst_38 = arith.constant dense<0.000000e+00> : vector<8xf32>
    %117 = vector.multi_reduction <add>, %116, %cst_38 [1] : vector<8x8xf32> to vector<8xf32>
    %118 = vector.shape_cast %117 : vector<8xf32> to vector<8x1xf32>
    %119 = arith.truncf %116 : vector<8x8xf32> to vector<8x8xbf16>
    %cst_39 = arith.constant dense<0.000000e+00> : vector<8x8xf32>
    %120 = tpu.matmul %119, %109, %cst_39 {dimension_numbers = #tpu.dot_dimension_numbers<[1], [0], [0], [1], [0, 0, 1, 1], [], []>} : vector<8x8xbf16>, vector<8x8xbf16>, vector<8x8xf32> -> vector<8x8xf32>
    %121 = tpu.reciprocal %118 {approx = true} : vector<8x1xf32> -> vector<8x1xf32>
    %122 = vector.broadcast %121 : vector<8x1xf32> to vector<8x8xf32>
    %123 = arith.mulf %120, %122 : vector<8x8xf32>
    %124 = arith.truncf %123 : vector<8x8xf32> to vector<8x8xbf16>
    %125 = vector.extract_strided_slice %39 {offsets = [24, 0], sizes = [8, 32], strides = [1, 1]} : vector<32x32xbf16> to vector<8x32xbf16>
    %cst_40 = arith.constant dense<0.000000e+00> : vector<8x32xf32>
    %126 = tpu.matmul %124, %125, %cst_40 {dimension_numbers = #tpu.dot_dimension_numbers<[1], [0], [0], [1], [0, 0, 1, 1], [], []>} : vector<8x8xbf16>, vector<8x32xbf16>, vector<8x32xf32> -> vector<8x32xf32>
    %127 = arith.addf %106, %126 : vector<8x32xf32>
    %128 = vector.extract_strided_slice %1 {offsets = [8, 0], sizes = [8, 32], strides = [1, 1]} : vector<16x32xf32> to vector<8x32xf32>
    %129 = vector.broadcast %40 : vector<1x32xf32> to vector<8x32xf32>
    %130 = arith.addf %128, %129 : vector<8x32xf32>
    %131 = vector.extract_strided_slice %32 {offsets = [8, 0], sizes = [8, 8], strides = [1, 1]} : vector<16x96xbf16> to vector<8x8xbf16>
    %132 = vector.extract_strided_slice %32 {offsets = [8, 32], sizes = [8, 8], strides = [1, 1]} : vector<16x96xbf16> to vector<8x8xbf16>
    %133 = vector.extract_strided_slice %32 {offsets = [8, 64], sizes = [8, 8], strides = [1, 1]} : vector<16x96xbf16> to vector<8x8xbf16>
    %cst_41 = arith.constant dense<0.000000e+00> : vector<8x8xf32>
    %134 = tpu.matmul %131, %132, %cst_41 {dimension_numbers = #tpu.dot_dimension_numbers<[1], [1], [0], [0], [0, 0, 1, 0], [], []>} : vector<8x8xbf16>, vector<8x8xbf16>, vector<8x8xf32> -> vector<8x8xf32>
    %135 = arith.addf %134, %38 : vector<8x8xf32>
    %cst_42 = arith.constant dense<0xFF800000> : vector<8xf32>
    %136 = vector.multi_reduction <maximumf>, %135, %cst_42 [1] : vector<8x8xf32> to vector<8xf32>
    %137 = vector.shape_cast %136 : vector<8xf32> to vector<8x1xf32>
    %138 = vector.broadcast %137 : vector<8x1xf32> to vector<8x8xf32>
    %139 = arith.subf %135, %138 : vector<8x8xf32>
    %140 = math.exp %139 : vector<8x8xf32>
    %cst_43 = arith.constant dense<0.000000e+00> : vector<8xf32>
    %141 = vector.multi_reduction <add>, %140, %cst_43 [1] : vector<8x8xf32> to vector<8xf32>
    %142 = vector.shape_cast %141 : vector<8xf32> to vector<8x1xf32>
    %143 = arith.truncf %140 : vector<8x8xf32> to vector<8x8xbf16>
    %cst_44 = arith.constant dense<0.000000e+00> : vector<8x8xf32>
    %144 = tpu.matmul %143, %133, %cst_44 {dimension_numbers = #tpu.dot_dimension_numbers<[1], [0], [0], [1], [0, 0, 1, 1], [], []>} : vector<8x8xbf16>, vector<8x8xbf16>, vector<8x8xf32> -> vector<8x8xf32>
    %145 = tpu.reciprocal %142 {approx = true} : vector<8x1xf32> -> vector<8x1xf32>
    %146 = vector.broadcast %145 : vector<8x1xf32> to vector<8x8xf32>
    %147 = arith.mulf %144, %146 : vector<8x8xf32>
    %148 = arith.truncf %147 : vector<8x8xf32> to vector<8x8xbf16>
    %149 = vector.extract_strided_slice %39 {offsets = [0, 0], sizes = [8, 32], strides = [1, 1]} : vector<32x32xbf16> to vector<8x32xbf16>
    %cst_45 = arith.constant dense<0.000000e+00> : vector<8x32xf32>
    %150 = tpu.matmul %148, %149, %cst_45 {dimension_numbers = #tpu.dot_dimension_numbers<[1], [0], [0], [1], [0, 0, 1, 1], [], []>} : vector<8x8xbf16>, vector<8x32xbf16>, vector<8x32xf32> -> vector<8x32xf32>
    %151 = arith.addf %130, %150 : vector<8x32xf32>
    %152 = vector.extract_strided_slice %32 {offsets = [8, 8], sizes = [8, 8], strides = [1, 1]} : vector<16x96xbf16> to vector<8x8xbf16>
    %153 = vector.extract_strided_slice %32 {offsets = [8, 40], sizes = [8, 8], strides = [1, 1]} : vector<16x96xbf16> to vector<8x8xbf16>
    %154 = vector.extract_strided_slice %32 {offsets = [8, 72], sizes = [8, 8], strides = [1, 1]} : vector<16x96xbf16> to vector<8x8xbf16>
    %cst_46 = arith.constant dense<0.000000e+00> : vector<8x8xf32>
    %155 = tpu.matmul %152, %153, %cst_46 {dimension_numbers = #tpu.dot_dimension_numbers<[1], [1], [0], [0], [0, 0, 1, 0], [], []>} : vector<8x8xbf16>, vector<8x8xbf16>, vector<8x8xf32> -> vector<8x8xf32>
    %156 = arith.addf %155, %38 : vector<8x8xf32>
    %cst_47 = arith.constant dense<0xFF800000> : vector<8xf32>
    %157 = vector.multi_reduction <maximumf>, %156, %cst_47 [1] : vector<8x8xf32> to vector<8xf32>
    %158 = vector.shape_cast %157 : vector<8xf32> to vector<8x1xf32>
    %159 = vector.broadcast %158 : vector<8x1xf32> to vector<8x8xf32>
    %160 = arith.subf %156, %159 : vector<8x8xf32>
    %161 = math.exp %160 : vector<8x8xf32>
    %cst_48 = arith.constant dense<0.000000e+00> : vector<8xf32>
    %162 = vector.multi_reduction <add>, %161, %cst_48 [1] : vector<8x8xf32> to vector<8xf32>
    %163 = vector.shape_cast %162 : vector<8xf32> to vector<8x1xf32>
    %164 = arith.truncf %161 : vector<8x8xf32> to vector<8x8xbf16>
    %cst_49 = arith.constant dense<0.000000e+00> : vector<8x8xf32>
    %165 = tpu.matmul %164, %154, %cst_49 {dimension_numbers = #tpu.dot_dimension_numbers<[1], [0], [0], [1], [0, 0, 1, 1], [], []>} : vector<8x8xbf16>, vector<8x8xbf16>, vector<8x8xf32> -> vector<8x8xf32>
    %166 = tpu.reciprocal %163 {approx = true} : vector<8x1xf32> -> vector<8x1xf32>
    %167 = vector.broadcast %166 : vector<8x1xf32> to vector<8x8xf32>
    %168 = arith.mulf %165, %167 : vector<8x8xf32>
    %169 = arith.truncf %168 : vector<8x8xf32> to vector<8x8xbf16>
    %170 = vector.extract_strided_slice %39 {offsets = [8, 0], sizes = [8, 32], strides = [1, 1]} : vector<32x32xbf16> to vector<8x32xbf16>
    %cst_50 = arith.constant dense<0.000000e+00> : vector<8x32xf32>
    %171 = tpu.matmul %169, %170, %cst_50 {dimension_numbers = #tpu.dot_dimension_numbers<[1], [0], [0], [1], [0, 0, 1, 1], [], []>} : vector<8x8xbf16>, vector<8x32xbf16>, vector<8x32xf32> -> vector<8x32xf32>
    %172 = arith.addf %151, %171 : vector<8x32xf32>
    %173 = vector.extract_strided_slice %32 {offsets = [8, 16], sizes = [8, 8], strides = [1, 1]} : vector<16x96xbf16> to vector<8x8xbf16>
    %174 = vector.extract_strided_slice %32 {offsets = [8, 48], sizes = [8, 8], strides = [1, 1]} : vector<16x96xbf16> to vector<8x8xbf16>
    %175 = vector.extract_strided_slice %32 {offsets = [8, 80], sizes = [8, 8], strides = [1, 1]} : vector<16x96xbf16> to vector<8x8xbf16>
    %cst_51 = arith.constant dense<0.000000e+00> : vector<8x8xf32>
    %176 = tpu.matmul %173, %174, %cst_51 {dimension_numbers = #tpu.dot_dimension_numbers<[1], [1], [0], [0], [0, 0, 1, 0], [], []>} : vector<8x8xbf16>, vector<8x8xbf16>, vector<8x8xf32> -> vector<8x8xf32>
    %177 = arith.addf %176, %38 : vector<8x8xf32>
    %cst_52 = arith.constant dense<0xFF800000> : vector<8xf32>
    %178 = vector.multi_reduction <maximumf>, %177, %cst_52 [1] : vector<8x8xf32> to vector<8xf32>
    %179 = vector.shape_cast %178 : vector<8xf32> to vector<8x1xf32>
    %180 = vector.broadcast %179 : vector<8x1xf32> to vector<8x8xf32>
    %181 = arith.subf %177, %180 : vector<8x8xf32>
    %182 = math.exp %181 : vector<8x8xf32>
    %cst_53 = arith.constant dense<0.000000e+00> : vector<8xf32>
    %183 = vector.multi_reduction <add>, %182, %cst_53 [1] : vector<8x8xf32> to vector<8xf32>
    %184 = vector.shape_cast %183 : vector<8xf32> to vector<8x1xf32>
    %185 = arith.truncf %182 : vector<8x8xf32> to vector<8x8xbf16>
    %cst_54 = arith.constant dense<0.000000e+00> : vector<8x8xf32>
    %186 = tpu.matmul %185, %175, %cst_54 {dimension_numbers = #tpu.dot_dimension_numbers<[1], [0], [0], [1], [0, 0, 1, 1], [], []>} : vector<8x8xbf16>, vector<8x8xbf16>, vector<8x8xf32> -> vector<8x8xf32>
    %187 = tpu.reciprocal %184 {approx = true} : vector<8x1xf32> -> vector<8x1xf32>
    %188 = vector.broadcast %187 : vector<8x1xf32> to vector<8x8xf32>
    %189 = arith.mulf %186, %188 : vector<8x8xf32>
    %190 = arith.truncf %189 : vector<8x8xf32> to vector<8x8xbf16>
    %191 = vector.extract_strided_slice %39 {offsets = [16, 0], sizes = [8, 32], strides = [1, 1]} : vector<32x32xbf16> to vector<8x32xbf16>
    %cst_55 = arith.constant dense<0.000000e+00> : vector<8x32xf32>
    %192 = tpu.matmul %190, %191, %cst_55 {dimension_numbers = #tpu.dot_dimension_numbers<[1], [0], [0], [1], [0, 0, 1, 1], [], []>} : vector<8x8xbf16>, vector<8x32xbf16>, vector<8x32xf32> -> vector<8x32xf32>
    %193 = arith.addf %172, %192 : vector<8x32xf32>
    %194 = vector.extract_strided_slice %32 {offsets = [8, 24], sizes = [8, 8], strides = [1, 1]} : vector<16x96xbf16> to vector<8x8xbf16>
    %195 = vector.extract_strided_slice %32 {offsets = [8, 56], sizes = [8, 8], strides = [1, 1]} : vector<16x96xbf16> to vector<8x8xbf16>
    %196 = vector.extract_strided_slice %32 {offsets = [8, 88], sizes = [8, 8], strides = [1, 1]} : vector<16x96xbf16> to vector<8x8xbf16>
    %cst_56 = arith.constant dense<0.000000e+00> : vector<8x8xf32>
    %197 = tpu.matmul %194, %195, %cst_56 {dimension_numbers = #tpu.dot_dimension_numbers<[1], [1], [0], [0], [0, 0, 1, 0], [], []>} : vector<8x8xbf16>, vector<8x8xbf16>, vector<8x8xf32> -> vector<8x8xf32>
    %198 = arith.addf %197, %38 : vector<8x8xf32>
    %cst_57 = arith.constant dense<0xFF800000> : vector<8xf32>
    %199 = vector.multi_reduction <maximumf>, %198, %cst_57 [1] : vector<8x8xf32> to vector<8xf32>
    %200 = vector.shape_cast %199 : vector<8xf32> to vector<8x1xf32>
    %201 = vector.broadcast %200 : vector<8x1xf32> to vector<8x8xf32>
    %202 = arith.subf %198, %201 : vector<8x8xf32>
    %203 = math.exp %202 : vector<8x8xf32>
    %cst_58 = arith.constant dense<0.000000e+00> : vector<8xf32>
    %204 = vector.multi_reduction <add>, %203, %cst_58 [1] : vector<8x8xf32> to vector<8xf32>
    %205 = vector.shape_cast %204 : vector<8xf32> to vector<8x1xf32>
    %206 = arith.truncf %203 : vector<8x8xf32> to vector<8x8xbf16>
    %cst_59 = arith.constant dense<0.000000e+00> : vector<8x8xf32>
    %207 = tpu.matmul %206, %196, %cst_59 {dimension_numbers = #tpu.dot_dimension_numbers<[1], [0], [0], [1], [0, 0, 1, 1], [], []>} : vector<8x8xbf16>, vector<8x8xbf16>, vector<8x8xf32> -> vector<8x8xf32>
    %208 = tpu.reciprocal %205 {approx = true} : vector<8x1xf32> -> vector<8x1xf32>
    %209 = vector.broadcast %208 : vector<8x1xf32> to vector<8x8xf32>
    %210 = arith.mulf %207, %209 : vector<8x8xf32>
    %211 = arith.truncf %210 : vector<8x8xf32> to vector<8x8xbf16>
    %212 = vector.extract_strided_slice %39 {offsets = [24, 0], sizes = [8, 32], strides = [1, 1]} : vector<32x32xbf16> to vector<8x32xbf16>
    %cst_60 = arith.constant dense<0.000000e+00> : vector<8x32xf32>
    %213 = tpu.matmul %211, %212, %cst_60 {dimension_numbers = #tpu.dot_dimension_numbers<[1], [0], [0], [1], [0, 0, 1, 1], [], []>} : vector<8x8xbf16>, vector<8x32xbf16>, vector<8x32xf32> -> vector<8x32xf32>
    %214 = arith.addf %193, %213 : vector<8x32xf32>
    %215 = tpu.concatenate %127, %214 in 0 : vector<8x32xf32>, vector<8x32xf32> -> vector<16x32xf32>
    %c0_61 = arith.constant 0 : index
    %c0_62 = arith.constant 0 : index
    %216 = vector.load %arg4[%c0_61, %c0_62] : memref<1x32xf32, #tpu.memory_space<vmem>>, vector<1x32xf32>
    %c0_63 = arith.constant 0 : index
    %c0_64 = arith.constant 0 : index
    %217 = vector.load %arg5[%c0_63, %c0_64] : memref<1x32xf32, #tpu.memory_space<vmem>>, vector<1x32xf32>
    %cst_65 = arith.constant dense<0.000000e+00> : vector<16xf32>
    %218 = vector.multi_reduction <add>, %215, %cst_65 [1] : vector<16x32xf32> to vector<16xf32>
    %219 = vector.shape_cast %218 : vector<16xf32> to vector<16x1xf32>
    %cst_66 = arith.constant 3.200000e+01 : f32
    %220 = vector.broadcast %cst_66 : f32 to vector<16x1xf32>
    %221 = arith.divf %219, %220 : vector<16x1xf32>
    %222 = vector.broadcast %221 : vector<16x1xf32> to vector<16x32xf32>
    %223 = arith.subf %215, %222 : vector<16x32xf32>
    %224 = arith.mulf %223, %223 : vector<16x32xf32>
    %cst_67 = arith.constant dense<0.000000e+00> : vector<16xf32>
    %225 = vector.multi_reduction <add>, %224, %cst_67 [1] : vector<16x32xf32> to vector<16xf32>
    %226 = vector.shape_cast %225 : vector<16xf32> to vector<16x1xf32>
    %cst_68 = arith.constant 3.200000e+01 : f32
    %227 = vector.broadcast %cst_68 : f32 to vector<16x1xf32>
    %228 = arith.divf %226, %227 : vector<16x1xf32>
    %229 = vector.broadcast %221 : vector<16x1xf32> to vector<16x32xf32>
    %230 = arith.subf %215, %229 : vector<16x32xf32>
    %cst_69 = arith.constant 9.99999974E-6 : f32
    %231 = vector.broadcast %cst_69 : f32 to vector<16x1xf32>
    %232 = arith.addf %228, %231 : vector<16x1xf32>
    %233 = math.rsqrt %232 : vector<16x1xf32>
    %234 = vector.broadcast %233 : vector<16x1xf32> to vector<16x32xf32>
    %235 = arith.mulf %230, %234 : vector<16x32xf32>
    %236 = vector.broadcast %216 : vector<1x32xf32> to vector<16x32xf32>
    %237 = arith.mulf %235, %236 : vector<16x32xf32>
    %238 = vector.broadcast %217 : vector<1x32xf32> to vector<16x32xf32>
    %239 = arith.addf %237, %238 : vector<16x32xf32>
    %240 = arith.truncf %239 : vector<16x32xf32> to vector<16x32xbf16>
    %c0_70 = arith.constant 0 : index
    %c0_71 = arith.constant 0 : index
    %241 = vector.load %arg10[%c0_70, %c0_71] : memref<32x128xbf16, #tpu.memory_space<vmem>>, vector<32x128xbf16>
    %cst_72 = arith.constant dense<0.000000e+00> : vector<16x128xf32>
    %242 = tpu.matmul %240, %241, %cst_72 {dimension_numbers = #tpu.dot_dimension_numbers<[1], [0], [0], [1], [0, 0, 1, 1], [], []>} : vector<16x32xbf16>, vector<32x128xbf16>, vector<16x128xf32> -> vector<16x128xf32>
    %c0_73 = arith.constant 0 : index
    %c0_74 = arith.constant 0 : index
    %243 = vector.load %arg11[%c0_73, %c0_74] : memref<1x128xf32, #tpu.memory_space<vmem>>, vector<1x128xf32>
    %244 = vector.broadcast %243 : vector<1x128xf32> to vector<16x128xf32>
    %245 = arith.addf %242, %244 : vector<16x128xf32>
    %cst_75 = arith.constant 1.702000e+00 : f32
    %246 = vector.broadcast %cst_75 : f32 to vector<16x128xf32>
    %247 = arith.mulf %246, %245 : vector<16x128xf32>
    %248 = arith.negf %247 : vector<16x128xf32>
    %249 = math.exp %248 : vector<16x128xf32>
    %cst_76 = arith.constant 1.000000e+00 : f32
    %250 = vector.broadcast %cst_76 : f32 to vector<16x128xf32>
    %251 = arith.addf %250, %249 : vector<16x128xf32>
    %252 = arith.divf %250, %251 : vector<16x128xf32>
    %253 = arith.mulf %245, %252 : vector<16x128xf32>
    %254 = arith.truncf %253 : vector<16x128xf32> to vector<16x128xbf16>
    %c0_77 = arith.constant 0 : index
    %c0_78 = arith.constant 0 : index
    %255 = vector.load %arg12[%c0_77, %c0_78] : memref<128x32xbf16, #tpu.memory_space<vmem>>, vector<128x32xbf16>
    %cst_79 = arith.constant dense<0.000000e+00> : vector<16x32xf32>
    %256 = tpu.matmul %254, %255, %cst_79 {dimension_numbers = #tpu.dot_dimension_numbers<[1], [0], [0], [1], [0, 0, 1, 1], [], []>} : vector<16x128xbf16>, vector<128x32xbf16>, vector<16x32xf32> -> vector<16x32xf32>
    %c0_80 = arith.constant 0 : index
    %c0_81 = arith.constant 0 : index
    %257 = vector.load %arg13[%c0_80, %c0_81] : memref<1x32xf32, #tpu.memory_space<vmem>>, vector<1x32xf32>
    %258 = vector.broadcast %257 : vector<1x32xf32> to vector<16x32xf32>
    %259 = arith.addf %256, %258 : vector<16x32xf32>
    %260 = arith.addf %215, %259 : vector<16x32xf32>
    %261 = vector.shape_cast %260 : vector<16x32xf32> to vector<2x8x32xf32>
    %c0_82 = arith.constant 0 : index
    %c0_83 = arith.constant 0 : index
    %c0_84 = arith.constant 0 : index
    %262 = vector.load %arg14[%c0_82, %c0_83, %c0_84] : memref<2x8x32xf32, #tpu.memory_space<vmem>>, vector<2x8x32xf32>
    tpu.vector_store %arg14[%c0_82, %c0_83, %c0_84], %261 {strides = array<i32>} : memref<2x8x32xf32, #tpu.memory_space<vmem>>, vector<2x8x32xf32>,
    return
  }
  func.func @transform_0(%arg0: i32) -> (i32, i32, i32) {
    %c0_i32 = arith.constant 0 : i32
    %c0_i32_0 = arith.constant 0 : i32
    %c0_i32_1 = arith.constant 0 : i32
    return %arg0, %c0_i32, %c0_i32_0 : i32, i32, i32
  }
  func.func @transform_1(%arg0: i32) -> (i32, i32) {
    %c0_i32 = arith.constant 0 : i32
    %c0_i32_0 = arith.constant 0 : i32
    %c0_i32_1 = arith.constant 0 : i32
    return %c0_i32, %c0_i32_0 : i32, i32
  }
  func.func @transform_2(%arg0: i32) -> (i32, i32) {
    %c0_i32 = arith.constant 0 : i32
    %c0_i32_0 = arith.constant 0 : i32
    %c0_i32_1 = arith.constant 0 : i32
    return %c0_i32, %c0_i32_0 : i32, i32
  }
  func.func @transform_3(%arg0: i32) -> (i32, i32) {
    %c0_i32 = arith.constant 0 : i32
    %c0_i32_0 = arith.constant 0 : i32
    %c0_i32_1 = arith.constant 0 : i32
    return %c0_i32, %c0_i32_0 : i32, i32
  }
  func.func @transform_4(%arg0: i32) -> (i32, i32) {
    %c0_i32 = arith.constant 0 : i32
    %c0_i32_0 = arith.constant 0 : i32
    %c0_i32_1 = arith.constant 0 : i32
    return %c0_i32, %c0_i32_0 : i32, i32
  }
  func.func @transform_5(%arg0: i32) -> (i32, i32) {
    %c0_i32 = arith.constant 0 : i32
    %c0_i32_0 = arith.constant 0 : i32
    %c0_i32_1 = arith.constant 0 : i32
    return %c0_i32, %c0_i32_0 : i32, i32
  }
  func.func @transform_6(%arg0: i32) -> (i32, i32) {
    %c0_i32 = arith.constant 0 : i32
    %c0_i32_0 = arith.constant 0 : i32
    %c0_i32_1 = arith.constant 0 : i32
    return %c0_i32, %c0_i32_0 : i32, i32
  }
  func.func @transform_7(%arg0: i32) -> (i32, i32) {
    %c0_i32 = arith.constant 0 : i32
    %c0_i32_0 = arith.constant 0 : i32
    %c0_i32_1 = arith.constant 0 : i32
    return %c0_i32, %c0_i32_0 : i32, i32
  }
  func.func @transform_8(%arg0: i32) -> (i32, i32) {
    %c0_i32 = arith.constant 0 : i32
    %c0_i32_0 = arith.constant 0 : i32
    %c0_i32_1 = arith.constant 0 : i32
    return %c0_i32, %c0_i32_0 : i32, i32
  }
  func.func @transform_9(%arg0: i32) -> (i32, i32) {
    %c0_i32 = arith.constant 0 : i32
    %c0_i32_0 = arith.constant 0 : i32
    %c0_i32_1 = arith.constant 0 : i32
    return %c0_i32, %c0_i32_0 : i32, i32
  }
  func.func @transform_10(%arg0: i32) -> (i32, i32) {
    %c0_i32 = arith.constant 0 : i32
    %c0_i32_0 = arith.constant 0 : i32
    %c0_i32_1 = arith.constant 0 : i32
    return %c0_i32, %c0_i32_0 : i32, i32
  }
  func.func @transform_11(%arg0: i32) -> (i32, i32) {
    %c0_i32 = arith.constant 0 : i32
    %c0_i32_0 = arith.constant 0 : i32
    %c0_i32_1 = arith.constant 0 : i32
    return %c0_i32, %c0_i32_0 : i32, i32
  }
  func.func @transform_12(%arg0: i32) -> (i32, i32) {
    %c0_i32 = arith.constant 0 : i32
    %c0_i32_0 = arith.constant 0 : i32
    %c0_i32_1 = arith.constant 0 : i32
    return %c0_i32, %c0_i32_0 : i32, i32
  }
  func.func @transform_13(%arg0: i32) -> (i32, i32, i32) {
    %c0_i32 = arith.constant 0 : i32
    %c0_i32_0 = arith.constant 0 : i32
    %c0_i32_1 = arith.constant 0 : i32
    return %arg0, %c0_i32, %c0_i32_0 : i32, i32, i32
  }
}

</mosaic_0001>

<bundles_post_ra>
// kernel: tpu_custom_call.1
= control target key start
LH: loop header
LB: loop body
LE: loop exit
PB: predicated region body
PF: predicated region fallthrough
CT: control target
= control target key end

     0   :  { %vm50_vm0 = vcmask 261120   ;;  %s2558_s0 = inlined_call_operand.vmem [shape: f32[2,8,32], index: 0, kind: input, shape index: {}]   ;;  %s2559_s1 = inlined_call_operand.vmem [shape: f32[1,32], index: 1, kind: input, shape index: {}]   ;;  %s2560_s2 = inlined_call_operand.vmem [shape: f32[1,32], index: 2, kind: input, shape index: {}]   ;;  %s2561_s3 = inlined_call_operand.vmem [shape: f32[1,32], index: 3, kind: input, shape index: {}]   ;;  %s2562_s4 = inlined_call_operand.vmem [shape: f32[1,32], index: 4, kind: input, shape index: {}]   ;;  %s2563_s5 = inlined_call_operand.vmem [shape: bf16[32,96], index: 5, kind: input, shape index: {}]   ;;  %s2564_s6 = inlined_call_operand.vmem [shape: f32[1,96], index: 6, kind: input, shape index: {}]   ;;  %s2565_s7 = inlined_call_operand.vmem [shape: bf16[32,32], index: 7, kind: input, shape index: {}]   ;;  %s2566_s8 = inlined_call_operand.vmem [shape: f32[1,32], index: 8, kind: input, shape index: {}]   ;;  %s2567_s9 = inlined_call_operand.vmem [shape: bf16[32,128], index: 9, kind: input, shape index: {}]   ;;  %s2568_s10 = inlined_call_operand.vmem [shape: f32[1,128], index: 10, kind: input, shape index: {}]   ;;  %s2569_s11 = inlined_call_operand.vmem [shape: bf16[128,32], index: 11, kind: input, shape index: {}]   ;;  %s2570_s12 = inlined_call_operand.vmem [shape: f32[1,32], index: 12, kind: input, shape index: {}]   ;;  %s2571_s13 = inlined_call_operand.hbm [shape: f32[2,8,32], index: 13, kind: output, shape index: {}]  }
   0x1   :  { %v2201_v0 = vld [vmem:[%s2558_s0] sm:$0xff]  ;;  %v2206_v1 = vld [vmem:[%s2558_s0 + $0x8] sm:$0xff] }
   0x2   :  { %v51_v2 = vsel %vm50_vm0, %v2201_v0, 0.0  ;;  %v54_v3 = vsel %vm50_vm0, %v2206_v1, 0.0 }
   0x3   :  { %52 = vadd.xlane.f32.xlu0 %v51_v2 }
   0x7   :  { %55 = vadd.xlane.f32.xlu0 %v54_v3 }
   0x8   :  { %18 = vsyncpa [#allocation3], 0  ;;  %v2028_v14 = vld [vmem:[%s2563_s5] sm:$0xff]   ;;  %v2112_v15 = vmov 0.0   ;;  %v2029_v16 = vld [vmem:[%s2563_s5 + $0x8] sm:$0xff]   ;;  %vm2113_vm1 = vmmov 0   ;;  %v163_v52 = vlaneseq }
   0x9   :  { %1806 = vmatprep.subr.bf16.mxu1 %v2112_v15  ;;  %1832 = vmatprep.subr.bf16.mxu0 %v2112_v15  ;;  %v1695_v25 = vld [vmem:[%s2559_s1] ss:$0 sm:$0xff]  ;;  %s2114_s1 = smov 120   ;;  %s2116_s20 = smov 80   ;;  %vm184_vm2 = vcmask 64512   ;;  %vm246_vm3 = vcmask 1043456  }
   0xa   :  { %1807 = vmatpush3.bf16.msra.mxu1 %v2028_v14  ;;  %1810 = vmatprep.mubr.msk.bf16.mxu1 %vm2113_vm1, %v2112_v15  ;;  %v1696_v29 = vld [vmem:[%s2560_s2] ss:$0 sm:$0xff]  ;;  %s2115_s2 = smov 88   ;;  %s2118_s21 = smov 112   ;;  %v164_v53 = vshrl.u32 %v163_v52, 7  ;;  %v166_v54 = vand.u32 127, %v163_v52 }
   0xb   :  { %1808 = vmatprep.subr.bf16.mxu1 %v2112_v15  ;;  %1834 = vmatprep.mubr.msk.bf16.mxu0 %vm2113_vm1, %v2112_v15  ;;  %v1697_v34 = vld [vmem:[%s2564_s6] ss:$0 sm:$0xff]  ;;  %s2117_s6 = smov 96   ;;  %s2119_s22 = smov 48  }
   0xc   :  { %vm167_vm4 = vcmp.gt.s32.totalorder %v166_v54, %v164_v53  ;;  %s2120_s23 = smov 104   ;;  %s2121_s24 = smov 72  }
   0xd   :  { %v2275_v59 = vsel %vm167_vm4, -1e+30, %v2112_v15  ;;  %s2122_s25 = smov 64   ;;  %s2123_s26 = smov 56  }
   0xe   :  { %1809 = vmatpush3.bf16.msra.mxu1 %v2029_v16  ;;  %s2124_s0 = smov 40   ;;  %s2125_s17 = smov [#allocation2]  }
   0xf   :  { %1814 = vmatprep.subr.bf16.mxu1 %v2112_v15 }
  0x90   :  { %v53_v4 = vpop.xlane.xlu0 %52 }
  0x91   :  { %v58_v5 = vmul.f32 0.03125, %v53_v4 }
  0x93   :  { %v60_v6 = vsub.f32 %v2201_v0, %v58_v5 }
  0x94   :  { %v56_v7 = vpop.xlane.xlu0 %55 }
  0x95   :  { %v59_v8 = vmul.f32 0.03125, %v56_v7  ;;  %v62_v9 = vmul.f32 %v60_v6, %v60_v6 }
  0x97   :  { %v61_v10 = vsub.f32 %v2206_v1, %v59_v8  ;;  %v64_v11 = vsel %vm50_vm0, %v62_v9, 0.0 }
  0x98   :  { %65 = vadd.xlane.f32.xlu1 %v64_v11 }
  0x99   :  { %v63_v12 = vmul.f32 %v61_v10, %v61_v10 }
  0x9b   :  { %v67_v13 = vsel %vm50_vm0, %v63_v12, 0.0 }
  0x9c   :  { %68 = vadd.xlane.f32.xlu1 %v67_v13 }
 0x125   :  { %v66_v17 = vpop.xlane.xlu1 %65 }
 0x126   :  { %v70_v18 = vmul.f32 0.03125, %v66_v17 }
 0x128   :  { %v72_v19 = vadd.f32 1e-05, %v70_v18 }
 0x129   :  { %v69_v20 = vpop.xlane.xlu1 %68 }
 0x12a   :  { %2040 = vrsqrt.f32 %v72_v19  ;;  %v71_v21 = vmul.f32 0.03125, %v69_v20 }
 0x12c   :  { %v73_v22 = vadd.f32 1e-05, %v71_v21 }
 0x12e   :  { %2042 = vrsqrt.f32 %v73_v22 }
 0x134   :  { %v2041_v23 = vpop.eup %2040 }
 0x135   :  { %v76_v24 = vmul.f32 %v2041_v23, %v60_v6 }
 0x137   :  { %v84_v28 = vmul.f32 %v1695_v25, %v76_v24 }
 0x138   :  { %v2043_v26 = vpop.eup %2042 }
 0x139   :  { %v77_v27 = vmul.f32 %v2043_v26, %v61_v10  ;;  %v92_v31 = vadd.f32 %v1696_v29, %v84_v28 }
 0x13b   :  { %v85_v30 = vmul.f32 %v1695_v25, %v77_v27 }
 0x13d   :  { %v93_v32 = vadd.f32 %v1696_v29, %v85_v30 }
 0x13f   :  { %v94_v33 = vpack.c.bf16 %v93_v32, %v92_v31 }
 0x141   :  { %1811 = vmatmul.mubr.msk.bf16.vlgmr.msra.gmra.mrb[0].mxu1 %vm50_vm0, %v94_v33  ;;  %v169_v33 = vld [vmem:[%s2565_s7] sm:$0xf] }
 0x142   :  { %1816 = vmatprep.mubr.msk.bf16.mxu1 %vm2113_vm1, %v2112_v15 }
 0x214   :  { %v155_v35 = vpop.f32.mrb[0].mxu1 }
 0x215   :  { %v1812_v36 = vpop.f32.mrb[1].mxu1  ;;  %v156_v38 = vadd.f32 %v1697_v34, %v155_v35 }
 0x216   :  { %v158_v37 = vpop.f32.mrb[2].mxu1 }
 0x217   :  { %v159_v39 = vadd.f32 %v1697_v34, %v158_v37  ;;  %v1813_v40 = vpop.f32.mrb[3].mxu1  ;;  %v2327_v34 = vsel %vm246_vm3, %v169_v33, 0 }
 0x219   :  { %v2242_v41 = vpack.c.bf16 %v159_v39, %v156_v38 }
 0x21b   :  { %340 = vrot.lane.b32.xlu1 %v2242_v41, %s2114_s1  ;;  %342 = vrot.lane.b32.xlu0 %v2242_v41, %s2115_s2  ;;  %v2286_v10 = vrot.slane %v2242_v41, 4 }
 0x21f   :  { %500 = vrot.lane.b32.xlu1 %v2242_v41, %s2116_s20  ;;  %182 = vrot.lane.b32.xlu0 %v2242_v41, %s2117_s6 }
 0x223   :  { %498 = vrot.lane.b32.xlu1 %v2242_v41, %s2118_s21  ;;  %558 = vrot.lane.b32.xlu0 %v2242_v41, %s2119_s22 }
 0x28d   :  { %v341_v42 = vpop.permute.xlu1 %340  ;;  %v343_v43 = vpop.permute.xlu0 %342 }
 0x28e   :  { %v348_v44 = vsel %vm184_vm2, %v343_v43, 0 }
 0x28f   :  { %1833 = vmatpush3.bf16.xpose.msra.mxu0 %v348_v44 }
 0x290   :  { %1850 = vmatprep.subr.bf16.mxu0 %v2112_v15 }
 0x291   :  { %v183_v45 = vpop.permute.xlu0 %182  ;;  %v501_v47 = vpop.permute.xlu1 %500 }
 0x292   :  { %v189_v46 = vsel %vm184_vm2, %v183_v45, 0  ;;  %v506_v48 = vsel %vm184_vm2, %v501_v47, 0 }
 0x293   :  { %1815 = vmatpush3.bf16.xpose.msra.mxu1 %v189_v46 }
 0x294   :  { %1820 = vmatprep.subr.bf16.mxu1 %v2112_v15 }
 0x295   :  { %v559_v49 = vpop.permute.xlu0 %558  ;;  %v499_v50 = vpop.permute.xlu1 %498 }
 0x296   :  { %1835 = vmatmul.mubr.msk.bf16.vlgmr.msra.gmra.mrb[0].mxu0 %vm184_vm2, %v341_v42  ;;  %v564_v51 = vsel %vm246_vm3, %v559_v49, 0 }
 0x297   :  { %1851 = vmatpush3.bf16.xpose.msra.mxu0 %v506_v48  ;;  %1852 = vmatprep.mubr.msk.bf16.mxu0 %vm2113_vm1, %v2112_v15 }
 0x298   :  { %1856 = vmatprep.subr.bf16.mxu0 %v2112_v15 }
 0x29a   :  { %1817 = vmatmul.mubr.msk.bf16.vlgmr.msra.gmra.mrb[4].mxu1 %vm184_vm2, %v2242_v41 }
 0x29b   :  { %1822 = vmatprep.mubr.msk.bf16.mxu1 %vm2113_vm1, %v2112_v15 }
 0x29e   :  { %1853 = vmatmul.mubr.msk.bf16.vlgmr.msra.gmra.mrb[4].mxu0 %vm184_vm2, %v499_v50 }
 0x29f   :  { %1857 = vmatpush3.bf16.msra.mxu0 %v564_v51  ;;  %1858 = vmatprep.mubr.msk.bf16.mxu0 %vm2113_vm1, %v2112_v15 }
 0x2a0   :  { %1868 = vmatprep.subr.bf16.mxu0 %v2112_v15 }
 0x369   :  { %v384_v55 = vpop.f32.mrb[0].mxu0 }
 0x36a   :  { %v1836_v56 = vpop.f32.mrb[1].mxu0  ;;  %v385_v11 = vadd.f32 %v384_v55, %v2275_v59 }
 0x36b   :  { %v387_v57 = vpop.f32.mrb[2].mxu0 }
 0x36c   :  { %v1837_v58 = vpop.f32.mrb[3].mxu0  ;;  %v390_v12 = vsel %vm184_vm2, %v385_v11, -inf }
 0x36d   :  { %v225_v60 = vpop.f32.mrb[4].mxu1 }
 0x36e   :  { %v226_v61 = vadd.f32 %v225_v60, %v2275_v59  ;;  %v1818_v62 = vpop.f32.mrb[5].mxu1 }
 0x36f   :  { %v228_v63 = vpop.f32.mrb[6].mxu1 }
 0x370   :  { %v1819_v2 = vpop.f32.mrb[7].mxu1  ;;  %v231_v3 = vsel %vm184_vm2, %v226_v61, -inf }
 0x371   :  { %v542_v4 = vpop.f32.mrb[4].mxu0  ;;  %232 = vmax.xlane.f32.xlu0 %v231_v3 }
 0x372   :  { %v543_v5 = vadd.f32 %v542_v4, %v2275_v59  ;;  %v1854_v6 = vpop.f32.mrb[5].mxu0 }
 0x373   :  { %v545_v7 = vpop.f32.mrb[6].mxu0 }
 0x374   :  { %v1855_v8 = vpop.f32.mrb[7].mxu0  ;;  %v548_v9 = vsel %vm184_vm2, %v543_v5, -inf  ;;  %v170_v7 = vld [vmem:[%s2565_s7 + $0x4] sm:$0xf] }
 0x375   :  { %549 = vmax.xlane.f32.xlu1 %v548_v9 }
 0x386   :  { %656 = vrot.lane.b32.xlu1 %v2242_v41, %s2120_s23 }
 0x387   :  { %658 = vrot.lane.b32.xlu0 %v2242_v41, %s2121_s24 }
 0x38a   :  { %816 = vrot.lane.b32.xlu1 %v2286_v10, %s2117_s6 }
 0x38e   :  { %241 = vrot.lane.b32.xlu1 %v2242_v41, %s2122_s25 }
 0x3b2   :  { %391 = vmax.xlane.f32.xlu1 %v390_v12 }
 0x3fe   :  { %v233_v13 = vpop.xlane.xlu0 %232 }
 0x3ff   :  { %v234_v14 = vsub.f32 %v226_v61, %v233_v13 }
 0x401   :  { %v235_v16 = vmul.f32 1.442695, %v234_v14 }
 0x402   :  { %v550_v17 = vpop.xlane.xlu1 %549  ;;  %v659_v27 = vpop.permute.xlu0 %658 }
 0x403   :  { %2044 = vpow2.f32 %v235_v16  ;;  %v551_v18 = vsub.f32 %v543_v5, %v550_v17  ;;  %v664_v30 = vsel %vm184_vm2, %v659_v27, 0 }
 0x405   :  { %v552_v19 = vmul.f32 1.442695, %v551_v18 }
 0x406   :  { %v657_v20 = vpop.permute.xlu1 %656 }
 0x407   :  { %2046 = vpow2.f32 %v552_v19 }
 0x40a   :  { %v817_v21 = vpop.permute.xlu1 %816 }
 0x40b   :  { %v822_v31 = vsel %vm184_vm2, %v817_v21, 0 }
 0x40d   :  { %v2045_v22 = vpop.eup %2044 }
 0x40e   :  { %v242_v23 = vpop.permute.xlu1 %241  ;;  %v237_v24 = vsel %vm184_vm2, %v2045_v22, 0.0  ;;  %v240_v28 = vpack.c.bf16 %v2045_v22, %v2045_v22 }
 0x40f   :  { %v248_v25 = vsel %vm246_vm3, %v242_v23, 0  ;;  %238 = vadd.xlane.f32.xlu0 %v237_v24 }
 0x410   :  { %1821 = vmatpush3.bf16.msra.mxu1 %v248_v25 }
 0x411   :  { %v2047_v26 = vpop.eup %2046  ;;  %1826 = vmatprep.subr.bf16.mxu1 %v2112_v15 }
 0x412   :  { %v557_v29 = vpack.c.bf16 %v2047_v26, %v2047_v26  ;;  %v554_v32 = vsel %vm184_vm2, %v2047_v26, 0.0 }
 0x413   :  { %1823 = vmatmul.mubr.msk.bf16.vlgmr.msra.gmra.mrb[8].mxu1 %vm184_vm2, %v240_v28 }
 0x414   :  { %1859 = vmatmul.mubr.msk.bf16.vlgmr.msra.gmra.mrb[8].mxu0 %vm184_vm2, %v557_v29  ;;  %1828 = vmatprep.mubr.msk.bf16.mxu1 %vm2113_vm1, %v2112_v15 }
 0x415   :  { %1869 = vmatpush3.bf16.xpose.msra.mxu0 %v664_v30  ;;  %1870 = vmatprep.mubr.msk.bf16.mxu0 %vm2113_vm1, %v2112_v15 }
 0x416   :  { %1886 = vmatprep.subr.bf16.mxu0 %v2112_v15  ;;  %1827 = vmatpush3.bf16.msra.mxu1 %v2327_v34 }
 0x417   :  { %1838 = vmatprep.subr.bf16.mxu1 %v2112_v15 }
 0x41c   :  { %1871 = vmatmul.mubr.msk.bf16.vlgmr.msra.gmra.mrb[12].mxu0 %vm184_vm2, %v657_v20 }
 0x41d   :  { %1887 = vmatpush3.bf16.xpose.msra.mxu0 %v822_v31  ;;  %1888 = vmatprep.mubr.msk.bf16.mxu0 %vm2113_vm1, %v2112_v15 }
 0x41e   :  { %1892 = vmatprep.subr.bf16.mxu0 %v2112_v15 }
 0x424   :  { %1889 = vmatmul.mubr.msk.bf16.vlgmr.msra.gmra.mrb[16].mxu0 %vm184_vm2, %v2286_v10 }
 0x425   :  { %400 = vrot.lane.b32.xlu0 %v2242_v41, %s2123_s26  ;;  %1894 = vmatprep.mubr.msk.bf16.mxu0 %vm2113_vm1, %v2112_v15 }
 0x429   :  { %971 = vrot.lane.b32.xlu0 %v2286_v10, %s2115_s2 }
 0x42d   :  { %969 = vrot.lane.b32.xlu0 %v2286_v10, %s2114_s1 }
 0x431   :  { %1124 = vrot.lane.b32.xlu0 %v2286_v10, %s2118_s21 }
 0x43f   :  { %v392_v35 = vpop.xlane.xlu1 %391 }
 0x440   :  { %v393_v37 = vsub.f32 %v385_v11, %v392_v35  ;;  %v171_v35 = vld [vmem:[%s2565_s7 + $0x8] sm:$0xf] }
 0x442   :  { %v394_v38 = vmul.f32 1.442695, %v393_v37 }
 0x450   :  { %555 = vadd.xlane.f32.xlu0 %v554_v32 }
 0x49c   :  { %v239_v36 = vpop.xlane.xlu0 %238 }
 0x49d   :  { %2048 = vrcp.f32 %v239_v36 }
 0x49e   :  { %2050 = vpow2.f32 %v394_v38 }
 0x4a0   :  { %v401_v40 = vpop.permute.xlu0 %400 }
 0x4a1   :  { %v406_v52 = vsel %vm246_vm3, %v401_v40, 0 }
 0x4a4   :  { %v972_v16 = vpop.permute.xlu0 %971 }
 0x4a5   :  { %v977_v19 = vsel %vm184_vm2, %v972_v16, 0 }
 0x4a7   :  { %v2049_v39 = vpop.eup %2048 }
 0x4a8   :  { %v2051_v53 = vpop.eup %2050  ;;  %v970_v21 = vpop.permute.xlu0 %969 }
 0x4a9   :  { %v399_v58 = vpack.c.bf16 %v2051_v53, %v2051_v53  ;;  %v396_v6 = vsel %vm184_vm2, %v2051_v53, 0.0 }
 0x4ac   :  { %v1125_v23 = vpop.permute.xlu0 %1124 }
 0x4dd   :  { %v556_v28 = vpop.xlane.xlu0 %555 }
 0x4e6   :  { %v284_v42 = vpop.f32.mrb[8].mxu1 }
 0x4e7   :  { %v291_v43 = vmul.f32 %v2049_v39, %v284_v42  ;;  %v1824_v44 = vpop.f32.mrb[9].mxu1  ;;  %v2331_v45 = vpop.f32.mrb[8].mxu0  ;;  %v2390_v39 = vsel %vm246_vm3, %v171_v35, 0 }
 0x4e8   :  { %v287_v46 = vpop.f32.mrb[10].mxu1  ;;  %v1860_v47 = vpop.f32.mrb[9].mxu0 }
 0x4e9   :  { %v292_v48 = vpack.c.bf16 %v291_v43, %v291_v43  ;;  %v1825_v49 = vpop.f32.mrb[11].mxu1  ;;  %v603_v50 = vpop.f32.mrb[10].mxu0 }
 0x4ea   :  { %v1861_v51 = vpop.f32.mrb[11].mxu0 }
 0x4eb   :  { %1829 = vmatmul.mubr.msk.bf16.vlgmr.msra.gmra.mrb[12].mxu1 %vm184_vm2, %v292_v48 }
 0x4ec   :  { %1839 = vmatpush3.bf16.msra.mxu1 %v406_v52  ;;  %1840 = vmatprep.mubr.msk.bf16.mxu1 %vm2113_vm1, %v2112_v15 }
 0x4ed   :  { %1844 = vmatprep.subr.bf16.mxu1 %v2112_v15 }
 0x4ef   :  { %v700_v54 = vpop.f32.mrb[12].mxu0 }
 0x4f0   :  { %v2339_v55 = vadd.f32 %v700_v54, %v2275_v59  ;;  %v1872_v56 = vpop.f32.mrb[13].mxu0 }
 0x4f1   :  { %v703_v57 = vpop.f32.mrb[14].mxu0 }
 0x4f2   :  { %v1873_v60 = vpop.f32.mrb[15].mxu0  ;;  %v706_v61 = vsel %vm184_vm2, %v2339_v55, -inf }
 0x4f3   :  { %707 = vmax.xlane.f32.xlu0 %v706_v61  ;;  %1841 = vmatmul.mubr.msk.bf16.vlgmr.msra.gmra.mrb[16].mxu1 %vm184_vm2, %v399_v58 }
 0x4f4   :  { %1846 = vmatprep.mubr.msk.bf16.mxu1 %vm2113_vm1, %v2112_v15 }
 0x4f7   :  { %v858_v62 = vpop.f32.mrb[16].mxu0 }
 0x4f8   :  { %v859_v63 = vadd.f32 %v858_v62, %v2275_v59  ;;  %v1890_v2 = vpop.f32.mrb[17].mxu0 }
 0x4f9   :  { %v861_v3 = vpop.f32.mrb[18].mxu0 }
 0x4fa   :  { %v1891_v4 = vpop.f32.mrb[19].mxu0  ;;  %v864_v5 = vsel %vm184_vm2, %v859_v63, -inf }
 0x4fb   :  { %865 = vmax.xlane.f32.xlu1 %v864_v5 }
 0x509   :  { %716 = vrot.lane.b32.xlu0 %v2242_v41, %s2124_s0  ;;  %v2363_v41 = vsel %vm246_vm3, %v170_v7, 0 }
 0x50a   :  { %1845 = vmatpush3.bf16.msra.mxu1 %v2363_v41 }
 0x50b   :  { %1862 = vmatprep.subr.bf16.mxu1 %v2112_v15 }
 0x50c   :  { %874 = vrot.lane.b32.xlu1 %v2286_v10, %s2122_s25 }
 0x50d   :  { %1279 = vrot.lane.b32.xlu0 %v2286_v10, %s2120_s23 }
 0x510   :  { %1126 = vrot.lane.b32.xlu1 %v2286_v10, %s2116_s20 }
 0x534   :  { %397 = vadd.xlane.f32.xlu1 %v396_v6 }
 0x545   :  { %1184 = vrot.lane.b32.xlu1 %v2286_v10, %s2119_s22 }
 0x580   :  { %v708_v32 = vpop.xlane.xlu0 %707 }
 0x581   :  { %v709_v37 = vsub.f32 %v2339_v55, %v708_v32 }
 0x583   :  { %v710_v40 = vmul.f32 1.442695, %v709_v37 }
 0x584   :  { %v717_v44 = vpop.permute.xlu0 %716 }
 0x585   :  { %v722_v47 = vsel %vm246_vm3, %v717_v44, 0 }
 0x588   :  { %v866_v8 = vpop.xlane.xlu1 %865 }
 0x589   :  { %v867_v9 = vsub.f32 %v859_v63, %v866_v8 }
 0x58b   :  { %v868_v11 = vmul.f32 1.442695, %v867_v9  ;;  %v172_v9 = vld [vmem:[%s2565_s7 + $0xc] sm:$0xf] }
 0x58c   :  { %v875_v12 = vpop.permute.xlu1 %874 }
 0x58d   :  { %2052 = vpow2.f32 %v868_v11  ;;  %v880_v13 = vsel %vm246_vm3, %v875_v12, 0  ;;  %v2421_v11 = vsel %vm246_vm3, %v172_v9, 0  ;;  %v1280_v12 = vpop.permute.xlu0 %1279 }
 0x58e   :  { %1893 = vmatpush3.bf16.msra.mxu0 %v880_v13 }
 0x58f   :  { %1904 = vmatprep.subr.bf16.mxu0 %v2112_v15 }
 0x590   :  { %v1127_v20 = vpop.permute.xlu1 %1126 }
 0x591   :  { %v1132_v22 = vsel %vm184_vm2, %v1127_v20, 0 }
 0x597   :  { %v2053_v14 = vpop.eup %2052 }
 0x598   :  { %v870_v17 = vsel %vm184_vm2, %v2053_v14, 0.0  ;;  %v873_v18 = vpack.c.bf16 %v2053_v14, %v2053_v14 }
 0x599   :  { %871 = vadd.xlane.f32.xlu0 %v870_v17 }
 0x59a   :  { %1895 = vmatmul.mubr.msk.bf16.vlgmr.msra.gmra.mrb[20].mxu0 %vm184_vm2, %v873_v18 }
 0x59b   :  { %1905 = vmatpush3.bf16.xpose.msra.mxu0 %v977_v19  ;;  %1906 = vmatprep.mubr.msk.bf16.mxu0 %vm2113_vm1, %v2112_v15 }
 0x59c   :  { %1922 = vmatprep.subr.bf16.mxu0 %v2112_v15 }
 0x5a2   :  { %1907 = vmatmul.mubr.msk.bf16.vlgmr.msra.gmra.mrb[24].mxu0 %vm184_vm2, %v970_v21 }
 0x5a3   :  { %1923 = vmatpush3.bf16.xpose.msra.mxu0 %v1132_v22  ;;  %1924 = vmatprep.mubr.msk.bf16.mxu0 %vm2113_vm1, %v2112_v15 }
 0x5a4   :  { %1928 = vmatprep.subr.bf16.mxu0 %v2112_v15 }
 0x5aa   :  { %1925 = vmatmul.mubr.msk.bf16.vlgmr.msra.gmra.mrb[28].mxu0 %vm184_vm2, %v1125_v23 }
 0x5ab   :  { %1930 = vmatprep.mubr.msk.bf16.mxu0 %vm2113_vm1, %v2112_v15 }
 0x5c1   :  { %v398_v24 = vpop.xlane.xlu1 %397 }
 0x5c2   :  { %2054 = vrcp.f32 %v398_v24 }
 0x5c3   :  { %2056 = vrcp.f32 %v556_v28 }
 0x5c4   :  { %2058 = vpow2.f32 %v710_v40 }
 0x5c5   :  { %v1185_v25 = vpop.permute.xlu1 %1184 }
 0x5c6   :  { %v1190_v26 = vsel %vm246_vm3, %v1185_v25, 0  ;;  %v442_v27 = vpop.f32.mrb[16].mxu1 }
 0x5c7   :  { %v1842_v29 = vpop.f32.mrb[17].mxu1  ;;  %1929 = vmatpush3.bf16.msra.mxu0 %v1190_v26 }
 0x5c8   :  { %v445_v30 = vpop.f32.mrb[18].mxu1  ;;  %1940 = vmatprep.subr.bf16.mxu0 %v2112_v15 }
 0x5c9   :  { %v1843_v31 = vpop.f32.mrb[19].mxu1 }
 0x5cc   :  { %v2055_v33 = vpop.eup %2054 }
 0x5cd   :  { %v449_v36 = vmul.f32 %v2055_v33, %v442_v27  ;;  %v2057_v42 = vpop.eup %2056 }
 0x5ce   :  { %v607_v43 = vmul.f32 %v2057_v42, %v2331_v45  ;;  %v2059_v48 = vpop.eup %2058 }
 0x5cf   :  { %v450_v38 = vpack.c.bf16 %v449_v36, %v449_v36  ;;  %v715_v49 = vpack.c.bf16 %v2059_v48, %v2059_v48  ;;  %v712_v4 = vsel %vm184_vm2, %v2059_v48, 0.0 }
 0x5d0   :  { %v608_v46 = vpack.c.bf16 %v607_v43, %v607_v43 }
 0x5d1   :  { %1847 = vmatmul.mubr.msk.bf16.vlgmr.msra.gmra.mrb[12].mxu1 %vm184_vm2, %v450_v38 }
 0x5d2   :  { %1863 = vmatpush3.bf16.msra.mxu1 %v2390_v39  ;;  %1864 = vmatprep.mubr.msk.bf16.mxu1 %vm2113_vm1, %v2112_v15 }
 0x5d3   :  { %1874 = vmatprep.subr.bf16.mxu1 %v2112_v15 }
 0x5dd   :  { %1865 = vmatmul.mubr.msk.bf16.vlgmr.msra.gmra.mrb[12].mxu1 %vm184_vm2, %v608_v46 }
 0x5de   :  { %1875 = vmatpush3.bf16.msra.mxu1 %v722_v47  ;;  %1876 = vmatprep.mubr.msk.bf16.mxu1 %vm2113_vm1, %v2112_v15 }
 0x5df   :  { %1880 = vmatprep.subr.bf16.mxu1 %v2112_v15 }
 0x5e5   :  { %1877 = vmatmul.mubr.msk.bf16.vlgmr.msra.gmra.mrb[20].mxu1 %vm184_vm2, %v715_v49 }
 0x5e6   :  { %1882 = vmatprep.mubr.msk.bf16.mxu1 %vm2113_vm1, %v2112_v15  ;;  %1881 = vmatpush3.bf16.msra.mxu1 %v2421_v11 }
 0x5e7   :  { %1898 = vmatprep.subr.bf16.mxu1 %v2112_v15 }
 0x626   :  { %v872_v13 = vpop.xlane.xlu0 %871 }
 0x66d   :  { %v2406_v45 = vpop.f32.mrb[20].mxu0 }
 0x66e   :  { %v1896_v50 = vpop.f32.mrb[21].mxu0 }
 0x66f   :  { %v919_v51 = vpop.f32.mrb[22].mxu0 }
 0x670   :  { %v1897_v52 = vpop.f32.mrb[23].mxu0  ;;  %v1701_v51 = vld [vmem:[%s2566_s8] ss:$0 sm:$0xff]  ;;  %s1684_s8 = sshll.u32 %s2125_s17, 4  ;;  %s1685_s8 = int_to_ptr.vmem [resolvable:$true] %s1684_s8 }
 0x671   :  { %s2088_s18 = scalar_lea.vmem %s1685_s8, 256  ;;  %p2093_p1 = scmp.lt.s32.totalorder %s1685_s8, %s1685_s8 }
 0x672   :  { %p2089_p0 = scmp.ne.s32.totalorder %s1685_s8, %s2088_s18  ;;  %p2094_p2 = scmp.lt.s32.totalorder %s2088_s18, %s2088_s18 }
 0x674   :  { %p2095_p3 = por %p2094_p2, %p2093_p1 }
 0x675   :  { %v1013_v53 = vpop.f32.mrb[24].mxu0 }
 0x676   :  { %v1014_v54 = vadd.f32 %v1013_v53, %v2275_v59  ;;  %v1908_v55 = vpop.f32.mrb[25].mxu0  ;;  %p2096_p4 = pnand %p2095_p3, %p2089_p0 }
 0x677   :  { %v1016_v56 = vpop.f32.mrb[26].mxu0 }
 0x678   :  { %v1909_v57 = vpop.f32.mrb[27].mxu0  ;;  %v1019_v58 = vsel %vm184_vm2, %v1014_v54, -inf }
 0x679   :  { %1020 = vmax.xlane.f32.xlu0 %v1019_v58 }
 0x67d   :  { %v1168_v60 = vpop.f32.mrb[28].mxu0 }
 0x67e   :  { %v1169_v61 = vadd.f32 %v1168_v60, %v2275_v59  ;;  %v1926_v62 = vpop.f32.mrb[29].mxu0 }
 0x67f   :  { %v1171_v63 = vpop.f32.mrb[30].mxu0 }
 0x680   :  { %v1927_v2 = vpop.f32.mrb[31].mxu0  ;;  %v1174_v3 = vsel %vm184_vm2, %v1169_v61, -inf }
 0x681   :  { %1175 = vmax.xlane.f32.xlu1 %v1174_v3 }
 0x68f   :  { %1029 = vrot.lane.b32.xlu0 %v2286_v10, %s2123_s26 }
 0x692   :  { %1281 = vrot.lane.b32.xlu1 %v2286_v10, %s2121_s24 }
 0x6b6   :  { %713 = vadd.xlane.f32.xlu1 %v712_v4 }
 0x6b8   :  { %v758_v5 = vpop.f32.mrb[20].mxu1 }
 0x6b9   :  { %v1878_v6 = vpop.f32.mrb[21].mxu1 }
 0x6ba   :  { %v761_v7 = vpop.f32.mrb[22].mxu1 }
 0x6bb   :  { %v1879_v8 = vpop.f32.mrb[23].mxu1 }
 0x706   :  { %v1021_v14 = vpop.xlane.xlu0 %1020 }
 0x707   :  { %v1022_v16 = vsub.f32 %v1014_v54, %v1021_v14 }
 0x709   :  { %v1023_v17 = vmul.f32 1.442695, %v1022_v16 }
 0x70a   :  { %v1030_v35 = vpop.permute.xlu0 %1029 }
 0x70b   :  { %2060 = vpow2.f32 %v1023_v17  ;;  %v1035_v37 = vsel %vm246_vm3, %v1030_v35, 0 }
 0x70e   :  { %v1176_v18 = vpop.xlane.xlu1 %1175 }
 0x70f   :  { %v1177_v19 = vsub.f32 %v1169_v61, %v1176_v18 }
 0x711   :  { %v1178_v20 = vmul.f32 1.442695, %v1177_v19 }
 0x712   :  { %v1282_v24 = vpop.permute.xlu1 %1281 }
 0x713   :  { %2062 = vpow2.f32 %v1178_v20  ;;  %v1287_v27 = vsel %vm184_vm2, %v1282_v24, 0 }
 0x715   :  { %v2061_v21 = vpop.eup %2060 }
 0x716   :  { %v1025_v22 = vsel %vm184_vm2, %v2061_v21, 0.0 }
 0x717   :  { %1026 = vadd.xlane.f32.xlu1 %v1025_v22 }
 0x71d   :  { %v2063_v23 = vpop.eup %2062 }
 0x71e   :  { %v1180_v25 = vsel %vm184_vm2, %v2063_v23, 0.0  ;;  %v1183_v26 = vpack.c.bf16 %v2063_v23, %v2063_v23 }
 0x71f   :  { %1181 = vadd.xlane.f32.xlu1 %v1180_v25  ;;  %v814_v25 = vadd.f32 %v1701_v51, %v2206_v1 }
 0x720   :  { %1931 = vmatmul.mubr.msk.bf16.vlgmr.msra.gmra.mrb[32].mxu0 %vm184_vm2, %v1183_v26 }
 0x721   :  { %1941 = vmatpush3.bf16.xpose.msra.mxu0 %v1287_v27  ;;  %1942 = vmatprep.mubr.msk.bf16.mxu0 %vm2113_vm1, %v2112_v15 }
 0x722   :  { %1958 = vmatprep.subr.bf16.mxu0 %v2112_v15 }
 0x728   :  { %1943 = vmatmul.mubr.msk.bf16.vlgmr.msra.gmra.mrb[36].mxu0 %vm184_vm2, %v1280_v12 }
 0x729   :  { %1962 = vmatprep.mubr.msk.bf16.mxu0 %vm2113_vm1, %v2112_v15 }
 0x743   :  { %v714_v28 = vpop.xlane.xlu1 %713 }
 0x744   :  { %2064 = vrcp.f32 %v714_v28 }
 0x745   :  { %2066 = vrcp.f32 %v872_v13 }
 0x74e   :  { %v2065_v29 = vpop.eup %2064 }
 0x74f   :  { %v765_v30 = vmul.f32 %v2065_v29, %v758_v5  ;;  %v2067_v32 = vpop.eup %2066 }
 0x750   :  { %v923_v33 = vmul.f32 %v2067_v32, %v2406_v45 }
 0x751   :  { %v766_v31 = vpack.c.bf16 %v765_v30, %v765_v30 }
 0x752   :  { %v924_v36 = vpack.c.bf16 %v923_v33, %v923_v33 }
 0x753   :  { %1883 = vmatmul.mubr.msk.bf16.vlgmr.msra.gmra.mrb[12].mxu1 %vm184_vm2, %v766_v31 }
 0x754   :  { %1899 = vmatpush3.bf16.msra.mxu1 %v2327_v34  ;;  %1900 = vmatprep.mubr.msk.bf16.mxu1 %vm2113_vm1, %v2112_v15  ;;  %v1028_v34 = vpack.c.bf16 %v2061_v21, %v2061_v21 }
 0x755   :  { %1910 = vmatprep.subr.bf16.mxu1 %v2112_v15 }
 0x75b   :  { %1901 = vmatmul.mubr.msk.bf16.vlgmr.msra.gmra.mrb[24].mxu1 %vm184_vm2, %v924_v36 }
 0x75c   :  { %1911 = vmatpush3.bf16.msra.mxu1 %v1035_v37  ;;  %1912 = vmatprep.mubr.msk.bf16.mxu1 %vm2113_vm1, %v2112_v15 }
 0x75d   :  { %1916 = vmatprep.subr.bf16.mxu1 %v2112_v15 }
 0x763   :  { %1913 = vmatmul.mubr.msk.bf16.vlgmr.msra.gmra.mrb[28].mxu1 %vm184_vm2, %v1028_v34 }
 0x764   :  { %1917 = vmatpush3.bf16.msra.mxu1 %v2363_v41  ;;  %1918 = vmatprep.mubr.msk.bf16.mxu1 %vm2113_vm1, %v2112_v15 }
 0x765   :  { %1934 = vmatprep.subr.bf16.mxu1 %v2112_v15 }
 0x7a4   :  { %v1027_v53 = vpop.xlane.xlu1 %1026 }
 0x7a5   :  { %2068 = vrcp.f32 %v1027_v53  ;;  %v1727_v53 = vld [vmem:[%s2562_s4] ss:$0 sm:$0xff] }
 0x7ac   :  { %v1182_v56 = vpop.xlane.xlu1 %1181 }
 0x7ad   :  { %2070 = vrcp.f32 %v1182_v56 }
 0x7f3   :  { %v1226_v38 = vpop.f32.mrb[32].mxu0 }
 0x7f4   :  { %v1932_v40 = vpop.f32.mrb[33].mxu0 }
 0x7f5   :  { %v1229_v42 = vpop.f32.mrb[34].mxu0  ;;  %v2031_v40 = vld [vmem:[%s2567_s9 + $0x8] sm:$0xff]  }
 0x7f6   :  { %v1933_v43 = vpop.f32.mrb[35].mxu0 }
 0x7fb   :  { %v1323_v44 = vpop.f32.mrb[36].mxu0 }
 0x7fc   :  { %v1324_v46 = vadd.f32 %v1323_v44, %v2275_v59  ;;  %v1944_v47 = vpop.f32.mrb[37].mxu0  ;;  %v180_v59 = vadd.f32 %v1701_v51, %v2201_v0 }
 0x7fd   :  { %v1326_v48 = vpop.f32.mrb[38].mxu0 }
 0x7fe   :  { %v1945_v49 = vpop.f32.mrb[39].mxu0  ;;  %v1329_v45 = vsel %vm184_vm2, %v1324_v46, -inf }
 0x7ff   :  { %1330 = vmax.xlane.f32.xlu1 %v1329_v45 }
 0x810   :  { %1339 = vrot.lane.b32.xlu1 %v2286_v10, %s2124_s0  ;;  %v2069_v10 = vpop.eup %2068 }
 0x811   :  { %v2071_v0 = vpop.eup %2070 }
 0x812   :  { %v1233_v3 = vmul.f32 %v2071_v0, %v1226_v38  ;;  %v2030_v38 = vld [vmem:[%s2567_s9] sm:$0xff]   ;;  %v2039_v0 = vld [vmem:[%s2569_s11 + $0x38] sm:$0xff]  }
 0x813   :  { %1959 = vmatpush3.bf16.msra.mxu0 %v2030_v38 }
 0x814   :  { %v1234_v4 = vpack.c.bf16 %v1233_v3, %v1233_v3  ;;  %1960 = vmatprep.subr.bf16.mxu0 %v2112_v15  ;;  %v1728_v3 = vld [vmem:[%s2568_s10] ss:$0 sm:$0xff] }
 0x817   :  { %1961 = vmatpush3.bf16.msra.mxu0 %v2031_v40 }
 0x818   :  { %1966 = vmatprep.subr.bf16.mxu0 %v2112_v15 }
 0x826   :  { %v807_v41 = vpop.f32.mrb[12].mxu1 }
 0x827   :  { %v1884_v50 = vpop.f32.mrb[13].mxu1  ;;  %v2459_v55 = vadd.f32 %v807_v41, %v180_v59  ;;  %v1726_v41 = vld [vmem:[%s2561_s3] ss:$0 sm:$0xff] }
 0x828   :  { %v810_v52 = vpop.f32.mrb[14].mxu1 }
 0x829   :  { %v1885_v54 = vpop.f32.mrb[15].mxu1  ;;  %v1436_v57 = vsel %vm50_vm0, %v2459_v55, 0.0 }
 0x834   :  { %1437 = vadd.xlane.f32.xlu1 %v1436_v57 }
 0x836   :  { %v1071_v58 = vpop.f32.mrb[28].mxu1 }
 0x837   :  { %v1078_v60 = vmul.f32 %v2069_v10, %v1071_v58  ;;  %v1914_v61 = vpop.f32.mrb[29].mxu1  ;;  %v2032_v10 = vld [vmem:[%s2569_s11] sm:$0xff]   ;;  %v2033_v58 = vld [vmem:[%s2569_s11 + $0x8] sm:$0xff]  }
 0x838   :  { %v1074_v62 = vpop.f32.mrb[30].mxu1  ;;  %v2035_v61 = vld [vmem:[%s2569_s11 + $0x18] sm:$0xff]  }
 0x839   :  { %v1079_v63 = vpack.c.bf16 %v1078_v60, %v1078_v60  ;;  %v1915_v2 = vpop.f32.mrb[31].mxu1  ;;  %v2034_v60 = vld [vmem:[%s2569_s11 + $0x10] sm:$0xff]   ;;  %v2036_v62 = vld [vmem:[%s2569_s11 + $0x20] sm:$0xff]  }
 0x83a   :  { %v2038_v2 = vld [vmem:[%s2569_s11 + $0x30] sm:$0xff]  }
 0x83b   :  { %1919 = vmatmul.mubr.msk.bf16.vlgmr.msra.gmra.mrb[24].mxu1 %vm184_vm2, %v1079_v63  ;;  %v2037_v63 = vld [vmem:[%s2569_s11 + $0x28] sm:$0xff]  }
 0x83c   :  { %1935 = vmatpush3.bf16.msra.mxu1 %v2390_v39  ;;  %1936 = vmatprep.mubr.msk.bf16.mxu1 %vm2113_vm1, %v2112_v15 }
 0x83d   :  { %1946 = vmatprep.subr.bf16.mxu1 %v2112_v15 }
 0x847   :  { %1937 = vmatmul.mubr.msk.bf16.vlgmr.msra.gmra.mrb[24].mxu1 %vm184_vm2, %v1234_v4 }
 0x848   :  { %1948 = vmatprep.mubr.msk.bf16.mxu1 %vm2113_vm1, %v2112_v15 }
 0x88c   :  { %v1331_v5 = vpop.xlane.xlu1 %1330 }
 0x88d   :  { %v1332_v6 = vsub.f32 %v1324_v46, %v1331_v5 }
 0x88f   :  { %v1333_v7 = vmul.f32 1.442695, %v1332_v6 }
 0x890   :  { %v1340_v8 = vpop.permute.xlu1 %1339 }
 0x891   :  { %2072 = vpow2.f32 %v1333_v7  ;;  %v1345_v39 = vsel %vm246_vm3, %v1340_v8, 0 }
 0x892   :  { %1947 = vmatpush3.bf16.msra.mxu1 %v1345_v39 }
 0x893   :  { %1952 = vmatprep.subr.bf16.mxu1 %v2112_v15 }
 0x89b   :  { %v2073_v9 = vpop.eup %2072 }
 0x89c   :  { %v1335_v12 = vsel %vm184_vm2, %v2073_v9, 0.0  ;;  %v1338_v13 = vpack.c.bf16 %v2073_v9, %v2073_v9 }
 0x89d   :  { %1336 = vadd.xlane.f32.xlu0 %v1335_v12 }
 0x89e   :  { %1949 = vmatmul.mubr.msk.bf16.vlgmr.msra.gmra.mrb[32].mxu1 %vm184_vm2, %v1338_v13 }
 0x89f   :  { %1953 = vmatpush3.bf16.msra.mxu1 %v2421_v11  ;;  %1954 = vmatprep.mubr.msk.bf16.mxu1 %vm2113_vm1, %v2112_v15 }
 0x8c1   :  { %v1438_v23 = vpop.xlane.xlu1 %1437 }
 0x8c2   :  { %v1442_v24 = vmul.f32 0.03125, %v1438_v23 }
 0x8c4   :  { %v1444_v11 = vsub.f32 %v2459_v55, %v1442_v24  ;;  %v1734_v24 = vld [vmem:[%s2570_s12] ss:$0 sm:$0xff] }
 0x8c6   :  { %v1446_v32 = vmul.f32 %v1444_v11, %v1444_v11 }
 0x8c8   :  { %v1448_v33 = vsel %vm50_vm0, %v1446_v32, 0.0 }
 0x92a   :  { %v1337_v14 = vpop.xlane.xlu0 %1336 }
 0x92b   :  { %2074 = vrcp.f32 %v1337_v14 }
 0x935   :  { %v2075_v16 = vpop.eup %2074 }
 0x971   :  { %v1381_v17 = vpop.f32.mrb[32].mxu1 }
 0x972   :  { %v1388_v18 = vmul.f32 %v2075_v16, %v1381_v17  ;;  %v1950_v19 = vpop.f32.mrb[33].mxu1 }
 0x973   :  { %v1384_v20 = vpop.f32.mrb[34].mxu1 }
 0x974   :  { %v1389_v21 = vpack.c.bf16 %v1388_v18, %v1388_v18  ;;  %v1951_v22 = vpop.f32.mrb[35].mxu1 }
 0x976   :  { %1955 = vmatmul.mubr.msk.bf16.vlgmr.msra.gmra.mrb[24].mxu1 %vm184_vm2, %v1389_v21 }
 0xa49   :  { %v1427_v26 = vpop.f32.mrb[24].mxu1 }
 0xa4a   :  { %v2481_v27 = vadd.f32 %v1427_v26, %v814_v25  ;;  %v1956_v28 = vpop.f32.mrb[25].mxu1 }
 0xa4b   :  { %v1430_v29 = vpop.f32.mrb[26].mxu1 }
 0xa4c   :  { %v1957_v30 = vpop.f32.mrb[27].mxu1  ;;  %v1439_v31 = vsel %vm50_vm0, %v2481_v27, 0.0 }
 0xa4d   :  { %1440 = vadd.xlane.f32.xlu0 %v1439_v31 }
 0xa51   :  { %1449 = vadd.xlane.f32.xlu0 %v1448_v33 }
 0xada   :  { %v1441_v35 = vpop.xlane.xlu0 %1440 }
 0xadb   :  { %v1443_v36 = vmul.f32 0.03125, %v1441_v35 }
 0xadd   :  { %v1445_v1 = vsub.f32 %v2481_v27, %v1443_v36 }
 0xade   :  { %v1450_v42 = vpop.xlane.xlu0 %1449 }
 0xadf   :  { %v1447_v37 = vmul.f32 %v1445_v1, %v1445_v1  ;;  %v1454_v43 = vmul.f32 0.03125, %v1450_v42 }
 0xae1   :  { %v1451_v34 = vsel %vm50_vm0, %v1447_v37, 0.0  ;;  %v1456_v44 = vadd.f32 1e-05, %v1454_v43 }
 0xae2   :  { %1452 = vadd.xlane.f32.xlu0 %v1451_v34 }
 0xae3   :  { %2076 = vrsqrt.f32 %v1456_v44 }
 0xaed   :  { %v2077_v49 = vpop.eup %2076 }
 0xaee   :  { %v1460_v45 = vmul.f32 %v2077_v49, %v1444_v11 }
 0xaf0   :  { %v1468_v51 = vmul.f32 %v1726_v41, %v1460_v45 }
 0xaf2   :  { %v1476_v59 = vadd.f32 %v1727_v53, %v1468_v51 }
 0xb6f   :  { %v1453_v46 = vpop.xlane.xlu0 %1452 }
 0xb70   :  { %v1455_v47 = vmul.f32 0.03125, %v1453_v46 }
 0xb72   :  { %v1457_v48 = vadd.f32 1e-05, %v1455_v47 }
 0xb74   :  { %2078 = vrsqrt.f32 %v1457_v48 }
 0xb7e   :  { %v2079_v50 = vpop.eup %2078 }
 0xb7f   :  { %v1461_v52 = vmul.f32 %v2079_v50, %v1445_v1 }
 0xb81   :  { %v1469_v54 = vmul.f32 %v1726_v41, %v1461_v52 }
 0xb83   :  { %v1477_v56 = vadd.f32 %v1727_v53, %v1469_v54 }
 0xb85   :  { %v1478_v57 = vpack.c.bf16 %v1477_v56, %v1476_v59 }
 0xb87   :  { %1963 = vmatmul.mubr.msk.bf16.vlgmr.msra.gmra.mrb[40].mxu0 %vm50_vm0, %v1478_v57 }
 0xb88   :  { %1982 = vmatprep.mubr.msk.bf16.mxu0 %vm2113_vm1, %v2112_v15  ;;  %1967 = vmatpush3.bf16.msra.mxu0 %v2032_v10 }
 0xb89   :  { %1968 = vmatprep.subr.bf16.mxu0 %v2112_v15 }
 0xb8c   :  { %1969 = vmatpush3.bf16.msra.mxu0 %v2033_v58 }
 0xb8d   :  { %1970 = vmatprep.subr.bf16.mxu0 %v2112_v15 }
 0xb90   :  { %1971 = vmatpush3.bf16.msra.mxu0 %v2034_v60 }
 0xb91   :  { %1972 = vmatprep.subr.bf16.mxu0 %v2112_v15 }
 0xb94   :  { %1973 = vmatpush3.bf16.msra.mxu0 %v2035_v61 }
 0xb95   :  { %1974 = vmatprep.subr.bf16.mxu0 %v2112_v15 }
 0xb98   :  { %1975 = vmatpush3.bf16.msra.mxu0 %v2036_v62 }
 0xb99   :  { %1976 = vmatprep.subr.bf16.mxu0 %v2112_v15 }
 0xb9c   :  { %1977 = vmatpush3.bf16.msra.mxu0 %v2037_v63 }
 0xb9d   :  { %1978 = vmatprep.subr.bf16.mxu0 %v2112_v15 }
 0xba0   :  { %1979 = vmatpush3.bf16.msra.mxu0 %v2038_v2 }
 0xba1   :  { %1980 = vmatprep.subr.bf16.mxu0 %v2112_v15 }
 0xba4   :  { %1981 = vmatpush3.bf16.msra.mxu0 %v2039_v0 }
 0xc5a   :  { %v1539_v4 = vpop.f32.mrb[40].mxu0 }
 0xc5b   :  { %v1540_v5 = vadd.f32 %v1728_v3, %v1539_v4  ;;  %v1964_v6 = vpop.f32.mrb[41].mxu0 }
 0xc5c   :  { %v1542_v7 = vpop.f32.mrb[42].mxu0 }
 0xc5d   :  { %v1732_v8 = vmul.f32 -1.702, %v1540_v5  ;;  %v1543_v39 = vadd.f32 %v1728_v3, %v1542_v7  ;;  %v1965_v9 = vpop.f32.mrb[43].mxu0 }
 0xc5f   :  { %v1550_v12 = vmul.f32 1.442695, %v1732_v8  ;;  %v1733_v13 = vmul.f32 -1.702, %v1543_v39 }
 0xc61   :  { %2080 = vpow2.f32 %v1550_v12  ;;  %v1552_v15 = vmul.f32 1.442695, %v1733_v13 }
 0xc63   :  { %2082 = vpow2.f32 %v1552_v15 }
 0xc6b   :  { %v2081_v14 = vpop.eup %2080 }
 0xc6c   :  { %v1554_v16 = vadd.f32 1.0, %v2081_v14 }
 0xc6d   :  { %v2083_v17 = vpop.eup %2082 }
 0xc6e   :  { %2084 = vrcp.f32 %v1554_v16  ;;  %v1555_v18 = vadd.f32 1.0, %v2083_v17 }
 0xc70   :  { %2086 = vrcp.f32 %v1555_v18 }
 0xc78   :  { %v2085_v19 = vpop.eup %2084 }
 0xc79   :  { %v1560_v21 = vmul.f32 %v2085_v19, %v1540_v5 }
 0xc7a   :  { %v2087_v20 = vpop.eup %2086 }
 0xc7b   :  { %v1561_v22 = vmul.f32 %v2087_v20, %v1543_v39 }
 0xc7d   :  { %v1562_v23 = vpack.c.bf16 %v1561_v22, %v1560_v21 }
 0xc7f   :  { %1983 = vmatmul.mubr.bf16.vlgmr.msra.gmra.mrb[44].mxu0 %v1562_v23 }
 0xd52   :  { %v1668_v25 = vpop.f32.mrb[44].mxu0 }
 0xd53   :  { %v1669_v11 = vadd.f32 %v1734_v24, %v1668_v25  ;;  %v1984_v26 = vpop.f32.mrb[45].mxu0 }
 0xd54   :  { %v1671_v28 = vpop.f32.mrb[46].mxu0 }
 0xd55   :  { %v1675_v29 = vadd.f32 %v2459_v55, %v1669_v11  ;;  %v1672_v30 = vadd.f32 %v1734_v24, %v1671_v28  ;;  %v1985_v31 = vpop.f32.mrb[47].mxu0 }
 0xd57   :  { %1677 = vst.msk [vmem:[#allocation2] sm:$0xff] %vm50_vm0, %v1675_v29  ;;  %v1676_v32 = vadd.f32 %v2481_v27, %v1672_v30 }
 0xd59   :  { %1678 = vst.msk [vmem:[#allocation2 + $0x8] sm:$0xff] %vm50_vm0, %v1676_v32 }
 0xd5a   :  { %2099 = shalt.err (!%p2096_p4)
}
 0xd5b   :  { %s2100_s1 = scalar_lea.hbm %s2571_s13, 256 }
 0xd5c   :  { %p2101_p5 = scmp.ne.s32.totalorder %s2571_s13, %s2100_s1  ;;  %p2104_p6 = scmp.lt.u32.totalorder %s2100_s1, %s2571_s13 }
 0xd5e   :  { %p2106_p7 = pnand %p2104_p6, %p2101_p5 }
 0xd60   :  { %2109 = shalt.err (!%p2106_p7)
}
 0xd61   :  { %s2126_s21 = smov 128   ;;  %s2127_s22 = smov 8  }
 0xd62   :  { %1690 = dma.vmem_to_hbm [thread:$0]  %s1685_s8, 256, %s2571_s13, [#allocation3], %s2126_s21, %s2126_s21, %s2127_s22  }
 0xd63   :  { %2110 = dma.done.wait [#allocation3], 256  }
 0xd64   :  { %2111 = vsyncadd [#allocation3], 4294967040 }
 0xd65   :  { %1694 = vsyncpa [#allocation3], 1 }

// kernel: tpu_custom_call.1
= control target key start
LH: loop header
LB: loop body
LE: loop exit
PB: predicated region body
PF: predicated region fallthrough
CT: control target
= control target key end

     0   :  { %vm50_vm0 = vcmask 261120   ;;  %s2558_s0 = inlined_call_operand.vmem [shape: f32[2,8,32], index: 0, kind: input, shape index: {}]   ;;  %s2559_s1 = inlined_call_operand.vmem [shape: f32[1,32], index: 1, kind: input, shape index: {}]   ;;  %s2560_s2 = inlined_call_operand.vmem [shape: f32[1,32], index: 2, kind: input, shape index: {}]   ;;  %s2561_s3 = inlined_call_operand.vmem [shape: f32[1,32], index: 3, kind: input, shape index: {}]   ;;  %s2562_s4 = inlined_call_operand.vmem [shape: f32[1,32], index: 4, kind: input, shape index: {}]   ;;  %s2563_s5 = inlined_call_operand.vmem [shape: bf16[32,96], index: 5, kind: input, shape index: {}]   ;;  %s2564_s6 = inlined_call_operand.vmem [shape: f32[1,96], index: 6, kind: input, shape index: {}]   ;;  %s2565_s7 = inlined_call_operand.vmem [shape: bf16[32,32], index: 7, kind: input, shape index: {}]   ;;  %s2566_s8 = inlined_call_operand.vmem [shape: f32[1,32], index: 8, kind: input, shape index: {}]   ;;  %s2567_s9 = inlined_call_operand.vmem [shape: bf16[32,128], index: 9, kind: input, shape index: {}]   ;;  %s2568_s10 = inlined_call_operand.vmem [shape: f32[1,128], index: 10, kind: input, shape index: {}]   ;;  %s2569_s11 = inlined_call_operand.vmem [shape: bf16[128,32], index: 11, kind: input, shape index: {}]   ;;  %s2570_s12 = inlined_call_operand.vmem [shape: f32[1,32], index: 12, kind: input, shape index: {}]   ;;  %s2571_s13 = inlined_call_operand.hbm [shape: f32[2,8,32], index: 13, kind: output, shape index: {}]  }
   0x1   :  { %v2201_v0 = vld [vmem:[%s2558_s0] sm:$0xff]  ;;  %v2206_v1 = vld [vmem:[%s2558_s0 + $0x8] sm:$0xff] }
   0x2   :  { %v51_v2 = vsel %vm50_vm0, %v2201_v0, 0.0  ;;  %v54_v3 = vsel %vm50_vm0, %v2206_v1, 0.0 }
   0x3   :  { %52 = vadd.xlane.f32.xlu0 %v51_v2 }
   0x7   :  { %55 = vadd.xlane.f32.xlu0 %v54_v3 }
   0x8   :  { %18 = vsyncpa [#allocation3], 0  ;;  %v2028_v14 = vld [vmem:[%s2563_s5] sm:$0xff]   ;;  %v2112_v15 = vmov 0.0   ;;  %v2029_v16 = vld [vmem:[%s2563_s5 + $0x8] sm:$0xff]   ;;  %vm2113_vm1 = vmmov 0   ;;  %v163_v52 = vlaneseq }
   0x9   :  { %1806 = vmatprep.subr.bf16.mxu1 %v2112_v15  ;;  %1832 = vmatprep.subr.bf16.mxu0 %v2112_v15  ;;  %v1695_v25 = vld [vmem:[%s2559_s1] ss:$0 sm:$0xff]  ;;  %s2114_s1 = smov 120   ;;  %s2116_s20 = smov 80   ;;  %vm184_vm2 = vcmask 64512   ;;  %vm246_vm3 = vcmask 1043456  }
   0xa   :  { %1807 = vmatpush3.bf16.msra.mxu1 %v2028_v14  ;;  %1810 = vmatprep.mubr.msk.bf16.mxu1 %vm2113_vm1, %v2112_v15  ;;  %v1696_v29 = vld [vmem:[%s2560_s2] ss:$0 sm:$0xff]  ;;  %s2115_s2 = smov 88   ;;  %s2118_s21 = smov 112   ;;  %v164_v53 = vshrl.u32 %v163_v52, 7  ;;  %v166_v54 = vand.u32 127, %v163_v52 }
   0xb   :  { %1808 = vmatprep.subr.bf16.mxu1 %v2112_v15  ;;  %1834 = vmatprep.mubr.msk.bf16.mxu0 %vm2113_vm1, %v2112_v15  ;;  %v1697_v34 = vld [vmem:[%s2564_s6] ss:$0 sm:$0xff]  ;;  %s2117_s6 = smov 96   ;;  %s2119_s22 = smov 48  }
   0xc   :  { %vm167_vm4 = vcmp.gt.s32.totalorder %v166_v54, %v164_v53  ;;  %s2120_s23 = smov 104   ;;  %s2121_s24 = smov 72  }
   0xd   :  { %v2275_v59 = vsel %vm167_vm4, -1e+30, %v2112_v15  ;;  %s2122_s25 = smov 64   ;;  %s2123_s26 = smov 56  }
   0xe   :  { %1809 = vmatpush3.bf16.msra.mxu1 %v2029_v16  ;;  %s2124_s0 = smov 40   ;;  %s2125_s17 = smov [#allocation2]  }
   0xf   :  { %1814 = vmatprep.subr.bf16.mxu1 %v2112_v15 }
  0x90   :  { %v53_v4 = vpop.xlane.xlu0 %52 }
  0x91   :  { %v58_v5 = vmul.f32 0.03125, %v53_v4 }
  0x93   :  { %v60_v6 = vsub.f32 %v2201_v0, %v58_v5 }
  0x94   :  { %v56_v7 = vpop.xlane.xlu0 %55 }
  0x95   :  { %v59_v8 = vmul.f32 0.03125, %v56_v7  ;;  %v62_v9 = vmul.f32 %v60_v6, %v60_v6 }
  0x97   :  { %v61_v10 = vsub.f32 %v2206_v1, %v59_v8  ;;  %v64_v11 = vsel %vm50_vm0, %v62_v9, 0.0 }
  0x98   :  { %65 = vadd.xlane.f32.xlu1 %v64_v11 }
  0x99   :  { %v63_v12 = vmul.f32 %v61_v10, %v61_v10 }
  0x9b   :  { %v67_v13 = vsel %vm50_vm0, %v63_v12, 0.0 }
  0x9c   :  { %68 = vadd.xlane.f32.xlu1 %v67_v13 }
 0x125   :  { %v66_v17 = vpop.xlane.xlu1 %65 }
 0x126   :  { %v70_v18 = vmul.f32 0.03125, %v66_v17 }
 0x128   :  { %v72_v19 = vadd.f32 1e-05, %v70_v18 }
 0x129   :  { %v69_v20 = vpop.xlane.xlu1 %68 }
 0x12a   :  { %2040 = vrsqrt.f32 %v72_v19  ;;  %v71_v21 = vmul.f32 0.03125, %v69_v20 }
 0x12c   :  { %v73_v22 = vadd.f32 1e-05, %v71_v21 }
 0x12e   :  { %2042 = vrsqrt.f32 %v73_v22 }
 0x134   :  { %v2041_v23 = vpop.eup %2040 }
 0x135   :  { %v76_v24 = vmul.f32 %v2041_v23, %v60_v6 }
 0x137   :  { %v84_v28 = vmul.f32 %v1695_v25, %v76_v24 }
 0x138   :  { %v2043_v26 = vpop.eup %2042 }
 0x139   :  { %v77_v27 = vmul.f32 %v2043_v26, %v61_v10  ;;  %v92_v31 = vadd.f32 %v1696_v29, %v84_v28 }
 0x13b   :  { %v85_v30 = vmul.f32 %v1695_v25, %v77_v27 }
 0x13d   :  { %v93_v32 = vadd.f32 %v1696_v29, %v85_v30 }
 0x13f   :  { %v94_v33 = vpack.c.bf16 %v93_v32, %v92_v31 }
 0x141   :  { %1811 = vmatmul.mubr.msk.bf16.vlgmr.msra.gmra.mrb[0].mxu1 %vm50_vm0, %v94_v33  ;;  %v169_v33 = vld [vmem:[%s2565_s7] sm:$0xf] }
 0x142   :  { %1816 = vmatprep.mubr.msk.bf16.mxu1 %vm2113_vm1, %v2112_v15 }
 0x214   :  { %v155_v35 = vpop.f32.mrb[0].mxu1 }
 0x215   :  { %v1812_v36 = vpop.f32.mrb[1].mxu1  ;;  %v156_v38 = vadd.f32 %v1697_v34, %v155_v35 }
 0x216   :  { %v158_v37 = vpop.f32.mrb[2].mxu1 }
 0x217   :  { %v159_v39 = vadd.f32 %v1697_v34, %v158_v37  ;;  %v1813_v40 = vpop.f32.mrb[3].mxu1  ;;  %v2327_v34 = vsel %vm246_vm3, %v169_v33, 0 }
 0x219   :  { %v2242_v41 = vpack.c.bf16 %v159_v39, %v156_v38 }
 0x21b   :  { %340 = vrot.lane.b32.xlu1 %v2242_v41, %s2114_s1  ;;  %342 = vrot.lane.b32.xlu0 %v2242_v41, %s2115_s2  ;;  %v2286_v10 = vrot.slane %v2242_v41, 4 }
 0x21f   :  { %500 = vrot.lane.b32.xlu1 %v2242_v41, %s2116_s20  ;;  %182 = vrot.lane.b32.xlu0 %v2242_v41, %s2117_s6 }
 0x223   :  { %498 = vrot.lane.b32.xlu1 %v2242_v41, %s2118_s21  ;;  %558 = vrot.lane.b32.xlu0 %v2242_v41, %s2119_s22 }
 0x28d   :  { %v341_v42 = vpop.permute.xlu1 %340  ;;  %v343_v43 = vpop.permute.xlu0 %342 }
 0x28e   :  { %v348_v44 = vsel %vm184_vm2, %v343_v43, 0 }
 0x28f   :  { %1833 = vmatpush3.bf16.xpose.msra.mxu0 %v348_v44 }
 0x290   :  { %1850 = vmatprep.subr.bf16.mxu0 %v2112_v15 }
 0x291   :  { %v183_v45 = vpop.permute.xlu0 %182  ;;  %v501_v47 = vpop.permute.xlu1 %500 }
 0x292   :  { %v189_v46 = vsel %vm184_vm2, %v183_v45, 0  ;;  %v506_v48 = vsel %vm184_vm2, %v501_v47, 0 }
 0x293   :  { %1815 = vmatpush3.bf16.xpose.msra.mxu1 %v189_v46 }
 0x294   :  { %1820 = vmatprep.subr.bf16.mxu1 %v2112_v15 }
 0x295   :  { %v559_v49 = vpop.permute.xlu0 %558  ;;  %v499_v50 = vpop.permute.xlu1 %498 }
 0x296   :  { %1835 = vmatmul.mubr.msk.bf16.vlgmr.msra.gmra.mrb[0].mxu0 %vm184_vm2, %v341_v42  ;;  %v564_v51 = vsel %vm246_vm3, %v559_v49, 0 }
 0x297   :  { %1851 = vmatpush3.bf16.xpose.msra.mxu0 %v506_v48  ;;  %1852 = vmatprep.mubr.msk.bf16.mxu0 %vm2113_vm1, %v2112_v15 }
 0x298   :  { %1856 = vmatprep.subr.bf16.mxu0 %v2112_v15 }
 0x29a   :  { %1817 = vmatmul.mubr.msk.bf16.vlgmr.msra.gmra.mrb[4].mxu1 %vm184_vm2, %v2242_v41 }
 0x29b   :  { %1822 = vmatprep.mubr.msk.bf16.mxu1 %vm2113_vm1, %v2112_v15 }
 0x29e   :  { %1853 = vmatmul.mubr.msk.bf16.vlgmr.msra.gmra.mrb[4].mxu0 %vm184_vm2, %v499_v50 }
 0x29f   :  { %1857 = vmatpush3.bf16.msra.mxu0 %v564_v51  ;;  %1858 = vmatprep.mubr.msk.bf16.mxu0 %vm2113_vm1, %v2112_v15 }
 0x2a0   :  { %1868 = vmatprep.subr.bf16.mxu0 %v2112_v15 }
 0x369   :  { %v384_v55 = vpop.f32.mrb[0].mxu0 }
 0x36a   :  { %v1836_v56 = vpop.f32.mrb[1].mxu0  ;;  %v385_v11 = vadd.f32 %v384_v55, %v2275_v59 }
 0x36b   :  { %v387_v57 = vpop.f32.mrb[2].mxu0 }
 0x36c   :  { %v1837_v58 = vpop.f32.mrb[3].mxu0  ;;  %v390_v12 = vsel %vm184_vm2, %v385_v11, -inf }
 0x36d   :  { %v225_v60 = vpop.f32.mrb[4].mxu1 }
 0x36e   :  { %v226_v61 = vadd.f32 %v225_v60, %v2275_v59  ;;  %v1818_v62 = vpop.f32.mrb[5].mxu1 }
 0x36f   :  { %v228_v63 = vpop.f32.mrb[6].mxu1 }
 0x370   :  { %v1819_v2 = vpop.f32.mrb[7].mxu1  ;;  %v231_v3 = vsel %vm184_vm2, %v226_v61, -inf }
 0x371   :  { %v542_v4 = vpop.f32.mrb[4].mxu0  ;;  %232 = vmax.xlane.f32.xlu0 %v231_v3 }
 0x372   :  { %v543_v5 = vadd.f32 %v542_v4, %v2275_v59  ;;  %v1854_v6 = vpop.f32.mrb[5].mxu0 }
 0x373   :  { %v545_v7 = vpop.f32.mrb[6].mxu0 }
 0x374   :  { %v1855_v8 = vpop.f32.mrb[7].mxu0  ;;  %v548_v9 = vsel %vm184_vm2, %v543_v5, -inf  ;;  %v170_v7 = vld [vmem:[%s2565_s7 + $0x4] sm:$0xf] }
 0x375   :  { %549 = vmax.xlane.f32.xlu1 %v548_v9 }
 0x386   :  { %656 = vrot.lane.b32.xlu1 %v2242_v41, %s2120_s23 }
 0x387   :  { %658 = vrot.lane.b32.xlu0 %v2242_v41, %s2121_s24 }
 0x38a   :  { %816 = vrot.lane.b32.xlu1 %v2286_v10, %s2117_s6 }
 0x38e   :  { %241 = vrot.lane.b32.xlu1 %v2242_v41, %s2122_s25 }
 0x3b2   :  { %391 = vmax.xlane.f32.xlu1 %v390_v12 }
 0x3fe   :  { %v233_v13 = vpop.xlane.xlu0 %232 }
 0x3ff   :  { %v234_v14 = vsub.f32 %v226_v61, %v233_v13 }
 0x401   :  { %v235_v16 = vmul.f32 1.442695, %v234_v14 }
 0x402   :  { %v550_v17 = vpop.xlane.xlu1 %549  ;;  %v659_v27 = vpop.permute.xlu0 %658 }
 0x403   :  { %2044 = vpow2.f32 %v235_v16  ;;  %v551_v18 = vsub.f32 %v543_v5, %v550_v17  ;;  %v664_v30 = vsel %vm184_vm2, %v659_v27, 0 }
 0x405   :  { %v552_v19 = vmul.f32 1.442695, %v551_v18 }
 0x406   :  { %v657_v20 = vpop.permute.xlu1 %656 }
 0x407   :  { %2046 = vpow2.f32 %v552_v19 }
 0x40a   :  { %v817_v21 = vpop.permute.xlu1 %816 }
 0x40b   :  { %v822_v31 = vsel %vm184_vm2, %v817_v21, 0 }
 0x40d   :  { %v2045_v22 = vpop.eup %2044 }
 0x40e   :  { %v242_v23 = vpop.permute.xlu1 %241  ;;  %v237_v24 = vsel %vm184_vm2, %v2045_v22, 0.0  ;;  %v240_v28 = vpack.c.bf16 %v2045_v22, %v2045_v22 }
 0x40f   :  { %v248_v25 = vsel %vm246_vm3, %v242_v23, 0  ;;  %238 = vadd.xlane.f32.xlu0 %v237_v24 }
 0x410   :  { %1821 = vmatpush3.bf16.msra.mxu1 %v248_v25 }
 0x411   :  { %v2047_v26 = vpop.eup %2046  ;;  %1826 = vmatprep.subr.bf16.mxu1 %v2112_v15 }
 0x412   :  { %v557_v29 = vpack.c.bf16 %v2047_v26, %v2047_v26  ;;  %v554_v32 = vsel %vm184_vm2, %v2047_v26, 0.0 }
 0x413   :  { %1823 = vmatmul.mubr.msk.bf16.vlgmr.msra.gmra.mrb[8].mxu1 %vm184_vm2, %v240_v28 }
 0x414   :  { %1859 = vmatmul.mubr.msk.bf16.vlgmr.msra.gmra.mrb[8].mxu0 %vm184_vm2, %v557_v29  ;;  %1828 = vmatprep.mubr.msk.bf16.mxu1 %vm2113_vm1, %v2112_v15 }
 0x415   :  { %1869 = vmatpush3.bf16.xpose.msra.mxu0 %v664_v30  ;;  %1870 = vmatprep.mubr.msk.bf16.mxu0 %vm2113_vm1, %v2112_v15 }
 0x416   :  { %1886 = vmatprep.subr.bf16.mxu0 %v2112_v15  ;;  %1827 = vmatpush3.bf16.msra.mxu1 %v2327_v34 }
 0x417   :  { %1838 = vmatprep.subr.bf16.mxu1 %v2112_v15 }
 0x41c   :  { %1871 = vmatmul.mubr.msk.bf16.vlgmr.msra.gmra.mrb[12].mxu0 %vm184_vm2, %v657_v20 }
 0x41d   :  { %1887 = vmatpush3.bf16.xpose.msra.mxu0 %v822_v31  ;;  %1888 = vmatprep.mubr.msk.bf16.mxu0 %vm2113_vm1, %v2112_v15 }
 0x41e   :  { %1892 = vmatprep.subr.bf16.mxu0 %v2112_v15 }
 0x424   :  { %1889 = vmatmul.mubr.msk.bf16.vlgmr.msra.gmra.mrb[16].mxu0 %vm184_vm2, %v2286_v10 }
 0x425   :  { %400 = vrot.lane.b32.xlu0 %v2242_v41, %s2123_s26  ;;  %1894 = vmatprep.mubr.msk.bf16.mxu0 %vm2113_vm1, %v2112_v15 }
 0x429   :  { %971 = vrot.lane.b32.xlu0 %v2286_v10, %s2115_s2 }
 0x42d   :  { %969 = vrot.lane.b32.xlu0 %v2286_v10, %s2114_s1 }
 0x431   :  { %1124 = vrot.lane.b32.xlu0 %v2286_v10, %s2118_s21 }
 0x43f   :  { %v392_v35 = vpop.xlane.xlu1 %391 }
 0x440   :  { %v393_v37 = vsub.f32 %v385_v11, %v392_v35  ;;  %v171_v35 = vld [vmem:[%s2565_s7 + $0x8] sm:$0xf] }
 0x442   :  { %v394_v38 = vmul.f32 1.442695, %v393_v37 }
 0x450   :  { %555 = vadd.xlane.f32.xlu0 %v554_v32 }
 0x49c   :  { %v239_v36 = vpop.xlane.xlu0 %238 }
 0x49d   :  { %2048 = vrcp.f32 %v239_v36 }
 0x49e   :  { %2050 = vpow2.f32 %v394_v38 }
 0x4a0   :  { %v401_v40 = vpop.permute.xlu0 %400 }
 0x4a1   :  { %v406_v52 = vsel %vm246_vm3, %v401_v40, 0 }
 0x4a4   :  { %v972_v16 = vpop.permute.xlu0 %971 }
 0x4a5   :  { %v977_v19 = vsel %vm184_vm2, %v972_v16, 0 }
 0x4a7   :  { %v2049_v39 = vpop.eup %2048 }
 0x4a8   :  { %v2051_v53 = vpop.eup %2050  ;;  %v970_v21 = vpop.permute.xlu0 %969 }
 0x4a9   :  { %v399_v58 = vpack.c.bf16 %v2051_v53, %v2051_v53  ;;  %v396_v6 = vsel %vm184_vm2, %v2051_v53, 0.0 }
 0x4ac   :  { %v1125_v23 = vpop.permute.xlu0 %1124 }
 0x4dd   :  { %v556_v28 = vpop.xlane.xlu0 %555 }
 0x4e6   :  { %v284_v42 = vpop.f32.mrb[8].mxu1 }
 0x4e7   :  { %v291_v43 = vmul.f32 %v2049_v39, %v284_v42  ;;  %v1824_v44 = vpop.f32.mrb[9].mxu1  ;;  %v2331_v45 = vpop.f32.mrb[8].mxu0  ;;  %v2390_v39 = vsel %vm246_vm3, %v171_v35, 0 }
 0x4e8   :  { %v287_v46 = vpop.f32.mrb[10].mxu1  ;;  %v1860_v47 = vpop.f32.mrb[9].mxu0 }
 0x4e9   :  { %v292_v48 = vpack.c.bf16 %v291_v43, %v291_v43  ;;  %v1825_v49 = vpop.f32.mrb[11].mxu1  ;;  %v603_v50 = vpop.f32.mrb[10].mxu0 }
 0x4ea   :  { %v1861_v51 = vpop.f32.mrb[11].mxu0 }
 0x4eb   :  { %1829 = vmatmul.mubr.msk.bf16.vlgmr.msra.gmra.mrb[12].mxu1 %vm184_vm2, %v292_v48 }
 0x4ec   :  { %1839 = vmatpush3.bf16.msra.mxu1 %v406_v52  ;;  %1840 = vmatprep.mubr.msk.bf16.mxu1 %vm2113_vm1, %v2112_v15 }
 0x4ed   :  { %1844 = vmatprep.subr.bf16.mxu1 %v2112_v15 }
 0x4ef   :  { %v700_v54 = vpop.f32.mrb[12].mxu0 }
 0x4f0   :  { %v2339_v55 = vadd.f32 %v700_v54, %v2275_v59  ;;  %v1872_v56 = vpop.f32.mrb[13].mxu0 }
 0x4f1   :  { %v703_v57 = vpop.f32.mrb[14].mxu0 }
 0x4f2   :  { %v1873_v60 = vpop.f32.mrb[15].mxu0  ;;  %v706_v61 = vsel %vm184_vm2, %v2339_v55, -inf }
 0x4f3   :  { %707 = vmax.xlane.f32.xlu0 %v706_v61  ;;  %1841 = vmatmul.mubr.msk.bf16.vlgmr.msra.gmra.mrb[16].mxu1 %vm184_vm2, %v399_v58 }
 0x4f4   :  { %1846 = vmatprep.mubr.msk.bf16.mxu1 %vm2113_vm1, %v2112_v15 }
 0x4f7   :  { %v858_v62 = vpop.f32.mrb[16].mxu0 }
 0x4f8   :  { %v859_v63 = vadd.f32 %v858_v62, %v2275_v59  ;;  %v1890_v2 = vpop.f32.mrb[17].mxu0 }
 0x4f9   :  { %v861_v3 = vpop.f32.mrb[18].mxu0 }
 0x4fa   :  { %v1891_v4 = vpop.f32.mrb[19].mxu0  ;;  %v864_v5 = vsel %vm184_vm2, %v859_v63, -inf }
 0x4fb   :  { %865 = vmax.xlane.f32.xlu1 %v864_v5 }
 0x509   :  { %716 = vrot.lane.b32.xlu0 %v2242_v41, %s2124_s0  ;;  %v2363_v41 = vsel %vm246_vm3, %v170_v7, 0 }
 0x50a   :  { %1845 = vmatpush3.bf16.msra.mxu1 %v2363_v41 }
 0x50b   :  { %1862 = vmatprep.subr.bf16.mxu1 %v2112_v15 }
 0x50c   :  { %874 = vrot.lane.b32.xlu1 %v2286_v10, %s2122_s25 }
 0x50d   :  { %1279 = vrot.lane.b32.xlu0 %v2286_v10, %s2120_s23 }
 0x510   :  { %1126 = vrot.lane.b32.xlu1 %v2286_v10, %s2116_s20 }
 0x534   :  { %397 = vadd.xlane.f32.xlu1 %v396_v6 }
 0x545   :  { %1184 = vrot.lane.b32.xlu1 %v2286_v10, %s2119_s22 }
 0x580   :  { %v708_v32 = vpop.xlane.xlu0 %707 }
 0x581   :  { %v709_v37 = vsub.f32 %v2339_v55, %v708_v32 }
 0x583   :  { %v710_v40 = vmul.f32 1.442695, %v709_v37 }
 0x584   :  { %v717_v44 = vpop.permute.xlu0 %716 }
 0x585   :  { %v722_v47 = vsel %vm246_vm3, %v717_v44, 0 }
 0x588   :  { %v866_v8 = vpop.xlane.xlu1 %865 }
 0x589   :  { %v867_v9 = vsub.f32 %v859_v63, %v866_v8 }
 0x58b   :  { %v868_v11 = vmul.f32 1.442695, %v867_v9  ;;  %v172_v9 = vld [vmem:[%s2565_s7 + $0xc] sm:$0xf] }
 0x58c   :  { %v875_v12 = vpop.permute.xlu1 %874 }
 0x58d   :  { %2052 = vpow2.f32 %v868_v11  ;;  %v880_v13 = vsel %vm246_vm3, %v875_v12, 0  ;;  %v2421_v11 = vsel %vm246_vm3, %v172_v9, 0  ;;  %v1280_v12 = vpop.permute.xlu0 %1279 }
 0x58e   :  { %1893 = vmatpush3.bf16.msra.mxu0 %v880_v13 }
 0x58f   :  { %1904 = vmatprep.subr.bf16.mxu0 %v2112_v15 }
 0x590   :  { %v1127_v20 = vpop.permute.xlu1 %1126 }
 0x591   :  { %v1132_v22 = vsel %vm184_vm2, %v1127_v20, 0 }
 0x597   :  { %v2053_v14 = vpop.eup %2052 }
 0x598   :  { %v870_v17 = vsel %vm184_vm2, %v2053_v14, 0.0  ;;  %v873_v18 = vpack.c.bf16 %v2053_v14, %v2053_v14 }
 0x599   :  { %871 = vadd.xlane.f32.xlu0 %v870_v17 }
 0x59a   :  { %1895 = vmatmul.mubr.msk.bf16.vlgmr.msra.gmra.mrb[20].mxu0 %vm184_vm2, %v873_v18 }
 0x59b   :  { %1905 = vmatpush3.bf16.xpose.msra.mxu0 %v977_v19  ;;  %1906 = vmatprep.mubr.msk.bf16.mxu0 %vm2113_vm1, %v2112_v15 }
 0x59c   :  { %1922 = vmatprep.subr.bf16.mxu0 %v2112_v15 }
 0x5a2   :  { %1907 = vmatmul.mubr.msk.bf16.vlgmr.msra.gmra.mrb[24].mxu0 %vm184_vm2, %v970_v21 }
 0x5a3   :  { %1923 = vmatpush3.bf16.xpose.msra.mxu0 %v1132_v22  ;;  %1924 = vmatprep.mubr.msk.bf16.mxu0 %vm2113_vm1, %v2112_v15 }
 0x5a4   :  { %1928 = vmatprep.subr.bf16.mxu0 %v2112_v15 }
 0x5aa   :  { %1925 = vmatmul.mubr.msk.bf16.vlgmr.msra.gmra.mrb[28].mxu0 %vm184_vm2, %v1125_v23 }
 0x5ab   :  { %1930 = vmatprep.mubr.msk.bf16.mxu0 %vm2113_vm1, %v2112_v15 }
 0x5c1   :  { %v398_v24 = vpop.xlane.xlu1 %397 }
 0x5c2   :  { %2054 = vrcp.f32 %v398_v24 }
 0x5c3   :  { %2056 = vrcp.f32 %v556_v28 }
 0x5c4   :  { %2058 = vpow2.f32 %v710_v40 }
 0x5c5   :  { %v1185_v25 = vpop.permute.xlu1 %1184 }
 0x5c6   :  { %v1190_v26 = vsel %vm246_vm3, %v1185_v25, 0  ;;  %v442_v27 = vpop.f32.mrb[16].mxu1 }
 0x5c7   :  { %v1842_v29 = vpop.f32.mrb[17].mxu1  ;;  %1929 = vmatpush3.bf16.msra.mxu0 %v1190_v26 }
 0x5c8   :  { %v445_v30 = vpop.f32.mrb[18].mxu1  ;;  %1940 = vmatprep.subr.bf16.mxu0 %v2112_v15 }
 0x5c9   :  { %v1843_v31 = vpop.f32.mrb[19].mxu1 }
 0x5cc   :  { %v2055_v33 = vpop.eup %2054 }
 0x5cd   :  { %v449_v36 = vmul.f32 %v2055_v33, %v442_v27  ;;  %v2057_v42 = vpop.eup %2056 }
 0x5ce   :  { %v607_v43 = vmul.f32 %v2057_v42, %v2331_v45  ;;  %v2059_v48 = vpop.eup %2058 }
 0x5cf   :  { %v450_v38 = vpack.c.bf16 %v449_v36, %v449_v36  ;;  %v715_v49 = vpack.c.bf16 %v2059_v48, %v2059_v48  ;;  %v712_v4 = vsel %vm184_vm2, %v2059_v48, 0.0 }
 0x5d0   :  { %v608_v46 = vpack.c.bf16 %v607_v43, %v607_v43 }
 0x5d1   :  { %1847 = vmatmul.mubr.msk.bf16.vlgmr.msra.gmra.mrb[12].mxu1 %vm184_vm2, %v450_v38 }
 0x5d2   :  { %1863 = vmatpush3.bf16.msra.mxu1 %v2390_v39  ;;  %1864 = vmatprep.mubr.msk.bf16.mxu1 %vm2113_vm1, %v2112_v15 }
 0x5d3   :  { %1874 = vmatprep.subr.bf16.mxu1 %v2112_v15 }
 0x5dd   :  { %1865 = vmatmul.mubr.msk.bf16.vlgmr.msra.gmra.mrb[12].mxu1 %vm184_vm2, %v608_v46 }
 0x5de   :  { %1875 = vmatpush3.bf16.msra.mxu1 %v722_v47  ;;  %1876 = vmatprep.mubr.msk.bf16.mxu1 %vm2113_vm1, %v2112_v15 }
 0x5df   :  { %1880 = vmatprep.subr.bf16.mxu1 %v2112_v15 }
 0x5e5   :  { %1877 = vmatmul.mubr.msk.bf16.vlgmr.msra.gmra.mrb[20].mxu1 %vm184_vm2, %v715_v49 }
 0x5e6   :  { %1882 = vmatprep.mubr.msk.bf16.mxu1 %vm2113_vm1, %v2112_v15  ;;  %1881 = vmatpush3.bf16.msra.mxu1 %v2421_v11 }
 0x5e7   :  { %1898 = vmatprep.subr.bf16.mxu1 %v2112_v15 }
 0x626   :  { %v872_v13 = vpop.xlane.xlu0 %871 }
 0x66d   :  { %v2406_v45 = vpop.f32.mrb[20].mxu0 }
 0x66e   :  { %v1896_v50 = vpop.f32.mrb[21].mxu0 }
 0x66f   :  { %v919_v51 = vpop.f32.mrb[22].mxu0 }
 0x670   :  { %v1897_v52 = vpop.f32.mrb[23].mxu0  ;;  %v1701_v51 = vld [vmem:[%s2566_s8] ss:$0 sm:$0xff]  ;;  %s1684_s8 = sshll.u32 %s2125_s17, 4  ;;  %s1685_s8 = int_to_ptr.vmem [resolvable:$true] %s1684_s8 }
 0x671   :  { %s2088_s18 = scalar_lea.vmem %s1685_s8, 256  ;;  %p2093_p1 = scmp.lt.s32.totalorder %s1685_s8, %s1685_s8 }
 0x672   :  { %p2089_p0 = scmp.ne.s32.totalorder %s1685_s8, %s2088_s18  ;;  %p2094_p2 = scmp.lt.s32.totalorder %s2088_s18, %s2088_s18 }
 0x674   :  { %p2095_p3 = por %p2094_p2, %p2093_p1 }
 0x675   :  { %v1013_v53 = vpop.f32.mrb[24].mxu0 }
 0x676   :  { %v1014_v54 = vadd.f32 %v1013_v53, %v2275_v59  ;;  %v1908_v55 = vpop.f32.mrb[25].mxu0  ;;  %p2096_p4 = pnand %p2095_p3, %p2089_p0 }
 0x677   :  { %v1016_v56 = vpop.f32.mrb[26].mxu0 }
 0x678   :  { %v1909_v57 = vpop.f32.mrb[27].mxu0  ;;  %v1019_v58 = vsel %vm184_vm2, %v1014_v54, -inf }
 0x679   :  { %1020 = vmax.xlane.f32.xlu0 %v1019_v58 }
 0x67d   :  { %v1168_v60 = vpop.f32.mrb[28].mxu0 }
 0x67e   :  { %v1169_v61 = vadd.f32 %v1168_v60, %v2275_v59  ;;  %v1926_v62 = vpop.f32.mrb[29].mxu0 }
 0x67f   :  { %v1171_v63 = vpop.f32.mrb[30].mxu0 }
 0x680   :  { %v1927_v2 = vpop.f32.mrb[31].mxu0  ;;  %v1174_v3 = vsel %vm184_vm2, %v1169_v61, -inf }
 0x681   :  { %1175 = vmax.xlane.f32.xlu1 %v1174_v3 }
 0x68f   :  { %1029 = vrot.lane.b32.xlu0 %v2286_v10, %s2123_s26 }
 0x692   :  { %1281 = vrot.lane.b32.xlu1 %v2286_v10, %s2121_s24 }
 0x6b6   :  { %713 = vadd.xlane.f32.xlu1 %v712_v4 }
 0x6b8   :  { %v758_v5 = vpop.f32.mrb[20].mxu1 }
 0x6b9   :  { %v1878_v6 = vpop.f32.mrb[21].mxu1 }
 0x6ba   :  { %v761_v7 = vpop.f32.mrb[22].mxu1 }
 0x6bb   :  { %v1879_v8 = vpop.f32.mrb[23].mxu1 }
 0x706   :  { %v1021_v14 = vpop.xlane.xlu0 %1020 }
 0x707   :  { %v1022_v16 = vsub.f32 %v1014_v54, %v1021_v14 }
 0x709   :  { %v1023_v17 = vmul.f32 1.442695, %v1022_v16 }
 0x70a   :  { %v1030_v35 = vpop.permute.xlu0 %1029 }
 0x70b   :  { %2060 = vpow2.f32 %v1023_v17  ;;  %v1035_v37 = vsel %vm246_vm3, %v1030_v35, 0 }
 0x70e   :  { %v1176_v18 = vpop.xlane.xlu1 %1175 }
 0x70f   :  { %v1177_v19 = vsub.f32 %v1169_v61, %v1176_v18 }
 0x711   :  { %v1178_v20 = vmul.f32 1.442695, %v1177_v19 }
 0x712   :  { %v1282_v24 = vpop.permute.xlu1 %1281 }
 0x713   :  { %2062 = vpow2.f32 %v1178_v20  ;;  %v1287_v27 = vsel %vm184_vm2, %v1282_v24, 0 }
 0x715   :  { %v2061_v21 = vpop.eup %2060 }
 0x716   :  { %v1025_v22 = vsel %vm184_vm2, %v2061_v21, 0.0 }
 0x717   :  { %1026 = vadd.xlane.f32.xlu1 %v1025_v22 }
 0x71d   :  { %v2063_v23 = vpop.eup %2062 }
 0x71e   :  { %v1180_v25 = vsel %vm184_vm2, %v2063_v23, 0.0  ;;  %v1183_v26 = vpack.c.bf16 %v2063_v23, %v2063_v23 }
 0x71f   :  { %1181 = vadd.xlane.f32.xlu1 %v1180_v25  ;;  %v814_v25 = vadd.f32 %v1701_v51, %v2206_v1 }
 0x720   :  { %1931 = vmatmul.mubr.msk.bf16.vlgmr.msra.gmra.mrb[32].mxu0 %vm184_vm2, %v1183_v26 }
 0x721   :  { %1941 = vmatpush3.bf16.xpose.msra.mxu0 %v1287_v27  ;;  %1942 = vmatprep.mubr.msk.bf16.mxu0 %vm2113_vm1, %v2112_v15 }
 0x722   :  { %1958 = vmatprep.subr.bf16.mxu0 %v2112_v15 }
 0x728   :  { %1943 = vmatmul.mubr.msk.bf16.vlgmr.msra.gmra.mrb[36].mxu0 %vm184_vm2, %v1280_v12 }
 0x729   :  { %1962 = vmatprep.mubr.msk.bf16.mxu0 %vm2113_vm1, %v2112_v15 }
 0x743   :  { %v714_v28 = vpop.xlane.xlu1 %713 }
 0x744   :  { %2064 = vrcp.f32 %v714_v28 }
 0x745   :  { %2066 = vrcp.f32 %v872_v13 }
 0x74e   :  { %v2065_v29 = vpop.eup %2064 }
 0x74f   :  { %v765_v30 = vmul.f32 %v2065_v29, %v758_v5  ;;  %v2067_v32 = vpop.eup %2066 }
 0x750   :  { %v923_v33 = vmul.f32 %v2067_v32, %v2406_v45 }
 0x751   :  { %v766_v31 = vpack.c.bf16 %v765_v30, %v765_v30 }
 0x752   :  { %v924_v36 = vpack.c.bf16 %v923_v33, %v923_v33 }
 0x753   :  { %1883 = vmatmul.mubr.msk.bf16.vlgmr.msra.gmra.mrb[12].mxu1 %vm184_vm2, %v766_v31 }
 0x754   :  { %1899 = vmatpush3.bf16.msra.mxu1 %v2327_v34  ;;  %1900 = vmatprep.mubr.msk.bf16.mxu1 %vm2113_vm1, %v2112_v15  ;;  %v1028_v34 = vpack.c.bf16 %v2061_v21, %v2061_v21 }
 0x755   :  { %1910 = vmatprep.subr.bf16.mxu1 %v2112_v15 }
 0x75b   :  { %1901 = vmatmul.mubr.msk.bf16.vlgmr.msra.gmra.mrb[24].mxu1 %vm184_vm2, %v924_v36 }
 0x75c   :  { %1911 = vmatpush3.bf16.msra.mxu1 %v1035_v37  ;;  %1912 = vmatprep.mubr.msk.bf16.mxu1 %vm2113_vm1, %v2112_v15 }
 0x75d   :  { %1916 = vmatprep.subr.bf16.mxu1 %v2112_v15 }
 0x763   :  { %1913 = vmatmul.mubr.msk.bf16.vlgmr.msra.gmra.mrb[28].mxu1 %vm184_vm2, %v1028_v34 }
 0x764   :  { %1917 = vmatpush3.bf16.msra.mxu1 %v2363_v41  ;;  %1918 = vmatprep.mubr.msk.bf16.mxu1 %vm2113_vm1, %v2112_v15 }
 0x765   :  { %1934 = vmatprep.subr.bf16.mxu1 %v2112_v15 }
 0x7a4   :  { %v1027_v53 = vpop.xlane.xlu1 %1026 }
 0x7a5   :  { %2068 = vrcp.f32 %v1027_v53  ;;  %v1727_v53 = vld [vmem:[%s2562_s4] ss:$0 sm:$0xff] }
 0x7ac   :  { %v1182_v56 = vpop.xlane.xlu1 %1181 }
 0x7ad   :  { %2070 = vrcp.f32 %v1182_v56 }
 0x7f3   :  { %v1226_v38 = vpop.f32.mrb[32].mxu0 }
 0x7f4   :  { %v1932_v40 = vpop.f32.mrb[33].mxu0 }
 0x7f5   :  { %v1229_v42 = vpop.f32.mrb[34].mxu0  ;;  %v2031_v40 = vld [vmem:[%s2567_s9 + $0x8] sm:$0xff]  }
 0x7f6   :  { %v1933_v43 = vpop.f32.mrb[35].mxu0 }
 0x7fb   :  { %v1323_v44 = vpop.f32.mrb[36].mxu0 }
 0x7fc   :  { %v1324_v46 = vadd.f32 %v1323_v44, %v2275_v59  ;;  %v1944_v47 = vpop.f32.mrb[37].mxu0  ;;  %v180_v59 = vadd.f32 %v1701_v51, %v2201_v0 }
 0x7fd   :  { %v1326_v48 = vpop.f32.mrb[38].mxu0 }
 0x7fe   :  { %v1945_v49 = vpop.f32.mrb[39].mxu0  ;;  %v1329_v45 = vsel %vm184_vm2, %v1324_v46, -inf }
 0x7ff   :  { %1330 = vmax.xlane.f32.xlu1 %v1329_v45 }
 0x810   :  { %1339 = vrot.lane.b32.xlu1 %v2286_v10, %s2124_s0  ;;  %v2069_v10 = vpop.eup %2068 }
 0x811   :  { %v2071_v0 = vpop.eup %2070 }
 0x812   :  { %v1233_v3 = vmul.f32 %v2071_v0, %v1226_v38  ;;  %v2030_v38 = vld [vmem:[%s2567_s9] sm:$0xff]   ;;  %v2039_v0 = vld [vmem:[%s2569_s11 + $0x38] sm:$0xff]  }
 0x813   :  { %1959 = vmatpush3.bf16.msra.mxu0 %v2030_v38 }
 0x814   :  { %v1234_v4 = vpack.c.bf16 %v1233_v3, %v1233_v3  ;;  %1960 = vmatprep.subr.bf16.mxu0 %v2112_v15  ;;  %v1728_v3 = vld [vmem:[%s2568_s10] ss:$0 sm:$0xff] }
 0x817   :  { %1961 = vmatpush3.bf16.msra.mxu0 %v2031_v40 }
 0x818   :  { %1966 = vmatprep.subr.bf16.mxu0 %v2112_v15 }
 0x826   :  { %v807_v41 = vpop.f32.mrb[12].mxu1 }
 0x827   :  { %v1884_v50 = vpop.f32.mrb[13].mxu1  ;;  %v2459_v55 = vadd.f32 %v807_v41, %v180_v59  ;;  %v1726_v41 = vld [vmem:[%s2561_s3] ss:$0 sm:$0xff] }
 0x828   :  { %v810_v52 = vpop.f32.mrb[14].mxu1 }
 0x829   :  { %v1885_v54 = vpop.f32.mrb[15].mxu1  ;;  %v1436_v57 = vsel %vm50_vm0, %v2459_v55, 0.0 }
 0x834   :  { %1437 = vadd.xlane.f32.xlu1 %v1436_v57 }
 0x836   :  { %v1071_v58 = vpop.f32.mrb[28].mxu1 }
 0x837   :  { %v1078_v60 = vmul.f32 %v2069_v10, %v1071_v58  ;;  %v1914_v61 = vpop.f32.mrb[29].mxu1  ;;  %v2032_v10 = vld [vmem:[%s2569_s11] sm:$0xff]   ;;  %v2033_v58 = vld [vmem:[%s2569_s11 + $0x8] sm:$0xff]  }
 0x838   :  { %v1074_v62 = vpop.f32.mrb[30].mxu1  ;;  %v2035_v61 = vld [vmem:[%s2569_s11 + $0x18] sm:$0xff]  }
 0x839   :  { %v1079_v63 = vpack.c.bf16 %v1078_v60, %v1078_v60  ;;  %v1915_v2 = vpop.f32.mrb[31].mxu1  ;;  %v2034_v60 = vld [vmem:[%s2569_s11 + $0x10] sm:$0xff]   ;;  %v2036_v62 = vld [vmem:[%s2569_s11 + $0x20] sm:$0xff]  }
 0x83a   :  { %v2038_v2 = vld [vmem:[%s2569_s11 + $0x30] sm:$0xff]  }
 0x83b   :  { %1919 = vmatmul.mubr.msk.bf16.vlgmr.msra.gmra.mrb[24].mxu1 %vm184_vm2, %v1079_v63  ;;  %v2037_v63 = vld [vmem:[%s2569_s11 + $0x28] sm:$0xff]  }
 0x83c   :  { %1935 = vmatpush3.bf16.msra.mxu1 %v2390_v39  ;;  %1936 = vmatprep.mubr.msk.bf16.mxu1 %vm2113_vm1, %v2112_v15 }
 0x83d   :  { %1946 = vmatprep.subr.bf16.mxu1 %v2112_v15 }
 0x847   :  { %1937 = vmatmul.mubr.msk.bf16.vlgmr.msra.gmra.mrb[24].mxu1 %vm184_vm2, %v1234_v4 }
 0x848   :  { %1948 = vmatprep.mubr.msk.bf16.mxu1 %vm2113_vm1, %v2112_v15 }
 0x88c   :  { %v1331_v5 = vpop.xlane.xlu1 %1330 }
 0x88d   :  { %v1332_v6 = vsub.f32 %v1324_v46, %v1331_v5 }
 0x88f   :  { %v1333_v7 = vmul.f32 1.442695, %v1332_v6 }
 0x890   :  { %v1340_v8 = vpop.permute.xlu1 %1339 }
 0x891   :  { %2072 = vpow2.f32 %v1333_v7  ;;  %v1345_v39 = vsel %vm246_vm3, %v1340_v8, 0 }
 0x892   :  { %1947 = vmatpush3.bf16.msra.mxu1 %v1345_v39 }
 0x893   :  { %1952 = vmatprep.subr.bf16.mxu1 %v2112_v15 }
 0x89b   :  { %v2073_v9 = vpop.eup %2072 }
 0x89c   :  { %v1335_v12 = vsel %vm184_vm2, %v2073_v9, 0.0  ;;  %v1338_v13 = vpack.c.bf16 %v2073_v9, %v2073_v9 }
 0x89d   :  { %1336 = vadd.xlane.f32.xlu0 %v1335_v12 }
 0x89e   :  { %1949 = vmatmul.mubr.msk.bf16.vlgmr.msra.gmra.mrb[32].mxu1 %vm184_vm2, %v1338_v13 }
 0x89f   :  { %1953 = vmatpush3.bf16.msra.mxu1 %v2421_v11  ;;  %1954 = vmatprep.mubr.msk.bf16.mxu1 %vm2113_vm1, %v2112_v15 }
 0x8c1   :  { %v1438_v23 = vpop.xlane.xlu1 %1437 }
 0x8c2   :  { %v1442_v24 = vmul.f32 0.03125, %v1438_v23 }
 0x8c4   :  { %v1444_v11 = vsub.f32 %v2459_v55, %v1442_v24  ;;  %v1734_v24 = vld [vmem:[%s2570_s12] ss:$0 sm:$0xff] }
 0x8c6   :  { %v1446_v32 = vmul.f32 %v1444_v11, %v1444_v11 }
 0x8c8   :  { %v1448_v33 = vsel %vm50_vm0, %v1446_v32, 0.0 }
 0x92a   :  { %v1337_v14 = vpop.xlane.xlu0 %1336 }
 0x92b   :  { %2074 = vrcp.f32 %v1337_v14 }
 0x935   :  { %v2075_v16 = vpop.eup %2074 }
 0x971   :  { %v1381_v17 = vpop.f32.mrb[32].mxu1 }
 0x972   :  { %v1388_v18 = vmul.f32 %v2075_v16, %v1381_v17  ;;  %v1950_v19 = vpop.f32.mrb[33].mxu1 }
 0x973   :  { %v1384_v20 = vpop.f32.mrb[34].mxu1 }
 0x974   :  { %v1389_v21 = vpack.c.bf16 %v1388_v18, %v1388_v18  ;;  %v1951_v22 = vpop.f32.mrb[35].mxu1 }
 0x976   :  { %1955 = vmatmul.mubr.msk.bf16.vlgmr.msra.gmra.mrb[24].mxu1 %vm184_vm2, %v1389_v21 }
 0xa49   :  { %v1427_v26 = vpop.f32.mrb[24].mxu1 }
 0xa4a   :  { %v2481_v27 = vadd.f32 %v1427_v26, %v814_v25  ;;  %v1956_v28 = vpop.f32.mrb[25].mxu1 }
 0xa4b   :  { %v1430_v29 = vpop.f32.mrb[26].mxu1 }
 0xa4c   :  { %v1957_v30 = vpop.f32.mrb[27].mxu1  ;;  %v1439_v31 = vsel %vm50_vm0, %v2481_v27, 0.0 }
 0xa4d   :  { %1440 = vadd.xlane.f32.xlu0 %v1439_v31 }
 0xa51   :  { %1449 = vadd.xlane.f32.xlu0 %v1448_v33 }
 0xada   :  { %v1441_v35 = vpop.xlane.xlu0 %1440 }
 0xadb   :  { %v1443_v36 = vmul.f32 0.03125, %v1441_v35 }
 0xadd   :  { %v1445_v1 = vsub.f32 %v2481_v27, %v1443_v36 }
 0xade   :  { %v1450_v42 = vpop.xlane.xlu0 %1449 }
 0xadf   :  { %v1447_v37 = vmul.f32 %v1445_v1, %v1445_v1  ;;  %v1454_v43 = vmul.f32 0.03125, %v1450_v42 }
 0xae1   :  { %v1451_v34 = vsel %vm50_vm0, %v1447_v37, 0.0  ;;  %v1456_v44 = vadd.f32 1e-05, %v1454_v43 }
 0xae2   :  { %1452 = vadd.xlane.f32.xlu0 %v1451_v34 }
 0xae3   :  { %2076 = vrsqrt.f32 %v1456_v44 }
 0xaed   :  { %v2077_v49 = vpop.eup %2076 }
 0xaee   :  { %v1460_v45 = vmul.f32 %v2077_v49, %v1444_v11 }
 0xaf0   :  { %v1468_v51 = vmul.f32 %v1726_v41, %v1460_v45 }
 0xaf2   :  { %v1476_v59 = vadd.f32 %v1727_v53, %v1468_v51 }
 0xb6f   :  { %v1453_v46 = vpop.xlane.xlu0 %1452 }
 0xb70   :  { %v1455_v47 = vmul.f32 0.03125, %v1453_v46 }
 0xb72   :  { %v1457_v48 = vadd.f32 1e-05, %v1455_v47 }
 0xb74   :  { %2078 = vrsqrt.f32 %v1457_v48 }
 0xb7e   :  { %v2079_v50 = vpop.eup %2078 }
 0xb7f   :  { %v1461_v52 = vmul.f32 %v2079_v50, %v1445_v1 }
 0xb81   :  { %v1469_v54 = vmul.f32 %v1726_v41, %v1461_v52 }
 0xb83   :  { %v1477_v56 = vadd.f32 %v1727_v53, %v1469_v54 }
 0xb85   :  { %v1478_v57 = vpack.c.bf16 %v1477_v56, %v1476_v59 }
 0xb87   :  { %1963 = vmatmul.mubr.msk.bf16.vlgmr.msra.gmra.mrb[40].mxu0 %vm50_vm0, %v1478_v57 }
 0xb88   :  { %1982 = vmatprep.mubr.msk.bf16.mxu0 %vm2113_vm1, %v2112_v15  ;;  %1967 = vmatpush3.bf16.msra.mxu0 %v2032_v10 }
 0xb89   :  { %1968 = vmatprep.subr.bf16.mxu0 %v2112_v15 }
 0xb8c   :  { %1969 = vmatpush3.bf16.msra.mxu0 %v2033_v58 }
 0xb8d   :  { %1970 = vmatprep.subr.bf16.mxu0 %v2112_v15 }
 0xb90   :  { %1971 = vmatpush3.bf16.msra.mxu0 %v2034_v60 }
 0xb91   :  { %1972 = vmatprep.subr.bf16.mxu0 %v2112_v15 }
 0xb94   :  { %1973 = vmatpush3.bf16.msra.mxu0 %v2035_v61 }
 0xb95   :  { %1974 = vmatprep.subr.bf16.mxu0 %v2112_v15 }
 0xb98   :  { %1975 = vmatpush3.bf16.msra.mxu0 %v2036_v62 }
 0xb99   :  { %1976 = vmatprep.subr.bf16.mxu0 %v2112_v15 }
 0xb9c   :  { %1977 = vmatpush3.bf16.msra.mxu0 %v2037_v63 }
 0xb9d   :  { %1978 = vmatprep.subr.bf16.mxu0 %v2112_v15 }
 0xba0   :  { %1979 = vmatpush3.bf16.msra.mxu0 %v2038_v2 }
 0xba1   :  { %1980 = vmatprep.subr.bf16.mxu0 %v2112_v15 }
 0xba4   :  { %1981 = vmatpush3.bf16.msra.mxu0 %v2039_v0 }
 0xc5a   :  { %v1539_v4 = vpop.f32.mrb[40].mxu0 }
 0xc5b   :  { %v1540_v5 = vadd.f32 %v1728_v3, %v1539_v4  ;;  %v1964_v6 = vpop.f32.mrb[41].mxu0 }
 0xc5c   :  { %v1542_v7 = vpop.f32.mrb[42].mxu0 }
 0xc5d   :  { %v1732_v8 = vmul.f32 -1.702, %v1540_v5  ;;  %v1543_v39 = vadd.f32 %v1728_v3, %v1542_v7  ;;  %v1965_v9 = vpop.f32.mrb[43].mxu0 }
 0xc5f   :  { %v1550_v12 = vmul.f32 1.442695, %v1732_v8  ;;  %v1733_v13 = vmul.f32 -1.702, %v1543_v39 }
 0xc61   :  { %2080 = vpow2.f32 %v1550_v12  ;;  %v1552_v15 = vmul.f32 1.442695, %v1733_v13 }
 0xc63   :  { %2082 = vpow2.f32 %v1552_v15 }
 0xc6b   :  { %v2081_v14 = vpop.eup %2080 }
 0xc6c   :  { %v1554_v16 = vadd.f32 1.0, %v2081_v14 }
 0xc6d   :  { %v2083_v17 = vpop.eup %2082 }
 0xc6e   :  { %2084 = vrcp.f32 %v1554_v16  ;;  %v1555_v18 = vadd.f32 1.0, %v2083_v17 }
 0xc70   :  { %2086 = vrcp.f32 %v1555_v18 }
 0xc78   :  { %v2085_v19 = vpop.eup %2084 }
 0xc79   :  { %v1560_v21 = vmul.f32 %v2085_v19, %v1540_v5 }
 0xc7a   :  { %v2087_v20 = vpop.eup %2086 }
 0xc7b   :  { %v1561_v22 = vmul.f32 %v2087_v20, %v1543_v39 }
 0xc7d   :  { %v1562_v23 = vpack.c.bf16 %v1561_v22, %v1560_v21 }
 0xc7f   :  { %1983 = vmatmul.mubr.bf16.vlgmr.msra.gmra.mrb[44].mxu0 %v1562_v23 }
 0xd52   :  { %v1668_v25 = vpop.f32.mrb[44].mxu0 }
 0xd53   :  { %v1669_v11 = vadd.f32 %v1734_v24, %v1668_v25  ;;  %v1984_v26 = vpop.f32.mrb[45].mxu0 }
 0xd54   :  { %v1671_v28 = vpop.f32.mrb[46].mxu0 }
 0xd55   :  { %v1675_v29 = vadd.f32 %v2459_v55, %v1669_v11  ;;  %v1672_v30 = vadd.f32 %v1734_v24, %v1671_v28  ;;  %v1985_v31 = vpop.f32.mrb[47].mxu0 }
 0xd57   :  { %1677 = vst.msk [vmem:[#allocation2] sm:$0xff] %vm50_vm0, %v1675_v29  ;;  %v1676_v32 = vadd.f32 %v2481_v27, %v1672_v30 }
 0xd59   :  { %1678 = vst.msk [vmem:[#allocation2 + $0x8] sm:$0xff] %vm50_vm0, %v1676_v32 }
 0xd5a   :  { %2099 = shalt.err (!%p2096_p4)
}
 0xd5b   :  { %s2100_s1 = scalar_lea.hbm %s2571_s13, 256 }
 0xd5c   :  { %p2101_p5 = scmp.ne.s32.totalorder %s2571_s13, %s2100_s1  ;;  %p2104_p6 = scmp.lt.u32.totalorder %s2100_s1, %s2571_s13 }
 0xd5e   :  { %p2106_p7 = pnand %p2104_p6, %p2101_p5 }
 0xd60   :  { %2109 = shalt.err (!%p2106_p7)
}
 0xd61   :  { %s2126_s21 = smov 128   ;;  %s2127_s22 = smov 8  }
 0xd62   :  { %1690 = dma.vmem_to_hbm [thread:$0]  %s1685_s8, 256, %s2571_s13, [#allocation3], %s2126_s21, %s2126_s21, %s2127_s22  }
 0xd63   :  { %2110 = dma.done.wait [#allocation3], 256  }
 0xd64   :  { %2111 = vsyncadd [#allocation3], 4294967040 }
 0xd65   :  { %1694 = vsyncpa [#allocation3], 1 }

</bundles_post_ra>
